<compile_context>
chip_gen: v6e
topology: v6e:2x2x1
jax: 0.10.0
libtpu: 0.0.40
codegen_flags: <defaults>
</compile_context>

<pallas_src>
import functools

import jax
import jax.numpy as jnp
from jax.experimental import pallas as pl
from jax.experimental.pallas import tpu as pltpu

EPS = 1e-5        # torch.nn.LayerNorm default
MASK_NEG = -1e30  # stand-in for -inf in masked_fill (exp underflows to 0 identically)

# Row layout of the packed small-parameter array (biases + LN affine params).
(ROW_S_BQ, ROW_S_BKV, ROW_S_BO,
 ROW_C_BQ, ROW_C_BKV, ROW_C_BO,
 ROW_F_B1, ROW_F_B2,
 ROW_LN1_G, ROW_LN1_B, ROW_LN2_G, ROW_LN2_B, ROW_LN3_G, ROW_LN3_B) = range(14)


# ------------------------------ in-kernel helpers ------------------------------

def _layer_norm(x, gamma, beta):
    # f32 throughout (tolerance + v5e has no bf16 VPU datapath).
    mu = jnp.mean(x, axis=-1, keepdims=True)
    var = jnp.mean(jnp.square(x - mu), axis=-1, keepdims=True)
    return (x - mu) * jax.lax.rsqrt(var + EPS) * gamma + beta


def _mha(xq, xkv, wq, wkv, wo, bq, bkv, bo, *, H, dk, dv, mask=None):
    """Multi-head attention for one (query-tile, batch) block, fully in VMEM.

    xq: (Lq, D) f32, xkv: (Lk, D) f32
    wq: (D, H*dk) bf16 (1/sqrt(d_k) pre-folded), wkv: (D, H*(dk+dv)) bf16, wo: (H*dv, D) bf16
    bq/bkv/bo: (1, N) f32
    mask: optional (Lq, Lk) f32, 1.0 where attention must be masked out
    returns: ((Lq, D) f32 output before residual/LN, list of H (Lq, Lk) f32 prob tiles)
    """
    Lq = xq.shape[0]
    D = wo.shape[1]

    xq_b = xq.astype(jnp.bfloat16)
    xkv_b = xkv.astype(jnp.bfloat16)
    # One matmul for all Q heads; one matmul for all K and V heads combined.
    q_all = jnp.dot(xq_b, wq, preferred_element_type=jnp.float32) + bq      # (Lq, H*dk)
    kv_all = jnp.dot(xkv_b, wkv, preferred_element_type=jnp.float32) + bkv  # (Lk, H*(dk+dv))
    k_all = kv_all[:, : H * dk]
    v_all = kv_all[:, H * dk:]

    acc = jnp.zeros((Lq, D), jnp.float32)   # single f32 accumulator (MRB-friendly on v7x)
    probs = []
    # TODO(synk): at realistic d_k pad/align the contraction to >=128 and use a single
    # head-batched dot_general instead of this unrolled loop (dk=8 wastes the MXU pass).
    for h in range(H):
        q_h = q_all[:, h * dk:(h + 1) * dk].astype(jnp.bfloat16)
        k_h = k_all[:, h * dk:(h + 1) * dk].astype(jnp.bfloat16)
        v_h = v_all[:, h * dv:(h + 1) * dv].astype(jnp.bfloat16)

        s = jnp.dot(q_h, k_h.T, preferred_element_type=jnp.float32)         # (Lq, Lk) f32
        if mask is not None:
            s = jnp.where(mask > 0.5, MASK_NEG, s)
        s = s - jnp.max(s, axis=-1, keepdims=True)
        e = jnp.exp(s)
        p = e * pl.reciprocal(jnp.sum(e, axis=-1, keepdims=True), approx=True)
        probs.append(p)

        o_h = jnp.dot(p.astype(jnp.bfloat16), v_h, preferred_element_type=jnp.float32)
        # concat-over-heads @ Wo.T  ==  sum over heads of o_h @ Wo.T[h-block]
        acc = acc + jnp.dot(o_h.astype(jnp.bfloat16), wo[h * dv:(h + 1) * dv, :],
                            preferred_element_type=jnp.float32)
    return acc + bo, probs


# ----------------------------------- kernel -----------------------------------

def _text_encoder_layer_kernel(*refs, H, dk, dv, has_img, has_mask, want_attn):
    it = iter(refs)
    enc_q_ref = next(it)                      # (1, tq, D)  query tile
    enc_kv_ref = next(it)                     # (1, L, D)   full sequence for self K/V
    mask_ref = next(it) if has_mask else None
    img_ref = next(it) if has_img else None
    s_wq_ref = next(it); s_wkv_ref = next(it); s_wo_ref = next(it)
    if has_img:
        c_wq_ref = next(it); c_wkv_ref = next(it); c_wo_ref = next(it)
    f_w1_ref = next(it); f_w2_ref = next(it)
    small_ref = next(it)
    out_ref = next(it)
    sa_ref = next(it) if want_attn else None
    ia_ref = next(it) if (want_attn and has_img) else None

    sm = small_ref[...]                       # (rows, maxlen) f32, tiny
    D = s_wo_ref.shape[1]
    d_inner = f_w1_ref.shape[1]
    Hdk = H * dk
    Hdkv = H * (dk + dv)

    def vec(row, n):                          # (1, n) slice of the packed params
        return sm[row:row + 1, :n]

    x_q = enc_q_ref[0]                        # (tq, D)
    x_kv = enc_kv_ref[0]                      # (L, D)
    mask = mask_ref[0] if has_mask else None  # (tq, L), 1.0 where masked

    # ---- self attention + add & LN ----
    a1, probs1 = _mha(x_q, x_kv, s_wq_ref[...], s_wkv_ref[...], s_wo_ref[...],
                      vec(ROW_S_BQ, Hdk), vec(ROW_S_BKV, Hdkv), vec(ROW_S_BO, D),
                      H=H, dk=dk, dv=dv, mask=mask)
    if want_attn:
        sa_ref[0] = jnp.concatenate(probs1, axis=-1)        # one (tq, H*L) store
    x = _layer_norm(a1 + x_q, vec(ROW_LN1_G, D), vec(ROW_LN1_B, D))

    # ---- encoder-image cross attention + add & LN ----
    if has_img:
        img = img_ref[0]                                     # (Li, D)
        a2, probs2 = _mha(x, img, c_wq_ref[...], c_wkv_ref[...], c_wo_ref[...],
                          vec(ROW_C_BQ, Hdk), vec(ROW_C_BKV, Hdkv), vec(ROW_C_BO, D),
                          H=H, dk=dk, dv=dv, mask=None)
        if want_attn:
            ia_ref[0] = jnp.concatenate(probs2, axis=-1)     # one (tq, H*Li) store
        x = _layer_norm(a2 + x, vec(ROW_LN2_G, D), vec(ROW_LN2_B, D))

    # ---- feed forward + add & LN ----
    h = jnp.dot(x.astype(jnp.bfloat16), f_w1_ref[...],
                preferred_element_type=jnp.float32) + vec(ROW_F_B1, d_inner)
    h = jnp.maximum(h, 0.0)                                  # ReLU (f32)
    ff = jnp.dot(h.astype(jnp.bfloat16), f_w2_ref[...],
                 preferred_element_type=jnp.float32) + vec(ROW_F_B2, D)
    out_ref[0] = _layer_norm(ff + x, vec(ROW_LN3_G, D), vec(ROW_LN3_B, D))


# ------------------------------ host-side wrapper ------------------------------

def prepare_params(params, d_k):
    """One-time host-side repack:
       * transpose to (K, N), fold K/V projections into one matrix,
       * fold 1/sqrt(d_k) into W_q/b_q,
       * cast the big matmul weights to bf16 (MXU-native, halves VMEM),
       * pack every bias / LN vector into one (rows, maxlen) f32 array.
    """
    inv_sqrt_dk = 1.0 / (d_k ** 0.5)

    def prep_mha(p):
        wq = (p["wq"] * inv_sqrt_dk).T.astype(jnp.bfloat16)                 # (D, H*dk)
        wkv = jnp.concatenate([p["wk"].T, p["wv"].T], axis=1).astype(jnp.bfloat16)
        wo = p["wo"].T.astype(jnp.bfloat16)                                 # (H*dv, D)
        return wq, wkv, wo, p["bq"] * inv_sqrt_dk, jnp.concatenate([p["bk"], p["bv"]]), p["bo"]

    s_wq, s_wkv, s_wo, s_bq, s_bkv, s_bo = prep_mha(params["self_attn"])
    c_wq, c_wkv, c_wo, c_bq, c_bkv, c_bo = prep_mha(params["img_attn"])

    vecs = [s_bq, s_bkv, s_bo, c_bq, c_bkv, c_bo,
            params["ffn_b1"], params["ffn_b2"],
            params["ln1_g"], params["ln1_b"],
            params["ln2_g"], params["ln2_b"],
            params["ln3_g"], params["ln3_b"]]
    maxlen = max(int(v.shape[0]) for v in vecs)
    small = jnp.stack([jnp.pad(v.astype(jnp.float32), (0, maxlen - v.shape[0])) for v in vecs])

    return dict(
        self_wq=s_wq, self_wkv=s_wkv, self_wo=s_wo,
        img_wq=c_wq, img_wkv=c_wkv, img_wo=c_wo,
        ffn_w1=params["ffn_w1"].T.astype(jnp.bfloat16),
        ffn_w2=params["ffn_w2"].T.astype(jnp.bfloat16),
        small=small,
    )


def _weight_spec(w, single_buffer):
    """Grid-invariant weight spec; request 1 pipeline buffer when supported."""
    n = w.ndim
    idx = lambda b, qi, _n=n: (0,) * _n
    if single_buffer and hasattr(pl, "Buffered"):
        try:
            return pl.BlockSpec(w.shape, idx, pipeline_mode=pl.Buffered(1))
        except TypeError:
            pass
    return pl.BlockSpec(w.shape, idx)


def text_encoder_layer(prepared, enc_input, img_enc_output=None, self_attn_mask=None,
                       *, head_num, d_k, d_v, return_attn=True, q_tile=None):
    B, L, D = enc_input.shape
    has_img = img_enc_output is not None
    has_mask = self_attn_mask is not None
    want_attn = return_attn
    Li = img_enc_output.shape[1] if has_img else 0

    tq = q_tile or min(L, 128)
    num_q = pl.cdiv(L, tq)

    # ---- activation inputs (pipelined per grid step) ----
    inputs = [enc_input, enc_input]           # q-tile view + full view for K/V
    in_specs = [pl.BlockSpec((1, tq, D), lambda b, qi: (b, qi, 0)),
                pl.BlockSpec((1, L, D), lambda b, qi: (b, 0, 0))]
    if has_mask:
        inputs.append(self_attn_mask.astype(jnp.float32))
        in_specs.append(pl.BlockSpec((1, tq, L), lambda b, qi: (b, qi, 0)))
    if has_img:
        inputs.append(img_enc_output)
        in_specs.append(pl.BlockSpec((1, Li, D), lambda b, qi: (b, 0, 0)))

    # ---- weights (grid-invariant, single-buffered) ----
    weights = [prepared["self_wq"], prepared["self_wkv"], prepared["self_wo"]]
    if has_img:
        weights += [prepared["img_wq"], prepared["img_wkv"], prepared["img_wo"]]
    weights += [prepared["ffn_w1"], prepared["ffn_w2"], prepared["small"]]

    # ---- outputs ----
    out_shape = [jax.ShapeDtypeStruct((B, L, D), jnp.float32)]
    out_specs = [pl.BlockSpec((1, tq, D), lambda b, qi: (b, qi, 0))]
    if want_attn:
        out_shape.append(jax.ShapeDtypeStruct((B, L, head_num * L), jnp.float32))
        out_specs.append(pl.BlockSpec((1, tq, head_num * L), lambda b, qi: (b, qi, 0)))
        if has_img:
            out_shape.append(jax.ShapeDtypeStruct((B, L, head_num * Li), jnp.float32))
            out_specs.append(pl.BlockSpec((1, tq, head_num * Li), lambda b, qi: (b, qi, 0)))

    # ---- VMEM budget sized from the actual resident footprint ----
    weight_bytes = sum(int(w.size) * w.dtype.itemsize for w in weights)
    blk_elems = (tq * D + L * D + (tq * L if has_mask else 0) + (Li * D if has_img else 0)
                 + tq * D
                 + (tq * head_num * L if want_attn else 0)
                 + (tq * head_num * Li if (want_attn and has_img) else 0))
    pipeline_bytes = 2 * blk_elems * 4                      # double-buffered f32 blocks
    vmem_limit = int(min(128 * 2 ** 20, weight_bytes + pipeline_bytes + (16 << 20)))

    kernel = functools.partial(_text_encoder_layer_kernel,
                               H=head_num, dk=d_k, dv=d_v,
                               has_img=has_img, has_mask=has_mask, want_attn=want_attn)

    def _build(single_buffer_weights):
        specs = list(in_specs) + [_weight_spec(w, single_buffer_weights) for w in weights]
        return pl.pallas_call(
            kernel,
            grid=(B, num_q),
            in_specs=specs,
            out_specs=out_specs,
            out_shape=out_shape,
            compiler_params=pltpu.CompilerParams(
                dimension_semantics=("parallel", "parallel"),
                vmem_limit_bytes=vmem_limit),
        )

    all_inputs = inputs + weights
    try:
        results = jax.block_until_ready(_build(True)(*all_inputs))
    except Exception:
        # Fallback if this jax build rejects single-buffered (Buffered(1)) weight specs.
        results = jax.block_until_ready(_build(False)(*all_inputs))
    if not isinstance(results, (list, tuple)):
        results = [results]

    out = results[0]
    enc_self_attn = None
    enc_img_attn = None
    if want_attn:
        # lane-packed (B, L, H*Lk) -> torch layout (H*B, L, Lk), row = h*B + b
        sa = results[1].reshape(B, L, head_num, L)
        enc_self_attn = jnp.transpose(sa, (2, 0, 1, 3)).reshape(head_num * B, L, L)
        if has_img:
            ia = results[2].reshape(B, L, head_num, Li)
            enc_img_attn = jnp.transpose(ia, (2, 0, 1, 3)).reshape(head_num * B, L, Li)
    return out, enc_self_attn, enc_img_attn


# --------------------------- deterministic params ---------------------------

def _linear_params(key, out_f, in_f):
    kw, kb = jax.random.split(key)
    bound = 1.0 / (in_f ** 0.5)  # torch nn.Linear default init
    w = jax.random.uniform(kw, (out_f, in_f), jnp.float32, -bound, bound)
    b = jax.random.uniform(kb, (out_f,), jnp.float32, -bound, bound)
    return w, b


def make_params(key, d_model, head_num, d_k, d_v, d_inner):
    keys = jax.random.split(key, 4)

    def mha_params(k4):
        ks = jax.random.split(k4, 4)
        wq, bq = _linear_params(ks[0], head_num * d_k, d_model)
        wk, bk = _linear_params(ks[1], head_num * d_k, d_model)
        wv, bv = _linear_params(ks[2], head_num * d_v, d_model)
        wo, bo = _linear_params(ks[3], d_model, head_num * d_v)
        return dict(wq=wq, bq=bq, wk=wk, bk=bk, wv=wv, bv=bv, wo=wo, bo=bo)

    w1, b1 = _linear_params(keys[2], d_inner, d_model)
    w2, b2 = _linear_params(keys[3], d_model, d_inner)
    ones = jnp.ones((d_model,), jnp.float32)
    zeros = jnp.zeros((d_model,), jnp.float32)
    return dict(
        self_attn=mha_params(keys[0]),
        img_attn=mha_params(keys[1]),
        ffn_w1=w1, ffn_b1=b1, ffn_w2=w2, ffn_b2=b2,
        ln1_g=ones, ln1_b=zeros,
        ln2_g=ones, ln2_b=zeros,
        ln3_g=ones, ln3_b=zeros,
    )


# ----------------------------- pure-JAX reference ----------------------------

def _ref_linear(x, w, b):
    return x @ w.T + b


def _ref_mha(p, Q, K, V, H, dk, dv, mask=None):
    B, Lq, D = Q.shape
    Lk = K.shape[1]
    q = _ref_linear(Q, p["wq"], p["bq"]).reshape(B, Lq, H, dk).transpose(2, 0, 1, 3).reshape(H * B, Lq, dk)
    k = _ref_linear(K, p["wk"], p["bk"]).reshape(B, Lk, H, dk).transpose(2, 0, 1, 3).reshape(H * B, Lk, dk)
    v = _ref_linear(V, p["wv"], p["bv"]).reshape(B, Lk, H, dv).transpose(2, 0, 1, 3).reshape(H * B, Lk, dv)
    q = q / (dk ** 0.5)
    s = jnp.einsum("bqd,bkd->bqk", q, k)
    if mask is not None:
        s = jnp.where(jnp.tile(mask, (H, 1, 1)), MASK_NEG, s)
    a = jax.nn.softmax(s, axis=2)
    o = jnp.einsum("bqk,bkd->bqd", a, v)
    o = o.reshape(H, B, Lq, dv).transpose(1, 2, 0, 3).reshape(B, Lq, H * dv)
    return _ref_linear(o, p["wo"], p["bo"]), a


def _ref_ln(x, g, b):
    mu = x.mean(-1, keepdims=True)
    var = ((x - mu) ** 2).mean(-1, keepdims=True)
    return (x - mu) / jnp.sqrt(var + EPS) * g + b


def ref_forward(params, enc_input, img_enc_output, self_attn_mask, H, dk, dv):
    a1, sa = _ref_mha(params["self_attn"], enc_input, enc_input, enc_input, H, dk, dv,
                      mask=self_attn_mask)
    x = _ref_ln(a1 + enc_input, params["ln1_g"], params["ln1_b"])
    ia = None
    if img_enc_output is not None:
        a2, ia = _ref_mha(params["img_attn"], x, img_enc_output, img_enc_output, H, dk, dv)
        x = _ref_ln(a2 + x, params["ln2_g"], params["ln2_b"])
    h = jnp.maximum(_ref_linear(x, params["ffn_w1"], params["ffn_b1"]), 0.0)
    ff = _ref_linear(h, params["ffn_w2"], params["ffn_b2"])
    out = _ref_ln(ff + x, params["ln3_g"], params["ln3_b"])
    return out, sa, ia


# ----------------------------------- main ------------------------------------

if __name__ == "__main__":
    d_model, head_num, d_k, d_v, d_inner = 32, 4, 8, 8, 64
    B, L, L_img = 2, 8, 8

    key = jax.random.PRNGKey(0)
    kp, kx, ki, km = jax.random.split(key, 4)
    params = make_params(kp, d_model, head_num, d_k, d_v, d_inner)
    prepared = prepare_params(params, d_k)
    enc_input = jax.random.normal(kx, (B, L, d_model), jnp.float32)
    img_enc_output = jax.random.normal(ki, (B, L_img, d_model), jnp.float32)
    mask = jax.random.bernoulli(km, 0.3, (B, L, L))
    mask = mask.at[:, :, 0].set(False)        # keep >=1 unmasked key per query row

    # Tolerance: kernel uses bf16 MXU operands (f32 accumulate), ref is pure f32.
    TOL = dict(atol=3e-2, rtol=3e-2)

    # 1) with image cross-attention
    out, sa, ia = text_encoder_layer(prepared, enc_input, img_enc_output,
                                     head_num=head_num, d_k=d_k, d_v=d_v)
    jax.block_until_ready(out)
    assert out.shape == (B, L, d_model)
    assert sa.shape == (head_num * B, L, L)
    assert ia.shape == (head_num * B, L, L_img)
    r_out, r_sa, r_ia = ref_forward(params, enc_input, img_enc_output, None, head_num, d_k, d_v)
    assert jnp.allclose(out, r_out, **TOL)
    assert jnp.allclose(sa, r_sa, **TOL)
    assert jnp.allclose(ia, r_ia, **TOL)

    # 2) without image cross-attention (img_enc_output=None path)
    out2, sa2, ia2 = text_encoder_layer(prepared, enc_input, None,
                                        head_num=head_num, d_k=d_k, d_v=d_v)
    jax.block_until_ready(out2)
    r_out2, r_sa2, _ = ref_forward(params, enc_input, None, None, head_num, d_k, d_v)
    assert ia2 is None
    assert jnp.allclose(out2, r_out2, **TOL)
    assert jnp.allclose(sa2, r_sa2, **TOL)

    # 3) with a self-attention mask (torch masked_fill semantics)
    out3, sa3, ia3 = text_encoder_layer(prepared, enc_input, img_enc_output, mask,
                                        head_num=head_num, d_k=d_k, d_v=d_v)
    jax.block_until_ready(out3)
    r_out3, r_sa3, r_ia3 = ref_forward(params, enc_input, img_enc_output, mask,
                                       head_num, d_k, d_v)
    assert jnp.allclose(out3, r_out3, **TOL)
    assert jnp.allclose(sa3, r_sa3, **TOL)
    assert jnp.allclose(ia3, r_ia3, **TOL)

    # 4) attention maps not needed -> skip their HBM writeback entirely
    out4, _, _ = text_encoder_layer(prepared, enc_input, img_enc_output,
                                    head_num=head_num, d_k=d_k, d_v=d_v, return_attn=False)
    jax.block_until_ready(out4)
    assert jnp.allclose(out4, r_out, **TOL)

    print("KERNEL_OK")
</pallas_src>

<mosaic_0001>
module attributes {stable_mosaic.version = 11 : i64} {
  func.func @_text_encoder_layer_kernel(%arg0: i32, %arg1: i32, %arg2: memref<1x8x32xf32, #tpu.memory_space<vmem>>, %arg3: memref<1x8x32xf32, #tpu.memory_space<vmem>>, %arg4: memref<1x8x32xf32, #tpu.memory_space<vmem>>, %arg5: memref<32x32xbf16, #tpu.memory_space<vmem>>, %arg6: memref<32x64xbf16, #tpu.memory_space<vmem>>, %arg7: memref<32x32xbf16, #tpu.memory_space<vmem>>, %arg8: memref<32x32xbf16, #tpu.memory_space<vmem>>, %arg9: memref<32x64xbf16, #tpu.memory_space<vmem>>, %arg10: memref<32x32xbf16, #tpu.memory_space<vmem>>, %arg11: memref<32x64xbf16, #tpu.memory_space<vmem>>, %arg12: memref<64x32xbf16, #tpu.memory_space<vmem>>, %arg13: memref<14x64xf32, #tpu.memory_space<vmem>>, %arg14: memref<1x8x32xf32, #tpu.memory_space<vmem>>, %arg15: memref<1x8x32xf32, #tpu.memory_space<vmem>>, %arg16: memref<1x8x32xf32, #tpu.memory_space<vmem>>) attributes {dimension_semantics = [#tpu.dimension_semantics<parallel>, #tpu.dimension_semantics<parallel>], iteration_bounds = array<i64: 2, 1>, scalar_prefetch = 0 : i64, scratch_operands = 0 : i64, tpu.core_type = #tpu.core_type<tc>, window_params = [{transform_indices = @transform_0, window_bounds = array<i64: 1, 8, 32>}, {transform_indices = @transform_1, window_bounds = array<i64: 1, 8, 32>}, {transform_indices = @transform_2, window_bounds = array<i64: 1, 8, 32>}, {pipeline_mode = #tpu.pipeline_mode<synchronous>, transform_indices = @transform_3, window_bounds = array<i64: 32, 32>}, {pipeline_mode = #tpu.pipeline_mode<synchronous>, transform_indices = @transform_4, window_bounds = array<i64: 32, 64>}, {pipeline_mode = #tpu.pipeline_mode<synchronous>, transform_indices = @transform_5, window_bounds = array<i64: 32, 32>}, {pipeline_mode = #tpu.pipeline_mode<synchronous>, transform_indices = @transform_6, window_bounds = array<i64: 32, 32>}, {pipeline_mode = #tpu.pipeline_mode<synchronous>, transform_indices = @transform_7, window_bounds = array<i64: 32, 64>}, {pipeline_mode = #tpu.pipeline_mode<synchronous>, transform_indices = @transform_8, window_bounds = array<i64: 32, 32>}, {pipeline_mode = #tpu.pipeline_mode<synchronous>, transform_indices = @transform_9, window_bounds = array<i64: 32, 64>}, {pipeline_mode = #tpu.pipeline_mode<synchronous>, transform_indices = @transform_10, window_bounds = array<i64: 64, 32>}, {pipeline_mode = #tpu.pipeline_mode<synchronous>, transform_indices = @transform_11, window_bounds = array<i64: 14, 64>}, {transform_indices = @transform_12, window_bounds = array<i64: 1, 8, 32>}, {transform_indices = @transform_13, window_bounds = array<i64: 1, 8, 32>}, {transform_indices = @transform_14, window_bounds = array<i64: 1, 8, 32>}]} {
    %c0 = arith.constant 0 : index
    %c0_0 = arith.constant 0 : index
    %0 = vector.load %arg13[%c0, %c0_0] : memref<14x64xf32, #tpu.memory_space<vmem>>, vector<14x64xf32>
    %c0_1 = arith.constant 0 : index
    %c0_2 = arith.constant 0 : index
    %c0_3 = arith.constant 0 : index
    %1 = vector.load %arg2[%c0_1, %c0_2, %c0_3] : memref<1x8x32xf32, #tpu.memory_space<vmem>>, vector<1x8x32xf32>
    %2 = vector.shape_cast %1 : vector<1x8x32xf32> to vector<8x32xf32>
    %c0_4 = arith.constant 0 : index
    %c0_5 = arith.constant 0 : index
    %c0_6 = arith.constant 0 : index
    %3 = vector.load %arg3[%c0_4, %c0_5, %c0_6] : memref<1x8x32xf32, #tpu.memory_space<vmem>>, vector<1x8x32xf32>
    %4 = vector.shape_cast %3 : vector<1x8x32xf32> to vector<8x32xf32>
    %c0_7 = arith.constant 0 : index
    %c0_8 = arith.constant 0 : index
    %5 = vector.load %arg5[%c0_7, %c0_8] : memref<32x32xbf16, #tpu.memory_space<vmem>>, vector<32x32xbf16>
    %c0_9 = arith.constant 0 : index
    %c0_10 = arith.constant 0 : index
    %6 = vector.load %arg6[%c0_9, %c0_10] : memref<32x64xbf16, #tpu.memory_space<vmem>>, vector<32x64xbf16>
    %c0_11 = arith.constant 0 : index
    %c0_12 = arith.constant 0 : index
    %7 = vector.load %arg7[%c0_11, %c0_12] : memref<32x32xbf16, #tpu.memory_space<vmem>>, vector<32x32xbf16>
    %8 = vector.extract_strided_slice %0 {offsets = [0, 0], sizes = [1, 32], strides = [1, 1]} : vector<14x64xf32> to vector<1x32xf32>
    %9 = vector.extract_strided_slice %0 {offsets = [1, 0], sizes = [1, 64], strides = [1, 1]} : vector<14x64xf32> to vector<1x64xf32>
    %10 = vector.extract_strided_slice %0 {offsets = [2, 0], sizes = [1, 32], strides = [1, 1]} : vector<14x64xf32> to vector<1x32xf32>
    %11 = arith.truncf %2 : vector<8x32xf32> to vector<8x32xbf16>
    %12 = arith.truncf %4 : vector<8x32xf32> to vector<8x32xbf16>
    %cst = arith.constant dense<0.000000e+00> : vector<8x32xf32>
    %13 = tpu.matmul %11, %5, %cst {dimension_numbers = #tpu.dot_dimension_numbers<[1], [0], [0], [1], [0, 0, 1, 1], [], []>} : vector<8x32xbf16>, vector<32x32xbf16>, vector<8x32xf32> -> vector<8x32xf32>
    %14 = vector.broadcast %8 : vector<1x32xf32> to vector<8x32xf32>
    %15 = arith.addf %13, %14 : vector<8x32xf32>
    %cst_13 = arith.constant dense<0.000000e+00> : vector<8x64xf32>
    %16 = tpu.matmul %12, %6, %cst_13 {dimension_numbers = #tpu.dot_dimension_numbers<[1], [0], [0], [1], [0, 0, 1, 1], [], []>} : vector<8x32xbf16>, vector<32x64xbf16>, vector<8x64xf32> -> vector<8x64xf32>
    %17 = vector.broadcast %9 : vector<1x64xf32> to vector<8x64xf32>
    %18 = arith.addf %16, %17 : vector<8x64xf32>
    %19 = vector.extract_strided_slice %18 {offsets = [0, 0], sizes = [8, 32], strides = [1, 1]} : vector<8x64xf32> to vector<8x32xf32>
    %20 = vector.extract_strided_slice %18 {offsets = [0, 32], sizes = [8, 32], strides = [1, 1]} : vector<8x64xf32> to vector<8x32xf32>
    %cst_14 = arith.constant 0.000000e+00 : f32
    %21 = vector.broadcast %cst_14 : f32 to vector<8x32xf32>
    %22 = vector.extract_strided_slice %15 {offsets = [0, 0], sizes = [8, 8], strides = [1, 1]} : vector<8x32xf32> to vector<8x8xf32>
    %23 = arith.truncf %22 : vector<8x8xf32> to vector<8x8xbf16>
    %24 = vector.extract_strided_slice %19 {offsets = [0, 0], sizes = [8, 8], strides = [1, 1]} : vector<8x32xf32> to vector<8x8xf32>
    %25 = arith.truncf %24 : vector<8x8xf32> to vector<8x8xbf16>
    %26 = vector.extract_strided_slice %20 {offsets = [0, 0], sizes = [8, 8], strides = [1, 1]} : vector<8x32xf32> to vector<8x8xf32>
    %27 = arith.truncf %26 : vector<8x8xf32> to vector<8x8xbf16>
    %28 = tpu.transpose %25, [1, 0] : vector<8x8xbf16> -> vector<8x8xbf16>
    %cst_15 = arith.constant dense<0.000000e+00> : vector<8x8xf32>
    %29 = tpu.matmul %23, %28, %cst_15 {dimension_numbers = #tpu.dot_dimension_numbers<[1], [0], [0], [1], [0, 0, 1, 1], [], []>} : vector<8x8xbf16>, vector<8x8xbf16>, vector<8x8xf32> -> vector<8x8xf32>
    %cst_16 = arith.constant dense<0xFF800000> : vector<8xf32>
    %30 = vector.multi_reduction <maximumf>, %29, %cst_16 [1] : vector<8x8xf32> to vector<8xf32>
    %31 = vector.shape_cast %30 : vector<8xf32> to vector<8x1xf32>
    %32 = vector.broadcast %31 : vector<8x1xf32> to vector<8x8xf32>
    %33 = arith.subf %29, %32 : vector<8x8xf32>
    %34 = math.exp %33 : vector<8x8xf32>
    %cst_17 = arith.constant dense<0.000000e+00> : vector<8xf32>
    %35 = vector.multi_reduction <add>, %34, %cst_17 [1] : vector<8x8xf32> to vector<8xf32>
    %36 = vector.shape_cast %35 : vector<8xf32> to vector<8x1xf32>
    %37 = tpu.reciprocal %36 {approx = true} : vector<8x1xf32> -> vector<8x1xf32>
    %38 = vector.broadcast %37 : vector<8x1xf32> to vector<8x8xf32>
    %39 = arith.mulf %34, %38 : vector<8x8xf32>
    %40 = arith.truncf %39 : vector<8x8xf32> to vector<8x8xbf16>
    %cst_18 = arith.constant dense<0.000000e+00> : vector<8x8xf32>
    %41 = tpu.matmul %40, %27, %cst_18 {dimension_numbers = #tpu.dot_dimension_numbers<[1], [0], [0], [1], [0, 0, 1, 1], [], []>} : vector<8x8xbf16>, vector<8x8xbf16>, vector<8x8xf32> -> vector<8x8xf32>
    %42 = arith.truncf %41 : vector<8x8xf32> to vector<8x8xbf16>
    %43 = vector.extract_strided_slice %7 {offsets = [0, 0], sizes = [8, 32], strides = [1, 1]} : vector<32x32xbf16> to vector<8x32xbf16>
    %cst_19 = arith.constant dense<0.000000e+00> : vector<8x32xf32>
    %44 = tpu.matmul %42, %43, %cst_19 {dimension_numbers = #tpu.dot_dimension_numbers<[1], [0], [0], [1], [0, 0, 1, 1], [], []>} : vector<8x8xbf16>, vector<8x32xbf16>, vector<8x32xf32> -> vector<8x32xf32>
    %45 = arith.addf %21, %44 : vector<8x32xf32>
    %46 = vector.extract_strided_slice %15 {offsets = [0, 8], sizes = [8, 8], strides = [1, 1]} : vector<8x32xf32> to vector<8x8xf32>
    %47 = arith.truncf %46 : vector<8x8xf32> to vector<8x8xbf16>
    %48 = vector.extract_strided_slice %19 {offsets = [0, 8], sizes = [8, 8], strides = [1, 1]} : vector<8x32xf32> to vector<8x8xf32>
    %49 = arith.truncf %48 : vector<8x8xf32> to vector<8x8xbf16>
    %50 = vector.extract_strided_slice %20 {offsets = [0, 8], sizes = [8, 8], strides = [1, 1]} : vector<8x32xf32> to vector<8x8xf32>
    %51 = arith.truncf %50 : vector<8x8xf32> to vector<8x8xbf16>
    %52 = tpu.transpose %49, [1, 0] : vector<8x8xbf16> -> vector<8x8xbf16>
    %cst_20 = arith.constant dense<0.000000e+00> : vector<8x8xf32>
    %53 = tpu.matmul %47, %52, %cst_20 {dimension_numbers = #tpu.dot_dimension_numbers<[1], [0], [0], [1], [0, 0, 1, 1], [], []>} : vector<8x8xbf16>, vector<8x8xbf16>, vector<8x8xf32> -> vector<8x8xf32>
    %cst_21 = arith.constant dense<0xFF800000> : vector<8xf32>
    %54 = vector.multi_reduction <maximumf>, %53, %cst_21 [1] : vector<8x8xf32> to vector<8xf32>
    %55 = vector.shape_cast %54 : vector<8xf32> to vector<8x1xf32>
    %56 = vector.broadcast %55 : vector<8x1xf32> to vector<8x8xf32>
    %57 = arith.subf %53, %56 : vector<8x8xf32>
    %58 = math.exp %57 : vector<8x8xf32>
    %cst_22 = arith.constant dense<0.000000e+00> : vector<8xf32>
    %59 = vector.multi_reduction <add>, %58, %cst_22 [1] : vector<8x8xf32> to vector<8xf32>
    %60 = vector.shape_cast %59 : vector<8xf32> to vector<8x1xf32>
    %61 = tpu.reciprocal %60 {approx = true} : vector<8x1xf32> -> vector<8x1xf32>
    %62 = vector.broadcast %61 : vector<8x1xf32> to vector<8x8xf32>
    %63 = arith.mulf %58, %62 : vector<8x8xf32>
    %64 = arith.truncf %63 : vector<8x8xf32> to vector<8x8xbf16>
    %cst_23 = arith.constant dense<0.000000e+00> : vector<8x8xf32>
    %65 = tpu.matmul %64, %51, %cst_23 {dimension_numbers = #tpu.dot_dimension_numbers<[1], [0], [0], [1], [0, 0, 1, 1], [], []>} : vector<8x8xbf16>, vector<8x8xbf16>, vector<8x8xf32> -> vector<8x8xf32>
    %66 = arith.truncf %65 : vector<8x8xf32> to vector<8x8xbf16>
    %67 = vector.extract_strided_slice %7 {offsets = [8, 0], sizes = [8, 32], strides = [1, 1]} : vector<32x32xbf16> to vector<8x32xbf16>
    %cst_24 = arith.constant dense<0.000000e+00> : vector<8x32xf32>
    %68 = tpu.matmul %66, %67, %cst_24 {dimension_numbers = #tpu.dot_dimension_numbers<[1], [0], [0], [1], [0, 0, 1, 1], [], []>} : vector<8x8xbf16>, vector<8x32xbf16>, vector<8x32xf32> -> vector<8x32xf32>
    %69 = arith.addf %45, %68 : vector<8x32xf32>
    %70 = vector.extract_strided_slice %15 {offsets = [0, 16], sizes = [8, 8], strides = [1, 1]} : vector<8x32xf32> to vector<8x8xf32>
    %71 = arith.truncf %70 : vector<8x8xf32> to vector<8x8xbf16>
    %72 = vector.extract_strided_slice %19 {offsets = [0, 16], sizes = [8, 8], strides = [1, 1]} : vector<8x32xf32> to vector<8x8xf32>
    %73 = arith.truncf %72 : vector<8x8xf32> to vector<8x8xbf16>
    %74 = vector.extract_strided_slice %20 {offsets = [0, 16], sizes = [8, 8], strides = [1, 1]} : vector<8x32xf32> to vector<8x8xf32>
    %75 = arith.truncf %74 : vector<8x8xf32> to vector<8x8xbf16>
    %76 = tpu.transpose %73, [1, 0] : vector<8x8xbf16> -> vector<8x8xbf16>
    %cst_25 = arith.constant dense<0.000000e+00> : vector<8x8xf32>
    %77 = tpu.matmul %71, %76, %cst_25 {dimension_numbers = #tpu.dot_dimension_numbers<[1], [0], [0], [1], [0, 0, 1, 1], [], []>} : vector<8x8xbf16>, vector<8x8xbf16>, vector<8x8xf32> -> vector<8x8xf32>
    %cst_26 = arith.constant dense<0xFF800000> : vector<8xf32>
    %78 = vector.multi_reduction <maximumf>, %77, %cst_26 [1] : vector<8x8xf32> to vector<8xf32>
    %79 = vector.shape_cast %78 : vector<8xf32> to vector<8x1xf32>
    %80 = vector.broadcast %79 : vector<8x1xf32> to vector<8x8xf32>
    %81 = arith.subf %77, %80 : vector<8x8xf32>
    %82 = math.exp %81 : vector<8x8xf32>
    %cst_27 = arith.constant dense<0.000000e+00> : vector<8xf32>
    %83 = vector.multi_reduction <add>, %82, %cst_27 [1] : vector<8x8xf32> to vector<8xf32>
    %84 = vector.shape_cast %83 : vector<8xf32> to vector<8x1xf32>
    %85 = tpu.reciprocal %84 {approx = true} : vector<8x1xf32> -> vector<8x1xf32>
    %86 = vector.broadcast %85 : vector<8x1xf32> to vector<8x8xf32>
    %87 = arith.mulf %82, %86 : vector<8x8xf32>
    %88 = arith.truncf %87 : vector<8x8xf32> to vector<8x8xbf16>
    %cst_28 = arith.constant dense<0.000000e+00> : vector<8x8xf32>
    %89 = tpu.matmul %88, %75, %cst_28 {dimension_numbers = #tpu.dot_dimension_numbers<[1], [0], [0], [1], [0, 0, 1, 1], [], []>} : vector<8x8xbf16>, vector<8x8xbf16>, vector<8x8xf32> -> vector<8x8xf32>
    %90 = arith.truncf %89 : vector<8x8xf32> to vector<8x8xbf16>
    %91 = vector.extract_strided_slice %7 {offsets = [16, 0], sizes = [8, 32], strides = [1, 1]} : vector<32x32xbf16> to vector<8x32xbf16>
    %cst_29 = arith.constant dense<0.000000e+00> : vector<8x32xf32>
    %92 = tpu.matmul %90, %91, %cst_29 {dimension_numbers = #tpu.dot_dimension_numbers<[1], [0], [0], [1], [0, 0, 1, 1], [], []>} : vector<8x8xbf16>, vector<8x32xbf16>, vector<8x32xf32> -> vector<8x32xf32>
    %93 = arith.addf %69, %92 : vector<8x32xf32>
    %94 = vector.extract_strided_slice %15 {offsets = [0, 24], sizes = [8, 8], strides = [1, 1]} : vector<8x32xf32> to vector<8x8xf32>
    %95 = arith.truncf %94 : vector<8x8xf32> to vector<8x8xbf16>
    %96 = vector.extract_strided_slice %19 {offsets = [0, 24], sizes = [8, 8], strides = [1, 1]} : vector<8x32xf32> to vector<8x8xf32>
    %97 = arith.truncf %96 : vector<8x8xf32> to vector<8x8xbf16>
    %98 = vector.extract_strided_slice %20 {offsets = [0, 24], sizes = [8, 8], strides = [1, 1]} : vector<8x32xf32> to vector<8x8xf32>
    %99 = arith.truncf %98 : vector<8x8xf32> to vector<8x8xbf16>
    %100 = tpu.transpose %97, [1, 0] : vector<8x8xbf16> -> vector<8x8xbf16>
    %cst_30 = arith.constant dense<0.000000e+00> : vector<8x8xf32>
    %101 = tpu.matmul %95, %100, %cst_30 {dimension_numbers = #tpu.dot_dimension_numbers<[1], [0], [0], [1], [0, 0, 1, 1], [], []>} : vector<8x8xbf16>, vector<8x8xbf16>, vector<8x8xf32> -> vector<8x8xf32>
    %cst_31 = arith.constant dense<0xFF800000> : vector<8xf32>
    %102 = vector.multi_reduction <maximumf>, %101, %cst_31 [1] : vector<8x8xf32> to vector<8xf32>
    %103 = vector.shape_cast %102 : vector<8xf32> to vector<8x1xf32>
    %104 = vector.broadcast %103 : vector<8x1xf32> to vector<8x8xf32>
    %105 = arith.subf %101, %104 : vector<8x8xf32>
    %106 = math.exp %105 : vector<8x8xf32>
    %cst_32 = arith.constant dense<0.000000e+00> : vector<8xf32>
    %107 = vector.multi_reduction <add>, %106, %cst_32 [1] : vector<8x8xf32> to vector<8xf32>
    %108 = vector.shape_cast %107 : vector<8xf32> to vector<8x1xf32>
    %109 = tpu.reciprocal %108 {approx = true} : vector<8x1xf32> -> vector<8x1xf32>
    %110 = vector.broadcast %109 : vector<8x1xf32> to vector<8x8xf32>
    %111 = arith.mulf %106, %110 : vector<8x8xf32>
    %112 = arith.truncf %111 : vector<8x8xf32> to vector<8x8xbf16>
    %cst_33 = arith.constant dense<0.000000e+00> : vector<8x8xf32>
    %113 = tpu.matmul %112, %99, %cst_33 {dimension_numbers = #tpu.dot_dimension_numbers<[1], [0], [0], [1], [0, 0, 1, 1], [], []>} : vector<8x8xbf16>, vector<8x8xbf16>, vector<8x8xf32> -> vector<8x8xf32>
    %114 = arith.truncf %113 : vector<8x8xf32> to vector<8x8xbf16>
    %115 = vector.extract_strided_slice %7 {offsets = [24, 0], sizes = [8, 32], strides = [1, 1]} : vector<32x32xbf16> to vector<8x32xbf16>
    %cst_34 = arith.constant dense<0.000000e+00> : vector<8x32xf32>
    %116 = tpu.matmul %114, %115, %cst_34 {dimension_numbers = #tpu.dot_dimension_numbers<[1], [0], [0], [1], [0, 0, 1, 1], [], []>} : vector<8x8xbf16>, vector<8x32xbf16>, vector<8x32xf32> -> vector<8x32xf32>
    %117 = arith.addf %93, %116 : vector<8x32xf32>
    %118 = vector.broadcast %10 : vector<1x32xf32> to vector<8x32xf32>
    %119 = arith.addf %117, %118 : vector<8x32xf32>
    %120 = tpu.concatenate %39, %63, %87, %111 in 1 : vector<8x8xf32>, vector<8x8xf32>, vector<8x8xf32>, vector<8x8xf32> -> vector<8x32xf32>
    %c0_35 = arith.constant 0 : index
    %c0_36 = arith.constant 0 : index
    %c0_37 = arith.constant 0 : index
    %121 = vector.load %arg15[%c0_35, %c0_36, %c0_37] : memref<1x8x32xf32, #tpu.memory_space<vmem>>, vector<1x8x32xf32>
    %122 = vector.shape_cast %121 : vector<1x8x32xf32> to vector<8x32xf32>
    %123 = vector.shape_cast %120 : vector<8x32xf32> to vector<1x8x32xf32>
    tpu.vector_store %arg15[%c0_35, %c0_36, %c0_37], %123 {strides = array<i32>} : memref<1x8x32xf32, #tpu.memory_space<vmem>>, vector<1x8x32xf32>,
    %124 = arith.addf %119, %2 : vector<8x32xf32>
    %125 = vector.extract_strided_slice %0 {offsets = [8, 0], sizes = [1, 32], strides = [1, 1]} : vector<14x64xf32> to vector<1x32xf32>
    %126 = vector.extract_strided_slice %0 {offsets = [9, 0], sizes = [1, 32], strides = [1, 1]} : vector<14x64xf32> to vector<1x32xf32>
    %cst_38 = arith.constant dense<0.000000e+00> : vector<8xf32>
    %127 = vector.multi_reduction <add>, %124, %cst_38 [1] : vector<8x32xf32> to vector<8xf32>
    %128 = vector.shape_cast %127 : vector<8xf32> to vector<8x1xf32>
    %cst_39 = arith.constant 3.200000e+01 : f32
    %129 = vector.broadcast %cst_39 : f32 to vector<8x1xf32>
    %130 = arith.divf %128, %129 : vector<8x1xf32>
    %131 = vector.broadcast %130 : vector<8x1xf32> to vector<8x32xf32>
    %132 = arith.subf %124, %131 : vector<8x32xf32>
    %133 = arith.mulf %132, %132 : vector<8x32xf32>
    %cst_40 = arith.constant dense<0.000000e+00> : vector<8xf32>
    %134 = vector.multi_reduction <add>, %133, %cst_40 [1] : vector<8x32xf32> to vector<8xf32>
    %135 = vector.shape_cast %134 : vector<8xf32> to vector<8x1xf32>
    %cst_41 = arith.constant 3.200000e+01 : f32
    %136 = vector.broadcast %cst_41 : f32 to vector<8x1xf32>
    %137 = arith.divf %135, %136 : vector<8x1xf32>
    %138 = vector.broadcast %130 : vector<8x1xf32> to vector<8x32xf32>
    %139 = arith.subf %124, %138 : vector<8x32xf32>
    %cst_42 = arith.constant 9.99999974E-6 : f32
    %140 = vector.broadcast %cst_42 : f32 to vector<8x1xf32>
    %141 = arith.addf %137, %140 : vector<8x1xf32>
    %142 = math.rsqrt %141 : vector<8x1xf32>
    %143 = vector.broadcast %142 : vector<8x1xf32> to vector<8x32xf32>
    %144 = arith.mulf %139, %143 : vector<8x32xf32>
    %145 = vector.broadcast %125 : vector<1x32xf32> to vector<8x32xf32>
    %146 = arith.mulf %144, %145 : vector<8x32xf32>
    %147 = vector.broadcast %126 : vector<1x32xf32> to vector<8x32xf32>
    %148 = arith.addf %146, %147 : vector<8x32xf32>
    %c0_43 = arith.constant 0 : index
    %c0_44 = arith.constant 0 : index
    %c0_45 = arith.constant 0 : index
    %149 = vector.load %arg4[%c0_43, %c0_44, %c0_45] : memref<1x8x32xf32, #tpu.memory_space<vmem>>, vector<1x8x32xf32>
    %150 = vector.shape_cast %149 : vector<1x8x32xf32> to vector<8x32xf32>
    %c0_46 = arith.constant 0 : index
    %c0_47 = arith.constant 0 : index
    %151 = vector.load %arg8[%c0_46, %c0_47] : memref<32x32xbf16, #tpu.memory_space<vmem>>, vector<32x32xbf16>
    %c0_48 = arith.constant 0 : index
    %c0_49 = arith.constant 0 : index
    %152 = vector.load %arg9[%c0_48, %c0_49] : memref<32x64xbf16, #tpu.memory_space<vmem>>, vector<32x64xbf16>
    %c0_50 = arith.constant 0 : index
    %c0_51 = arith.constant 0 : index
    %153 = vector.load %arg10[%c0_50, %c0_51] : memref<32x32xbf16, #tpu.memory_space<vmem>>, vector<32x32xbf16>
    %154 = vector.extract_strided_slice %0 {offsets = [3, 0], sizes = [1, 32], strides = [1, 1]} : vector<14x64xf32> to vector<1x32xf32>
    %155 = vector.extract_strided_slice %0 {offsets = [4, 0], sizes = [1, 64], strides = [1, 1]} : vector<14x64xf32> to vector<1x64xf32>
    %156 = vector.extract_strided_slice %0 {offsets = [5, 0], sizes = [1, 32], strides = [1, 1]} : vector<14x64xf32> to vector<1x32xf32>
    %157 = arith.truncf %148 : vector<8x32xf32> to vector<8x32xbf16>
    %158 = arith.truncf %150 : vector<8x32xf32> to vector<8x32xbf16>
    %cst_52 = arith.constant dense<0.000000e+00> : vector<8x32xf32>
    %159 = tpu.matmul %157, %151, %cst_52 {dimension_numbers = #tpu.dot_dimension_numbers<[1], [0], [0], [1], [0, 0, 1, 1], [], []>} : vector<8x32xbf16>, vector<32x32xbf16>, vector<8x32xf32> -> vector<8x32xf32>
    %160 = vector.broadcast %154 : vector<1x32xf32> to vector<8x32xf32>
    %161 = arith.addf %159, %160 : vector<8x32xf32>
    %cst_53 = arith.constant dense<0.000000e+00> : vector<8x64xf32>
    %162 = tpu.matmul %158, %152, %cst_53 {dimension_numbers = #tpu.dot_dimension_numbers<[1], [0], [0], [1], [0, 0, 1, 1], [], []>} : vector<8x32xbf16>, vector<32x64xbf16>, vector<8x64xf32> -> vector<8x64xf32>
    %163 = vector.broadcast %155 : vector<1x64xf32> to vector<8x64xf32>
    %164 = arith.addf %162, %163 : vector<8x64xf32>
    %165 = vector.extract_strided_slice %164 {offsets = [0, 0], sizes = [8, 32], strides = [1, 1]} : vector<8x64xf32> to vector<8x32xf32>
    %166 = vector.extract_strided_slice %164 {offsets = [0, 32], sizes = [8, 32], strides = [1, 1]} : vector<8x64xf32> to vector<8x32xf32>
    %cst_54 = arith.constant 0.000000e+00 : f32
    %167 = vector.broadcast %cst_54 : f32 to vector<8x32xf32>
    %168 = vector.extract_strided_slice %161 {offsets = [0, 0], sizes = [8, 8], strides = [1, 1]} : vector<8x32xf32> to vector<8x8xf32>
    %169 = arith.truncf %168 : vector<8x8xf32> to vector<8x8xbf16>
    %170 = vector.extract_strided_slice %165 {offsets = [0, 0], sizes = [8, 8], strides = [1, 1]} : vector<8x32xf32> to vector<8x8xf32>
    %171 = arith.truncf %170 : vector<8x8xf32> to vector<8x8xbf16>
    %172 = vector.extract_strided_slice %166 {offsets = [0, 0], sizes = [8, 8], strides = [1, 1]} : vector<8x32xf32> to vector<8x8xf32>
    %173 = arith.truncf %172 : vector<8x8xf32> to vector<8x8xbf16>
    %174 = tpu.transpose %171, [1, 0] : vector<8x8xbf16> -> vector<8x8xbf16>
    %cst_55 = arith.constant dense<0.000000e+00> : vector<8x8xf32>
    %175 = tpu.matmul %169, %174, %cst_55 {dimension_numbers = #tpu.dot_dimension_numbers<[1], [0], [0], [1], [0, 0, 1, 1], [], []>} : vector<8x8xbf16>, vector<8x8xbf16>, vector<8x8xf32> -> vector<8x8xf32>
    %cst_56 = arith.constant dense<0xFF800000> : vector<8xf32>
    %176 = vector.multi_reduction <maximumf>, %175, %cst_56 [1] : vector<8x8xf32> to vector<8xf32>
    %177 = vector.shape_cast %176 : vector<8xf32> to vector<8x1xf32>
    %178 = vector.broadcast %177 : vector<8x1xf32> to vector<8x8xf32>
    %179 = arith.subf %175, %178 : vector<8x8xf32>
    %180 = math.exp %179 : vector<8x8xf32>
    %cst_57 = arith.constant dense<0.000000e+00> : vector<8xf32>
    %181 = vector.multi_reduction <add>, %180, %cst_57 [1] : vector<8x8xf32> to vector<8xf32>
    %182 = vector.shape_cast %181 : vector<8xf32> to vector<8x1xf32>
    %183 = tpu.reciprocal %182 {approx = true} : vector<8x1xf32> -> vector<8x1xf32>
    %184 = vector.broadcast %183 : vector<8x1xf32> to vector<8x8xf32>
    %185 = arith.mulf %180, %184 : vector<8x8xf32>
    %186 = arith.truncf %185 : vector<8x8xf32> to vector<8x8xbf16>
    %cst_58 = arith.constant dense<0.000000e+00> : vector<8x8xf32>
    %187 = tpu.matmul %186, %173, %cst_58 {dimension_numbers = #tpu.dot_dimension_numbers<[1], [0], [0], [1], [0, 0, 1, 1], [], []>} : vector<8x8xbf16>, vector<8x8xbf16>, vector<8x8xf32> -> vector<8x8xf32>
    %188 = arith.truncf %187 : vector<8x8xf32> to vector<8x8xbf16>
    %189 = vector.extract_strided_slice %153 {offsets = [0, 0], sizes = [8, 32], strides = [1, 1]} : vector<32x32xbf16> to vector<8x32xbf16>
    %cst_59 = arith.constant dense<0.000000e+00> : vector<8x32xf32>
    %190 = tpu.matmul %188, %189, %cst_59 {dimension_numbers = #tpu.dot_dimension_numbers<[1], [0], [0], [1], [0, 0, 1, 1], [], []>} : vector<8x8xbf16>, vector<8x32xbf16>, vector<8x32xf32> -> vector<8x32xf32>
    %191 = arith.addf %167, %190 : vector<8x32xf32>
    %192 = vector.extract_strided_slice %161 {offsets = [0, 8], sizes = [8, 8], strides = [1, 1]} : vector<8x32xf32> to vector<8x8xf32>
    %193 = arith.truncf %192 : vector<8x8xf32> to vector<8x8xbf16>
    %194 = vector.extract_strided_slice %165 {offsets = [0, 8], sizes = [8, 8], strides = [1, 1]} : vector<8x32xf32> to vector<8x8xf32>
    %195 = arith.truncf %194 : vector<8x8xf32> to vector<8x8xbf16>
    %196 = vector.extract_strided_slice %166 {offsets = [0, 8], sizes = [8, 8], strides = [1, 1]} : vector<8x32xf32> to vector<8x8xf32>
    %197 = arith.truncf %196 : vector<8x8xf32> to vector<8x8xbf16>
    %198 = tpu.transpose %195, [1, 0] : vector<8x8xbf16> -> vector<8x8xbf16>
    %cst_60 = arith.constant dense<0.000000e+00> : vector<8x8xf32>
    %199 = tpu.matmul %193, %198, %cst_60 {dimension_numbers = #tpu.dot_dimension_numbers<[1], [0], [0], [1], [0, 0, 1, 1], [], []>} : vector<8x8xbf16>, vector<8x8xbf16>, vector<8x8xf32> -> vector<8x8xf32>
    %cst_61 = arith.constant dense<0xFF800000> : vector<8xf32>
    %200 = vector.multi_reduction <maximumf>, %199, %cst_61 [1] : vector<8x8xf32> to vector<8xf32>
    %201 = vector.shape_cast %200 : vector<8xf32> to vector<8x1xf32>
    %202 = vector.broadcast %201 : vector<8x1xf32> to vector<8x8xf32>
    %203 = arith.subf %199, %202 : vector<8x8xf32>
    %204 = math.exp %203 : vector<8x8xf32>
    %cst_62 = arith.constant dense<0.000000e+00> : vector<8xf32>
    %205 = vector.multi_reduction <add>, %204, %cst_62 [1] : vector<8x8xf32> to vector<8xf32>
    %206 = vector.shape_cast %205 : vector<8xf32> to vector<8x1xf32>
    %207 = tpu.reciprocal %206 {approx = true} : vector<8x1xf32> -> vector<8x1xf32>
    %208 = vector.broadcast %207 : vector<8x1xf32> to vector<8x8xf32>
    %209 = arith.mulf %204, %208 : vector<8x8xf32>
    %210 = arith.truncf %209 : vector<8x8xf32> to vector<8x8xbf16>
    %cst_63 = arith.constant dense<0.000000e+00> : vector<8x8xf32>
    %211 = tpu.matmul %210, %197, %cst_63 {dimension_numbers = #tpu.dot_dimension_numbers<[1], [0], [0], [1], [0, 0, 1, 1], [], []>} : vector<8x8xbf16>, vector<8x8xbf16>, vector<8x8xf32> -> vector<8x8xf32>
    %212 = arith.truncf %211 : vector<8x8xf32> to vector<8x8xbf16>
    %213 = vector.extract_strided_slice %153 {offsets = [8, 0], sizes = [8, 32], strides = [1, 1]} : vector<32x32xbf16> to vector<8x32xbf16>
    %cst_64 = arith.constant dense<0.000000e+00> : vector<8x32xf32>
    %214 = tpu.matmul %212, %213, %cst_64 {dimension_numbers = #tpu.dot_dimension_numbers<[1], [0], [0], [1], [0, 0, 1, 1], [], []>} : vector<8x8xbf16>, vector<8x32xbf16>, vector<8x32xf32> -> vector<8x32xf32>
    %215 = arith.addf %191, %214 : vector<8x32xf32>
    %216 = vector.extract_strided_slice %161 {offsets = [0, 16], sizes = [8, 8], strides = [1, 1]} : vector<8x32xf32> to vector<8x8xf32>
    %217 = arith.truncf %216 : vector<8x8xf32> to vector<8x8xbf16>
    %218 = vector.extract_strided_slice %165 {offsets = [0, 16], sizes = [8, 8], strides = [1, 1]} : vector<8x32xf32> to vector<8x8xf32>
    %219 = arith.truncf %218 : vector<8x8xf32> to vector<8x8xbf16>
    %220 = vector.extract_strided_slice %166 {offsets = [0, 16], sizes = [8, 8], strides = [1, 1]} : vector<8x32xf32> to vector<8x8xf32>
    %221 = arith.truncf %220 : vector<8x8xf32> to vector<8x8xbf16>
    %222 = tpu.transpose %219, [1, 0] : vector<8x8xbf16> -> vector<8x8xbf16>
    %cst_65 = arith.constant dense<0.000000e+00> : vector<8x8xf32>
    %223 = tpu.matmul %217, %222, %cst_65 {dimension_numbers = #tpu.dot_dimension_numbers<[1], [0], [0], [1], [0, 0, 1, 1], [], []>} : vector<8x8xbf16>, vector<8x8xbf16>, vector<8x8xf32> -> vector<8x8xf32>
    %cst_66 = arith.constant dense<0xFF800000> : vector<8xf32>
    %224 = vector.multi_reduction <maximumf>, %223, %cst_66 [1] : vector<8x8xf32> to vector<8xf32>
    %225 = vector.shape_cast %224 : vector<8xf32> to vector<8x1xf32>
    %226 = vector.broadcast %225 : vector<8x1xf32> to vector<8x8xf32>
    %227 = arith.subf %223, %226 : vector<8x8xf32>
    %228 = math.exp %227 : vector<8x8xf32>
    %cst_67 = arith.constant dense<0.000000e+00> : vector<8xf32>
    %229 = vector.multi_reduction <add>, %228, %cst_67 [1] : vector<8x8xf32> to vector<8xf32>
    %230 = vector.shape_cast %229 : vector<8xf32> to vector<8x1xf32>
    %231 = tpu.reciprocal %230 {approx = true} : vector<8x1xf32> -> vector<8x1xf32>
    %232 = vector.broadcast %231 : vector<8x1xf32> to vector<8x8xf32>
    %233 = arith.mulf %228, %232 : vector<8x8xf32>
    %234 = arith.truncf %233 : vector<8x8xf32> to vector<8x8xbf16>
    %cst_68 = arith.constant dense<0.000000e+00> : vector<8x8xf32>
    %235 = tpu.matmul %234, %221, %cst_68 {dimension_numbers = #tpu.dot_dimension_numbers<[1], [0], [0], [1], [0, 0, 1, 1], [], []>} : vector<8x8xbf16>, vector<8x8xbf16>, vector<8x8xf32> -> vector<8x8xf32>
    %236 = arith.truncf %235 : vector<8x8xf32> to vector<8x8xbf16>
    %237 = vector.extract_strided_slice %153 {offsets = [16, 0], sizes = [8, 32], strides = [1, 1]} : vector<32x32xbf16> to vector<8x32xbf16>
    %cst_69 = arith.constant dense<0.000000e+00> : vector<8x32xf32>
    %238 = tpu.matmul %236, %237, %cst_69 {dimension_numbers = #tpu.dot_dimension_numbers<[1], [0], [0], [1], [0, 0, 1, 1], [], []>} : vector<8x8xbf16>, vector<8x32xbf16>, vector<8x32xf32> -> vector<8x32xf32>
    %239 = arith.addf %215, %238 : vector<8x32xf32>
    %240 = vector.extract_strided_slice %161 {offsets = [0, 24], sizes = [8, 8], strides = [1, 1]} : vector<8x32xf32> to vector<8x8xf32>
    %241 = arith.truncf %240 : vector<8x8xf32> to vector<8x8xbf16>
    %242 = vector.extract_strided_slice %165 {offsets = [0, 24], sizes = [8, 8], strides = [1, 1]} : vector<8x32xf32> to vector<8x8xf32>
    %243 = arith.truncf %242 : vector<8x8xf32> to vector<8x8xbf16>
    %244 = vector.extract_strided_slice %166 {offsets = [0, 24], sizes = [8, 8], strides = [1, 1]} : vector<8x32xf32> to vector<8x8xf32>
    %245 = arith.truncf %244 : vector<8x8xf32> to vector<8x8xbf16>
    %246 = tpu.transpose %243, [1, 0] : vector<8x8xbf16> -> vector<8x8xbf16>
    %cst_70 = arith.constant dense<0.000000e+00> : vector<8x8xf32>
    %247 = tpu.matmul %241, %246, %cst_70 {dimension_numbers = #tpu.dot_dimension_numbers<[1], [0], [0], [1], [0, 0, 1, 1], [], []>} : vector<8x8xbf16>, vector<8x8xbf16>, vector<8x8xf32> -> vector<8x8xf32>
    %cst_71 = arith.constant dense<0xFF800000> : vector<8xf32>
    %248 = vector.multi_reduction <maximumf>, %247, %cst_71 [1] : vector<8x8xf32> to vector<8xf32>
    %249 = vector.shape_cast %248 : vector<8xf32> to vector<8x1xf32>
    %250 = vector.broadcast %249 : vector<8x1xf32> to vector<8x8xf32>
    %251 = arith.subf %247, %250 : vector<8x8xf32>
    %252 = math.exp %251 : vector<8x8xf32>
    %cst_72 = arith.constant dense<0.000000e+00> : vector<8xf32>
    %253 = vector.multi_reduction <add>, %252, %cst_72 [1] : vector<8x8xf32> to vector<8xf32>
    %254 = vector.shape_cast %253 : vector<8xf32> to vector<8x1xf32>
    %255 = tpu.reciprocal %254 {approx = true} : vector<8x1xf32> -> vector<8x1xf32>
    %256 = vector.broadcast %255 : vector<8x1xf32> to vector<8x8xf32>
    %257 = arith.mulf %252, %256 : vector<8x8xf32>
    %258 = arith.truncf %257 : vector<8x8xf32> to vector<8x8xbf16>
    %cst_73 = arith.constant dense<0.000000e+00> : vector<8x8xf32>
    %259 = tpu.matmul %258, %245, %cst_73 {dimension_numbers = #tpu.dot_dimension_numbers<[1], [0], [0], [1], [0, 0, 1, 1], [], []>} : vector<8x8xbf16>, vector<8x8xbf16>, vector<8x8xf32> -> vector<8x8xf32>
    %260 = arith.truncf %259 : vector<8x8xf32> to vector<8x8xbf16>
    %261 = vector.extract_strided_slice %153 {offsets = [24, 0], sizes = [8, 32], strides = [1, 1]} : vector<32x32xbf16> to vector<8x32xbf16>
    %cst_74 = arith.constant dense<0.000000e+00> : vector<8x32xf32>
    %262 = tpu.matmul %260, %261, %cst_74 {dimension_numbers = #tpu.dot_dimension_numbers<[1], [0], [0], [1], [0, 0, 1, 1], [], []>} : vector<8x8xbf16>, vector<8x32xbf16>, vector<8x32xf32> -> vector<8x32xf32>
    %263 = arith.addf %239, %262 : vector<8x32xf32>
    %264 = vector.broadcast %156 : vector<1x32xf32> to vector<8x32xf32>
    %265 = arith.addf %263, %264 : vector<8x32xf32>
    %266 = tpu.concatenate %185, %209, %233, %257 in 1 : vector<8x8xf32>, vector<8x8xf32>, vector<8x8xf32>, vector<8x8xf32> -> vector<8x32xf32>
    %c0_75 = arith.constant 0 : index
    %c0_76 = arith.constant 0 : index
    %c0_77 = arith.constant 0 : index
    %267 = vector.load %arg16[%c0_75, %c0_76, %c0_77] : memref<1x8x32xf32, #tpu.memory_space<vmem>>, vector<1x8x32xf32>
    %268 = vector.shape_cast %267 : vector<1x8x32xf32> to vector<8x32xf32>
    %269 = vector.shape_cast %266 : vector<8x32xf32> to vector<1x8x32xf32>
    tpu.vector_store %arg16[%c0_75, %c0_76, %c0_77], %269 {strides = array<i32>} : memref<1x8x32xf32, #tpu.memory_space<vmem>>, vector<1x8x32xf32>,
    %270 = arith.addf %265, %148 : vector<8x32xf32>
    %271 = vector.extract_strided_slice %0 {offsets = [10, 0], sizes = [1, 32], strides = [1, 1]} : vector<14x64xf32> to vector<1x32xf32>
    %272 = vector.extract_strided_slice %0 {offsets = [11, 0], sizes = [1, 32], strides = [1, 1]} : vector<14x64xf32> to vector<1x32xf32>
    %cst_78 = arith.constant dense<0.000000e+00> : vector<8xf32>
    %273 = vector.multi_reduction <add>, %270, %cst_78 [1] : vector<8x32xf32> to vector<8xf32>
    %274 = vector.shape_cast %273 : vector<8xf32> to vector<8x1xf32>
    %cst_79 = arith.constant 3.200000e+01 : f32
    %275 = vector.broadcast %cst_79 : f32 to vector<8x1xf32>
    %276 = arith.divf %274, %275 : vector<8x1xf32>
    %277 = vector.broadcast %276 : vector<8x1xf32> to vector<8x32xf32>
    %278 = arith.subf %270, %277 : vector<8x32xf32>
    %279 = arith.mulf %278, %278 : vector<8x32xf32>
    %cst_80 = arith.constant dense<0.000000e+00> : vector<8xf32>
    %280 = vector.multi_reduction <add>, %279, %cst_80 [1] : vector<8x32xf32> to vector<8xf32>
    %281 = vector.shape_cast %280 : vector<8xf32> to vector<8x1xf32>
    %cst_81 = arith.constant 3.200000e+01 : f32
    %282 = vector.broadcast %cst_81 : f32 to vector<8x1xf32>
    %283 = arith.divf %281, %282 : vector<8x1xf32>
    %284 = vector.broadcast %276 : vector<8x1xf32> to vector<8x32xf32>
    %285 = arith.subf %270, %284 : vector<8x32xf32>
    %cst_82 = arith.constant 9.99999974E-6 : f32
    %286 = vector.broadcast %cst_82 : f32 to vector<8x1xf32>
    %287 = arith.addf %283, %286 : vector<8x1xf32>
    %288 = math.rsqrt %287 : vector<8x1xf32>
    %289 = vector.broadcast %288 : vector<8x1xf32> to vector<8x32xf32>
    %290 = arith.mulf %285, %289 : vector<8x32xf32>
    %291 = vector.broadcast %271 : vector<1x32xf32> to vector<8x32xf32>
    %292 = arith.mulf %290, %291 : vector<8x32xf32>
    %293 = vector.broadcast %272 : vector<1x32xf32> to vector<8x32xf32>
    %294 = arith.addf %292, %293 : vector<8x32xf32>
    %295 = arith.truncf %294 : vector<8x32xf32> to vector<8x32xbf16>
    %c0_83 = arith.constant 0 : index
    %c0_84 = arith.constant 0 : index
    %296 = vector.load %arg11[%c0_83, %c0_84] : memref<32x64xbf16, #tpu.memory_space<vmem>>, vector<32x64xbf16>
    %cst_85 = arith.constant dense<0.000000e+00> : vector<8x64xf32>
    %297 = tpu.matmul %295, %296, %cst_85 {dimension_numbers = #tpu.dot_dimension_numbers<[1], [0], [0], [1], [0, 0, 1, 1], [], []>} : vector<8x32xbf16>, vector<32x64xbf16>, vector<8x64xf32> -> vector<8x64xf32>
    %298 = vector.extract_strided_slice %0 {offsets = [6, 0], sizes = [1, 64], strides = [1, 1]} : vector<14x64xf32> to vector<1x64xf32>
    %299 = vector.broadcast %298 : vector<1x64xf32> to vector<8x64xf32>
    %300 = arith.addf %297, %299 : vector<8x64xf32>
    %cst_86 = arith.constant 0.000000e+00 : f32
    %301 = vector.broadcast %cst_86 : f32 to vector<8x64xf32>
    %302 = arith.maximumf %300, %301 : vector<8x64xf32>
    %303 = arith.truncf %302 : vector<8x64xf32> to vector<8x64xbf16>
    %c0_87 = arith.constant 0 : index
    %c0_88 = arith.constant 0 : index
    %304 = vector.load %arg12[%c0_87, %c0_88] : memref<64x32xbf16, #tpu.memory_space<vmem>>, vector<64x32xbf16>
    %cst_89 = arith.constant dense<0.000000e+00> : vector<8x32xf32>
    %305 = tpu.matmul %303, %304, %cst_89 {dimension_numbers = #tpu.dot_dimension_numbers<[1], [0], [0], [1], [0, 0, 1, 1], [], []>} : vector<8x64xbf16>, vector<64x32xbf16>, vector<8x32xf32> -> vector<8x32xf32>
    %306 = vector.extract_strided_slice %0 {offsets = [7, 0], sizes = [1, 32], strides = [1, 1]} : vector<14x64xf32> to vector<1x32xf32>
    %307 = vector.broadcast %306 : vector<1x32xf32> to vector<8x32xf32>
    %308 = arith.addf %305, %307 : vector<8x32xf32>
    %309 = arith.addf %308, %294 : vector<8x32xf32>
    %310 = vector.extract_strided_slice %0 {offsets = [12, 0], sizes = [1, 32], strides = [1, 1]} : vector<14x64xf32> to vector<1x32xf32>
    %311 = vector.extract_strided_slice %0 {offsets = [13, 0], sizes = [1, 32], strides = [1, 1]} : vector<14x64xf32> to vector<1x32xf32>
    %cst_90 = arith.constant dense<0.000000e+00> : vector<8xf32>
    %312 = vector.multi_reduction <add>, %309, %cst_90 [1] : vector<8x32xf32> to vector<8xf32>
    %313 = vector.shape_cast %312 : vector<8xf32> to vector<8x1xf32>
    %cst_91 = arith.constant 3.200000e+01 : f32
    %314 = vector.broadcast %cst_91 : f32 to vector<8x1xf32>
    %315 = arith.divf %313, %314 : vector<8x1xf32>
    %316 = vector.broadcast %315 : vector<8x1xf32> to vector<8x32xf32>
    %317 = arith.subf %309, %316 : vector<8x32xf32>
    %318 = arith.mulf %317, %317 : vector<8x32xf32>
    %cst_92 = arith.constant dense<0.000000e+00> : vector<8xf32>
    %319 = vector.multi_reduction <add>, %318, %cst_92 [1] : vector<8x32xf32> to vector<8xf32>
    %320 = vector.shape_cast %319 : vector<8xf32> to vector<8x1xf32>
    %cst_93 = arith.constant 3.200000e+01 : f32
    %321 = vector.broadcast %cst_93 : f32 to vector<8x1xf32>
    %322 = arith.divf %320, %321 : vector<8x1xf32>
    %323 = vector.broadcast %315 : vector<8x1xf32> to vector<8x32xf32>
    %324 = arith.subf %309, %323 : vector<8x32xf32>
    %cst_94 = arith.constant 9.99999974E-6 : f32
    %325 = vector.broadcast %cst_94 : f32 to vector<8x1xf32>
    %326 = arith.addf %322, %325 : vector<8x1xf32>
    %327 = math.rsqrt %326 : vector<8x1xf32>
    %328 = vector.broadcast %327 : vector<8x1xf32> to vector<8x32xf32>
    %329 = arith.mulf %324, %328 : vector<8x32xf32>
    %330 = vector.broadcast %310 : vector<1x32xf32> to vector<8x32xf32>
    %331 = arith.mulf %329, %330 : vector<8x32xf32>
    %332 = vector.broadcast %311 : vector<1x32xf32> to vector<8x32xf32>
    %333 = arith.addf %331, %332 : vector<8x32xf32>
    %c0_95 = arith.constant 0 : index
    %c0_96 = arith.constant 0 : index
    %c0_97 = arith.constant 0 : index
    %334 = vector.load %arg14[%c0_95, %c0_96, %c0_97] : memref<1x8x32xf32, #tpu.memory_space<vmem>>, vector<1x8x32xf32>
    %335 = vector.shape_cast %334 : vector<1x8x32xf32> to vector<8x32xf32>
    %336 = vector.shape_cast %333 : vector<8x32xf32> to vector<1x8x32xf32>
    tpu.vector_store %arg14[%c0_95, %c0_96, %c0_97], %336 {strides = array<i32>} : memref<1x8x32xf32, #tpu.memory_space<vmem>>, vector<1x8x32xf32>,
    return
  }
  func.func @transform_0(%arg0: i32, %arg1: i32) -> (i32, i32, i32) {
    %c0_i32 = arith.constant 0 : i32
    %c0_i32_0 = arith.constant 0 : i32
    return %arg0, %arg1, %c0_i32 : i32, i32, i32
  }
  func.func @transform_1(%arg0: i32, %arg1: i32) -> (i32, i32, i32) {
    %c0_i32 = arith.constant 0 : i32
    %c0_i32_0 = arith.constant 0 : i32
    %c0_i32_1 = arith.constant 0 : i32
    return %arg0, %c0_i32, %c0_i32_0 : i32, i32, i32
  }
  func.func @transform_2(%arg0: i32, %arg1: i32) -> (i32, i32, i32) {
    %c0_i32 = arith.constant 0 : i32
    %c0_i32_0 = arith.constant 0 : i32
    %c0_i32_1 = arith.constant 0 : i32
    return %arg0, %c0_i32, %c0_i32_0 : i32, i32, i32
  }
  func.func @transform_3(%arg0: i32, %arg1: i32) -> (i32, i32) {
    %c0_i32 = arith.constant 0 : i32
    %c0_i32_0 = arith.constant 0 : i32
    %c0_i32_1 = arith.constant 0 : i32
    return %c0_i32, %c0_i32_0 : i32, i32
  }
  func.func @transform_4(%arg0: i32, %arg1: i32) -> (i32, i32) {
    %c0_i32 = arith.constant 0 : i32
    %c0_i32_0 = arith.constant 0 : i32
    %c0_i32_1 = arith.constant 0 : i32
    return %c0_i32, %c0_i32_0 : i32, i32
  }
  func.func @transform_5(%arg0: i32, %arg1: i32) -> (i32, i32) {
    %c0_i32 = arith.constant 0 : i32
    %c0_i32_0 = arith.constant 0 : i32
    %c0_i32_1 = arith.constant 0 : i32
    return %c0_i32, %c0_i32_0 : i32, i32
  }
  func.func @transform_6(%arg0: i32, %arg1: i32) -> (i32, i32) {
    %c0_i32 = arith.constant 0 : i32
    %c0_i32_0 = arith.constant 0 : i32
    %c0_i32_1 = arith.constant 0 : i32
    return %c0_i32, %c0_i32_0 : i32, i32
  }
  func.func @transform_7(%arg0: i32, %arg1: i32) -> (i32, i32) {
    %c0_i32 = arith.constant 0 : i32
    %c0_i32_0 = arith.constant 0 : i32
    %c0_i32_1 = arith.constant 0 : i32
    return %c0_i32, %c0_i32_0 : i32, i32
  }
  func.func @transform_8(%arg0: i32, %arg1: i32) -> (i32, i32) {
    %c0_i32 = arith.constant 0 : i32
    %c0_i32_0 = arith.constant 0 : i32
    %c0_i32_1 = arith.constant 0 : i32
    return %c0_i32, %c0_i32_0 : i32, i32
  }
  func.func @transform_9(%arg0: i32, %arg1: i32) -> (i32, i32) {
    %c0_i32 = arith.constant 0 : i32
    %c0_i32_0 = arith.constant 0 : i32
    %c0_i32_1 = arith.constant 0 : i32
    return %c0_i32, %c0_i32_0 : i32, i32
  }
  func.func @transform_10(%arg0: i32, %arg1: i32) -> (i32, i32) {
    %c0_i32 = arith.constant 0 : i32
    %c0_i32_0 = arith.constant 0 : i32
    %c0_i32_1 = arith.constant 0 : i32
    return %c0_i32, %c0_i32_0 : i32, i32
  }
  func.func @transform_11(%arg0: i32, %arg1: i32) -> (i32, i32) {
    %c0_i32 = arith.constant 0 : i32
    %c0_i32_0 = arith.constant 0 : i32
    %c0_i32_1 = arith.constant 0 : i32
    return %c0_i32, %c0_i32_0 : i32, i32
  }
  func.func @transform_12(%arg0: i32, %arg1: i32) -> (i32, i32, i32) {
    %c0_i32 = arith.constant 0 : i32
    %c0_i32_0 = arith.constant 0 : i32
    return %arg0, %arg1, %c0_i32 : i32, i32, i32
  }
  func.func @transform_13(%arg0: i32, %arg1: i32) -> (i32, i32, i32) {
    %c0_i32 = arith.constant 0 : i32
    %c0_i32_0 = arith.constant 0 : i32
    return %arg0, %arg1, %c0_i32 : i32, i32, i32
  }
  func.func @transform_14(%arg0: i32, %arg1: i32) -> (i32, i32, i32) {
    %c0_i32 = arith.constant 0 : i32
    %c0_i32_0 = arith.constant 0 : i32
    return %arg0, %arg1, %c0_i32 : i32, i32, i32
  }
}

module attributes {stable_mosaic.version = 11 : i64} {
  func.func @_text_encoder_layer_kernel(%arg0: i32, %arg1: i32, %arg2: memref<1x8x32xf32, #tpu.memory_space<vmem>>, %arg3: memref<1x8x32xf32, #tpu.memory_space<vmem>>, %arg4: memref<1x8x32xf32, #tpu.memory_space<vmem>>, %arg5: memref<32x32xbf16, #tpu.memory_space<vmem>>, %arg6: memref<32x64xbf16, #tpu.memory_space<vmem>>, %arg7: memref<32x32xbf16, #tpu.memory_space<vmem>>, %arg8: memref<32x32xbf16, #tpu.memory_space<vmem>>, %arg9: memref<32x64xbf16, #tpu.memory_space<vmem>>, %arg10: memref<32x32xbf16, #tpu.memory_space<vmem>>, %arg11: memref<32x64xbf16, #tpu.memory_space<vmem>>, %arg12: memref<64x32xbf16, #tpu.memory_space<vmem>>, %arg13: memref<14x64xf32, #tpu.memory_space<vmem>>, %arg14: memref<1x8x32xf32, #tpu.memory_space<vmem>>, %arg15: memref<1x8x32xf32, #tpu.memory_space<vmem>>, %arg16: memref<1x8x32xf32, #tpu.memory_space<vmem>>) attributes {dimension_semantics = [#tpu.dimension_semantics<parallel>, #tpu.dimension_semantics<parallel>], iteration_bounds = array<i64: 2, 1>, scalar_prefetch = 0 : i64, scratch_operands = 0 : i64, tpu.core_type = #tpu.core_type<tc>, window_params = [{transform_indices = @transform_0, window_bounds = array<i64: 1, 8, 32>}, {transform_indices = @transform_1, window_bounds = array<i64: 1, 8, 32>}, {transform_indices = @transform_2, window_bounds = array<i64: 1, 8, 32>}, {pipeline_mode = #tpu.pipeline_mode<synchronous>, transform_indices = @transform_3, window_bounds = array<i64: 32, 32>}, {pipeline_mode = #tpu.pipeline_mode<synchronous>, transform_indices = @transform_4, window_bounds = array<i64: 32, 64>}, {pipeline_mode = #tpu.pipeline_mode<synchronous>, transform_indices = @transform_5, window_bounds = array<i64: 32, 32>}, {pipeline_mode = #tpu.pipeline_mode<synchronous>, transform_indices = @transform_6, window_bounds = array<i64: 32, 32>}, {pipeline_mode = #tpu.pipeline_mode<synchronous>, transform_indices = @transform_7, window_bounds = array<i64: 32, 64>}, {pipeline_mode = #tpu.pipeline_mode<synchronous>, transform_indices = @transform_8, window_bounds = array<i64: 32, 32>}, {pipeline_mode = #tpu.pipeline_mode<synchronous>, transform_indices = @transform_9, window_bounds = array<i64: 32, 64>}, {pipeline_mode = #tpu.pipeline_mode<synchronous>, transform_indices = @transform_10, window_bounds = array<i64: 64, 32>}, {pipeline_mode = #tpu.pipeline_mode<synchronous>, transform_indices = @transform_11, window_bounds = array<i64: 14, 64>}, {transform_indices = @transform_12, window_bounds = array<i64: 1, 8, 32>}, {transform_indices = @transform_13, window_bounds = array<i64: 1, 8, 32>}, {transform_indices = @transform_14, window_bounds = array<i64: 1, 8, 32>}]} {
    %c0 = arith.constant 0 : index
    %c0_0 = arith.constant 0 : index
    %0 = vector.load %arg13[%c0, %c0_0] : memref<14x64xf32, #tpu.memory_space<vmem>>, vector<14x64xf32>
    %c0_1 = arith.constant 0 : index
    %c0_2 = arith.constant 0 : index
    %c0_3 = arith.constant 0 : index
    %1 = vector.load %arg2[%c0_1, %c0_2, %c0_3] : memref<1x8x32xf32, #tpu.memory_space<vmem>>, vector<1x8x32xf32>
    %2 = vector.shape_cast %1 : vector<1x8x32xf32> to vector<8x32xf32>
    %c0_4 = arith.constant 0 : index
    %c0_5 = arith.constant 0 : index
    %c0_6 = arith.constant 0 : index
    %3 = vector.load %arg3[%c0_4, %c0_5, %c0_6] : memref<1x8x32xf32, #tpu.memory_space<vmem>>, vector<1x8x32xf32>
    %4 = vector.shape_cast %3 : vector<1x8x32xf32> to vector<8x32xf32>
    %c0_7 = arith.constant 0 : index
    %c0_8 = arith.constant 0 : index
    %5 = vector.load %arg5[%c0_7, %c0_8] : memref<32x32xbf16, #tpu.memory_space<vmem>>, vector<32x32xbf16>
    %c0_9 = arith.constant 0 : index
    %c0_10 = arith.constant 0 : index
    %6 = vector.load %arg6[%c0_9, %c0_10] : memref<32x64xbf16, #tpu.memory_space<vmem>>, vector<32x64xbf16>
    %c0_11 = arith.constant 0 : index
    %c0_12 = arith.constant 0 : index
    %7 = vector.load %arg7[%c0_11, %c0_12] : memref<32x32xbf16, #tpu.memory_space<vmem>>, vector<32x32xbf16>
    %8 = vector.extract_strided_slice %0 {offsets = [0, 0], sizes = [1, 32], strides = [1, 1]} : vector<14x64xf32> to vector<1x32xf32>
    %9 = vector.extract_strided_slice %0 {offsets = [1, 0], sizes = [1, 64], strides = [1, 1]} : vector<14x64xf32> to vector<1x64xf32>
    %10 = vector.extract_strided_slice %0 {offsets = [2, 0], sizes = [1, 32], strides = [1, 1]} : vector<14x64xf32> to vector<1x32xf32>
    %11 = arith.truncf %2 : vector<8x32xf32> to vector<8x32xbf16>
    %12 = arith.truncf %4 : vector<8x32xf32> to vector<8x32xbf16>
    %cst = arith.constant dense<0.000000e+00> : vector<8x32xf32>
    %13 = tpu.matmul %11, %5, %cst {dimension_numbers = #tpu.dot_dimension_numbers<[1], [0], [0], [1], [0, 0, 1, 1], [], []>} : vector<8x32xbf16>, vector<32x32xbf16>, vector<8x32xf32> -> vector<8x32xf32>
    %14 = vector.broadcast %8 : vector<1x32xf32> to vector<8x32xf32>
    %15 = arith.addf %13, %14 : vector<8x32xf32>
    %cst_13 = arith.constant dense<0.000000e+00> : vector<8x64xf32>
    %16 = tpu.matmul %12, %6, %cst_13 {dimension_numbers = #tpu.dot_dimension_numbers<[1], [0], [0], [1], [0, 0, 1, 1], [], []>} : vector<8x32xbf16>, vector<32x64xbf16>, vector<8x64xf32> -> vector<8x64xf32>
    %17 = vector.broadcast %9 : vector<1x64xf32> to vector<8x64xf32>
    %18 = arith.addf %16, %17 : vector<8x64xf32>
    %19 = vector.extract_strided_slice %18 {offsets = [0, 0], sizes = [8, 32], strides = [1, 1]} : vector<8x64xf32> to vector<8x32xf32>
    %20 = vector.extract_strided_slice %18 {offsets = [0, 32], sizes = [8, 32], strides = [1, 1]} : vector<8x64xf32> to vector<8x32xf32>
    %cst_14 = arith.constant 0.000000e+00 : f32
    %21 = vector.broadcast %cst_14 : f32 to vector<8x32xf32>
    %22 = vector.extract_strided_slice %15 {offsets = [0, 0], sizes = [8, 8], strides = [1, 1]} : vector<8x32xf32> to vector<8x8xf32>
    %23 = arith.truncf %22 : vector<8x8xf32> to vector<8x8xbf16>
    %24 = vector.extract_strided_slice %19 {offsets = [0, 0], sizes = [8, 8], strides = [1, 1]} : vector<8x32xf32> to vector<8x8xf32>
    %25 = arith.truncf %24 : vector<8x8xf32> to vector<8x8xbf16>
    %26 = vector.extract_strided_slice %20 {offsets = [0, 0], sizes = [8, 8], strides = [1, 1]} : vector<8x32xf32> to vector<8x8xf32>
    %27 = arith.truncf %26 : vector<8x8xf32> to vector<8x8xbf16>
    %28 = tpu.transpose %25, [1, 0] : vector<8x8xbf16> -> vector<8x8xbf16>
    %cst_15 = arith.constant dense<0.000000e+00> : vector<8x8xf32>
    %29 = tpu.matmul %23, %28, %cst_15 {dimension_numbers = #tpu.dot_dimension_numbers<[1], [0], [0], [1], [0, 0, 1, 1], [], []>} : vector<8x8xbf16>, vector<8x8xbf16>, vector<8x8xf32> -> vector<8x8xf32>
    %cst_16 = arith.constant dense<0xFF800000> : vector<8xf32>
    %30 = vector.multi_reduction <maximumf>, %29, %cst_16 [1] : vector<8x8xf32> to vector<8xf32>
    %31 = vector.shape_cast %30 : vector<8xf32> to vector<8x1xf32>
    %32 = vector.broadcast %31 : vector<8x1xf32> to vector<8x8xf32>
    %33 = arith.subf %29, %32 : vector<8x8xf32>
    %34 = math.exp %33 : vector<8x8xf32>
    %cst_17 = arith.constant dense<0.000000e+00> : vector<8xf32>
    %35 = vector.multi_reduction <add>, %34, %cst_17 [1] : vector<8x8xf32> to vector<8xf32>
    %36 = vector.shape_cast %35 : vector<8xf32> to vector<8x1xf32>
    %37 = tpu.reciprocal %36 {approx = true} : vector<8x1xf32> -> vector<8x1xf32>
    %38 = vector.broadcast %37 : vector<8x1xf32> to vector<8x8xf32>
    %39 = arith.mulf %34, %38 : vector<8x8xf32>
    %40 = arith.truncf %39 : vector<8x8xf32> to vector<8x8xbf16>
    %cst_18 = arith.constant dense<0.000000e+00> : vector<8x8xf32>
    %41 = tpu.matmul %40, %27, %cst_18 {dimension_numbers = #tpu.dot_dimension_numbers<[1], [0], [0], [1], [0, 0, 1, 1], [], []>} : vector<8x8xbf16>, vector<8x8xbf16>, vector<8x8xf32> -> vector<8x8xf32>
    %42 = arith.truncf %41 : vector<8x8xf32> to vector<8x8xbf16>
    %43 = vector.extract_strided_slice %7 {offsets = [0, 0], sizes = [8, 32], strides = [1, 1]} : vector<32x32xbf16> to vector<8x32xbf16>
    %cst_19 = arith.constant dense<0.000000e+00> : vector<8x32xf32>
    %44 = tpu.matmul %42, %43, %cst_19 {dimension_numbers = #tpu.dot_dimension_numbers<[1], [0], [0], [1], [0, 0, 1, 1], [], []>} : vector<8x8xbf16>, vector<8x32xbf16>, vector<8x32xf32> -> vector<8x32xf32>
    %45 = arith.addf %21, %44 : vector<8x32xf32>
    %46 = vector.extract_strided_slice %15 {offsets = [0, 8], sizes = [8, 8], strides = [1, 1]} : vector<8x32xf32> to vector<8x8xf32>
    %47 = arith.truncf %46 : vector<8x8xf32> to vector<8x8xbf16>
    %48 = vector.extract_strided_slice %19 {offsets = [0, 8], sizes = [8, 8], strides = [1, 1]} : vector<8x32xf32> to vector<8x8xf32>
    %49 = arith.truncf %48 : vector<8x8xf32> to vector<8x8xbf16>
    %50 = vector.extract_strided_slice %20 {offsets = [0, 8], sizes = [8, 8], strides = [1, 1]} : vector<8x32xf32> to vector<8x8xf32>
    %51 = arith.truncf %50 : vector<8x8xf32> to vector<8x8xbf16>
    %52 = tpu.transpose %49, [1, 0] : vector<8x8xbf16> -> vector<8x8xbf16>
    %cst_20 = arith.constant dense<0.000000e+00> : vector<8x8xf32>
    %53 = tpu.matmul %47, %52, %cst_20 {dimension_numbers = #tpu.dot_dimension_numbers<[1], [0], [0], [1], [0, 0, 1, 1], [], []>} : vector<8x8xbf16>, vector<8x8xbf16>, vector<8x8xf32> -> vector<8x8xf32>
    %cst_21 = arith.constant dense<0xFF800000> : vector<8xf32>
    %54 = vector.multi_reduction <maximumf>, %53, %cst_21 [1] : vector<8x8xf32> to vector<8xf32>
    %55 = vector.shape_cast %54 : vector<8xf32> to vector<8x1xf32>
    %56 = vector.broadcast %55 : vector<8x1xf32> to vector<8x8xf32>
    %57 = arith.subf %53, %56 : vector<8x8xf32>
    %58 = math.exp %57 : vector<8x8xf32>
    %cst_22 = arith.constant dense<0.000000e+00> : vector<8xf32>
    %59 = vector.multi_reduction <add>, %58, %cst_22 [1] : vector<8x8xf32> to vector<8xf32>
    %60 = vector.shape_cast %59 : vector<8xf32> to vector<8x1xf32>
    %61 = tpu.reciprocal %60 {approx = true} : vector<8x1xf32> -> vector<8x1xf32>
    %62 = vector.broadcast %61 : vector<8x1xf32> to vector<8x8xf32>
    %63 = arith.mulf %58, %62 : vector<8x8xf32>
    %64 = arith.truncf %63 : vector<8x8xf32> to vector<8x8xbf16>
    %cst_23 = arith.constant dense<0.000000e+00> : vector<8x8xf32>
    %65 = tpu.matmul %64, %51, %cst_23 {dimension_numbers = #tpu.dot_dimension_numbers<[1], [0], [0], [1], [0, 0, 1, 1], [], []>} : vector<8x8xbf16>, vector<8x8xbf16>, vector<8x8xf32> -> vector<8x8xf32>
    %66 = arith.truncf %65 : vector<8x8xf32> to vector<8x8xbf16>
    %67 = vector.extract_strided_slice %7 {offsets = [8, 0], sizes = [8, 32], strides = [1, 1]} : vector<32x32xbf16> to vector<8x32xbf16>
    %cst_24 = arith.constant dense<0.000000e+00> : vector<8x32xf32>
    %68 = tpu.matmul %66, %67, %cst_24 {dimension_numbers = #tpu.dot_dimension_numbers<[1], [0], [0], [1], [0, 0, 1, 1], [], []>} : vector<8x8xbf16>, vector<8x32xbf16>, vector<8x32xf32> -> vector<8x32xf32>
    %69 = arith.addf %45, %68 : vector<8x32xf32>
    %70 = vector.extract_strided_slice %15 {offsets = [0, 16], sizes = [8, 8], strides = [1, 1]} : vector<8x32xf32> to vector<8x8xf32>
    %71 = arith.truncf %70 : vector<8x8xf32> to vector<8x8xbf16>
    %72 = vector.extract_strided_slice %19 {offsets = [0, 16], sizes = [8, 8], strides = [1, 1]} : vector<8x32xf32> to vector<8x8xf32>
    %73 = arith.truncf %72 : vector<8x8xf32> to vector<8x8xbf16>
    %74 = vector.extract_strided_slice %20 {offsets = [0, 16], sizes = [8, 8], strides = [1, 1]} : vector<8x32xf32> to vector<8x8xf32>
    %75 = arith.truncf %74 : vector<8x8xf32> to vector<8x8xbf16>
    %76 = tpu.transpose %73, [1, 0] : vector<8x8xbf16> -> vector<8x8xbf16>
    %cst_25 = arith.constant dense<0.000000e+00> : vector<8x8xf32>
    %77 = tpu.matmul %71, %76, %cst_25 {dimension_numbers = #tpu.dot_dimension_numbers<[1], [0], [0], [1], [0, 0, 1, 1], [], []>} : vector<8x8xbf16>, vector<8x8xbf16>, vector<8x8xf32> -> vector<8x8xf32>
    %cst_26 = arith.constant dense<0xFF800000> : vector<8xf32>
    %78 = vector.multi_reduction <maximumf>, %77, %cst_26 [1] : vector<8x8xf32> to vector<8xf32>
    %79 = vector.shape_cast %78 : vector<8xf32> to vector<8x1xf32>
    %80 = vector.broadcast %79 : vector<8x1xf32> to vector<8x8xf32>
    %81 = arith.subf %77, %80 : vector<8x8xf32>
    %82 = math.exp %81 : vector<8x8xf32>
    %cst_27 = arith.constant dense<0.000000e+00> : vector<8xf32>
    %83 = vector.multi_reduction <add>, %82, %cst_27 [1] : vector<8x8xf32> to vector<8xf32>
    %84 = vector.shape_cast %83 : vector<8xf32> to vector<8x1xf32>
    %85 = tpu.reciprocal %84 {approx = true} : vector<8x1xf32> -> vector<8x1xf32>
    %86 = vector.broadcast %85 : vector<8x1xf32> to vector<8x8xf32>
    %87 = arith.mulf %82, %86 : vector<8x8xf32>
    %88 = arith.truncf %87 : vector<8x8xf32> to vector<8x8xbf16>
    %cst_28 = arith.constant dense<0.000000e+00> : vector<8x8xf32>
    %89 = tpu.matmul %88, %75, %cst_28 {dimension_numbers = #tpu.dot_dimension_numbers<[1], [0], [0], [1], [0, 0, 1, 1], [], []>} : vector<8x8xbf16>, vector<8x8xbf16>, vector<8x8xf32> -> vector<8x8xf32>
    %90 = arith.truncf %89 : vector<8x8xf32> to vector<8x8xbf16>
    %91 = vector.extract_strided_slice %7 {offsets = [16, 0], sizes = [8, 32], strides = [1, 1]} : vector<32x32xbf16> to vector<8x32xbf16>
    %cst_29 = arith.constant dense<0.000000e+00> : vector<8x32xf32>
    %92 = tpu.matmul %90, %91, %cst_29 {dimension_numbers = #tpu.dot_dimension_numbers<[1], [0], [0], [1], [0, 0, 1, 1], [], []>} : vector<8x8xbf16>, vector<8x32xbf16>, vector<8x32xf32> -> vector<8x32xf32>
    %93 = arith.addf %69, %92 : vector<8x32xf32>
    %94 = vector.extract_strided_slice %15 {offsets = [0, 24], sizes = [8, 8], strides = [1, 1]} : vector<8x32xf32> to vector<8x8xf32>
    %95 = arith.truncf %94 : vector<8x8xf32> to vector<8x8xbf16>
    %96 = vector.extract_strided_slice %19 {offsets = [0, 24], sizes = [8, 8], strides = [1, 1]} : vector<8x32xf32> to vector<8x8xf32>
    %97 = arith.truncf %96 : vector<8x8xf32> to vector<8x8xbf16>
    %98 = vector.extract_strided_slice %20 {offsets = [0, 24], sizes = [8, 8], strides = [1, 1]} : vector<8x32xf32> to vector<8x8xf32>
    %99 = arith.truncf %98 : vector<8x8xf32> to vector<8x8xbf16>
    %100 = tpu.transpose %97, [1, 0] : vector<8x8xbf16> -> vector<8x8xbf16>
    %cst_30 = arith.constant dense<0.000000e+00> : vector<8x8xf32>
    %101 = tpu.matmul %95, %100, %cst_30 {dimension_numbers = #tpu.dot_dimension_numbers<[1], [0], [0], [1], [0, 0, 1, 1], [], []>} : vector<8x8xbf16>, vector<8x8xbf16>, vector<8x8xf32> -> vector<8x8xf32>
    %cst_31 = arith.constant dense<0xFF800000> : vector<8xf32>
    %102 = vector.multi_reduction <maximumf>, %101, %cst_31 [1] : vector<8x8xf32> to vector<8xf32>
    %103 = vector.shape_cast %102 : vector<8xf32> to vector<8x1xf32>
    %104 = vector.broadcast %103 : vector<8x1xf32> to vector<8x8xf32>
    %105 = arith.subf %101, %104 : vector<8x8xf32>
    %106 = math.exp %105 : vector<8x8xf32>
    %cst_32 = arith.constant dense<0.000000e+00> : vector<8xf32>
    %107 = vector.multi_reduction <add>, %106, %cst_32 [1] : vector<8x8xf32> to vector<8xf32>
    %108 = vector.shape_cast %107 : vector<8xf32> to vector<8x1xf32>
    %109 = tpu.reciprocal %108 {approx = true} : vector<8x1xf32> -> vector<8x1xf32>
    %110 = vector.broadcast %109 : vector<8x1xf32> to vector<8x8xf32>
    %111 = arith.mulf %106, %110 : vector<8x8xf32>
    %112 = arith.truncf %111 : vector<8x8xf32> to vector<8x8xbf16>
    %cst_33 = arith.constant dense<0.000000e+00> : vector<8x8xf32>
    %113 = tpu.matmul %112, %99, %cst_33 {dimension_numbers = #tpu.dot_dimension_numbers<[1], [0], [0], [1], [0, 0, 1, 1], [], []>} : vector<8x8xbf16>, vector<8x8xbf16>, vector<8x8xf32> -> vector<8x8xf32>
    %114 = arith.truncf %113 : vector<8x8xf32> to vector<8x8xbf16>
    %115 = vector.extract_strided_slice %7 {offsets = [24, 0], sizes = [8, 32], strides = [1, 1]} : vector<32x32xbf16> to vector<8x32xbf16>
    %cst_34 = arith.constant dense<0.000000e+00> : vector<8x32xf32>
    %116 = tpu.matmul %114, %115, %cst_34 {dimension_numbers = #tpu.dot_dimension_numbers<[1], [0], [0], [1], [0, 0, 1, 1], [], []>} : vector<8x8xbf16>, vector<8x32xbf16>, vector<8x32xf32> -> vector<8x32xf32>
    %117 = arith.addf %93, %116 : vector<8x32xf32>
    %118 = vector.broadcast %10 : vector<1x32xf32> to vector<8x32xf32>
    %119 = arith.addf %117, %118 : vector<8x32xf32>
    %120 = tpu.concatenate %39, %63, %87, %111 in 1 : vector<8x8xf32>, vector<8x8xf32>, vector<8x8xf32>, vector<8x8xf32> -> vector<8x32xf32>
    %c0_35 = arith.constant 0 : index
    %c0_36 = arith.constant 0 : index
    %c0_37 = arith.constant 0 : index
    %121 = vector.load %arg15[%c0_35, %c0_36, %c0_37] : memref<1x8x32xf32, #tpu.memory_space<vmem>>, vector<1x8x32xf32>
    %122 = vector.shape_cast %121 : vector<1x8x32xf32> to vector<8x32xf32>
    %123 = vector.shape_cast %120 : vector<8x32xf32> to vector<1x8x32xf32>
    tpu.vector_store %arg15[%c0_35, %c0_36, %c0_37], %123 {strides = array<i32>} : memref<1x8x32xf32, #tpu.memory_space<vmem>>, vector<1x8x32xf32>,
    %124 = arith.addf %119, %2 : vector<8x32xf32>
    %125 = vector.extract_strided_slice %0 {offsets = [8, 0], sizes = [1, 32], strides = [1, 1]} : vector<14x64xf32> to vector<1x32xf32>
    %126 = vector.extract_strided_slice %0 {offsets = [9, 0], sizes = [1, 32], strides = [1, 1]} : vector<14x64xf32> to vector<1x32xf32>
    %cst_38 = arith.constant dense<0.000000e+00> : vector<8xf32>
    %127 = vector.multi_reduction <add>, %124, %cst_38 [1] : vector<8x32xf32> to vector<8xf32>
    %128 = vector.shape_cast %127 : vector<8xf32> to vector<8x1xf32>
    %cst_39 = arith.constant 3.200000e+01 : f32
    %129 = vector.broadcast %cst_39 : f32 to vector<8x1xf32>
    %130 = arith.divf %128, %129 : vector<8x1xf32>
    %131 = vector.broadcast %130 : vector<8x1xf32> to vector<8x32xf32>
    %132 = arith.subf %124, %131 : vector<8x32xf32>
    %133 = arith.mulf %132, %132 : vector<8x32xf32>
    %cst_40 = arith.constant dense<0.000000e+00> : vector<8xf32>
    %134 = vector.multi_reduction <add>, %133, %cst_40 [1] : vector<8x32xf32> to vector<8xf32>
    %135 = vector.shape_cast %134 : vector<8xf32> to vector<8x1xf32>
    %cst_41 = arith.constant 3.200000e+01 : f32
    %136 = vector.broadcast %cst_41 : f32 to vector<8x1xf32>
    %137 = arith.divf %135, %136 : vector<8x1xf32>
    %138 = vector.broadcast %130 : vector<8x1xf32> to vector<8x32xf32>
    %139 = arith.subf %124, %138 : vector<8x32xf32>
    %cst_42 = arith.constant 9.99999974E-6 : f32
    %140 = vector.broadcast %cst_42 : f32 to vector<8x1xf32>
    %141 = arith.addf %137, %140 : vector<8x1xf32>
    %142 = math.rsqrt %141 : vector<8x1xf32>
    %143 = vector.broadcast %142 : vector<8x1xf32> to vector<8x32xf32>
    %144 = arith.mulf %139, %143 : vector<8x32xf32>
    %145 = vector.broadcast %125 : vector<1x32xf32> to vector<8x32xf32>
    %146 = arith.mulf %144, %145 : vector<8x32xf32>
    %147 = vector.broadcast %126 : vector<1x32xf32> to vector<8x32xf32>
    %148 = arith.addf %146, %147 : vector<8x32xf32>
    %c0_43 = arith.constant 0 : index
    %c0_44 = arith.constant 0 : index
    %c0_45 = arith.constant 0 : index
    %149 = vector.load %arg4[%c0_43, %c0_44, %c0_45] : memref<1x8x32xf32, #tpu.memory_space<vmem>>, vector<1x8x32xf32>
    %150 = vector.shape_cast %149 : vector<1x8x32xf32> to vector<8x32xf32>
    %c0_46 = arith.constant 0 : index
    %c0_47 = arith.constant 0 : index
    %151 = vector.load %arg8[%c0_46, %c0_47] : memref<32x32xbf16, #tpu.memory_space<vmem>>, vector<32x32xbf16>
    %c0_48 = arith.constant 0 : index
    %c0_49 = arith.constant 0 : index
    %152 = vector.load %arg9[%c0_48, %c0_49] : memref<32x64xbf16, #tpu.memory_space<vmem>>, vector<32x64xbf16>
    %c0_50 = arith.constant 0 : index
    %c0_51 = arith.constant 0 : index
    %153 = vector.load %arg10[%c0_50, %c0_51] : memref<32x32xbf16, #tpu.memory_space<vmem>>, vector<32x32xbf16>
    %154 = vector.extract_strided_slice %0 {offsets = [3, 0], sizes = [1, 32], strides = [1, 1]} : vector<14x64xf32> to vector<1x32xf32>
    %155 = vector.extract_strided_slice %0 {offsets = [4, 0], sizes = [1, 64], strides = [1, 1]} : vector<14x64xf32> to vector<1x64xf32>
    %156 = vector.extract_strided_slice %0 {offsets = [5, 0], sizes = [1, 32], strides = [1, 1]} : vector<14x64xf32> to vector<1x32xf32>
    %157 = arith.truncf %148 : vector<8x32xf32> to vector<8x32xbf16>
    %158 = arith.truncf %150 : vector<8x32xf32> to vector<8x32xbf16>
    %cst_52 = arith.constant dense<0.000000e+00> : vector<8x32xf32>
    %159 = tpu.matmul %157, %151, %cst_52 {dimension_numbers = #tpu.dot_dimension_numbers<[1], [0], [0], [1], [0, 0, 1, 1], [], []>} : vector<8x32xbf16>, vector<32x32xbf16>, vector<8x32xf32> -> vector<8x32xf32>
    %160 = vector.broadcast %154 : vector<1x32xf32> to vector<8x32xf32>
    %161 = arith.addf %159, %160 : vector<8x32xf32>
    %cst_53 = arith.constant dense<0.000000e+00> : vector<8x64xf32>
    %162 = tpu.matmul %158, %152, %cst_53 {dimension_numbers = #tpu.dot_dimension_numbers<[1], [0], [0], [1], [0, 0, 1, 1], [], []>} : vector<8x32xbf16>, vector<32x64xbf16>, vector<8x64xf32> -> vector<8x64xf32>
    %163 = vector.broadcast %155 : vector<1x64xf32> to vector<8x64xf32>
    %164 = arith.addf %162, %163 : vector<8x64xf32>
    %165 = vector.extract_strided_slice %164 {offsets = [0, 0], sizes = [8, 32], strides = [1, 1]} : vector<8x64xf32> to vector<8x32xf32>
    %166 = vector.extract_strided_slice %164 {offsets = [0, 32], sizes = [8, 32], strides = [1, 1]} : vector<8x64xf32> to vector<8x32xf32>
    %cst_54 = arith.constant 0.000000e+00 : f32
    %167 = vector.broadcast %cst_54 : f32 to vector<8x32xf32>
    %168 = vector.extract_strided_slice %161 {offsets = [0, 0], sizes = [8, 8], strides = [1, 1]} : vector<8x32xf32> to vector<8x8xf32>
    %169 = arith.truncf %168 : vector<8x8xf32> to vector<8x8xbf16>
    %170 = vector.extract_strided_slice %165 {offsets = [0, 0], sizes = [8, 8], strides = [1, 1]} : vector<8x32xf32> to vector<8x8xf32>
    %171 = arith.truncf %170 : vector<8x8xf32> to vector<8x8xbf16>
    %172 = vector.extract_strided_slice %166 {offsets = [0, 0], sizes = [8, 8], strides = [1, 1]} : vector<8x32xf32> to vector<8x8xf32>
    %173 = arith.truncf %172 : vector<8x8xf32> to vector<8x8xbf16>
    %174 = tpu.transpose %171, [1, 0] : vector<8x8xbf16> -> vector<8x8xbf16>
    %cst_55 = arith.constant dense<0.000000e+00> : vector<8x8xf32>
    %175 = tpu.matmul %169, %174, %cst_55 {dimension_numbers = #tpu.dot_dimension_numbers<[1], [0], [0], [1], [0, 0, 1, 1], [], []>} : vector<8x8xbf16>, vector<8x8xbf16>, vector<8x8xf32> -> vector<8x8xf32>
    %cst_56 = arith.constant dense<0xFF800000> : vector<8xf32>
    %176 = vector.multi_reduction <maximumf>, %175, %cst_56 [1] : vector<8x8xf32> to vector<8xf32>
    %177 = vector.shape_cast %176 : vector<8xf32> to vector<8x1xf32>
    %178 = vector.broadcast %177 : vector<8x1xf32> to vector<8x8xf32>
    %179 = arith.subf %175, %178 : vector<8x8xf32>
    %180 = math.exp %179 : vector<8x8xf32>
    %cst_57 = arith.constant dense<0.000000e+00> : vector<8xf32>
    %181 = vector.multi_reduction <add>, %180, %cst_57 [1] : vector<8x8xf32> to vector<8xf32>
    %182 = vector.shape_cast %181 : vector<8xf32> to vector<8x1xf32>
    %183 = tpu.reciprocal %182 {approx = true} : vector<8x1xf32> -> vector<8x1xf32>
    %184 = vector.broadcast %183 : vector<8x1xf32> to vector<8x8xf32>
    %185 = arith.mulf %180, %184 : vector<8x8xf32>
    %186 = arith.truncf %185 : vector<8x8xf32> to vector<8x8xbf16>
    %cst_58 = arith.constant dense<0.000000e+00> : vector<8x8xf32>
    %187 = tpu.matmul %186, %173, %cst_58 {dimension_numbers = #tpu.dot_dimension_numbers<[1], [0], [0], [1], [0, 0, 1, 1], [], []>} : vector<8x8xbf16>, vector<8x8xbf16>, vector<8x8xf32> -> vector<8x8xf32>
    %188 = arith.truncf %187 : vector<8x8xf32> to vector<8x8xbf16>
    %189 = vector.extract_strided_slice %153 {offsets = [0, 0], sizes = [8, 32], strides = [1, 1]} : vector<32x32xbf16> to vector<8x32xbf16>
    %cst_59 = arith.constant dense<0.000000e+00> : vector<8x32xf32>
    %190 = tpu.matmul %188, %189, %cst_59 {dimension_numbers = #tpu.dot_dimension_numbers<[1], [0], [0], [1], [0, 0, 1, 1], [], []>} : vector<8x8xbf16>, vector<8x32xbf16>, vector<8x32xf32> -> vector<8x32xf32>
    %191 = arith.addf %167, %190 : vector<8x32xf32>
    %192 = vector.extract_strided_slice %161 {offsets = [0, 8], sizes = [8, 8], strides = [1, 1]} : vector<8x32xf32> to vector<8x8xf32>
    %193 = arith.truncf %192 : vector<8x8xf32> to vector<8x8xbf16>
    %194 = vector.extract_strided_slice %165 {offsets = [0, 8], sizes = [8, 8], strides = [1, 1]} : vector<8x32xf32> to vector<8x8xf32>
    %195 = arith.truncf %194 : vector<8x8xf32> to vector<8x8xbf16>
    %196 = vector.extract_strided_slice %166 {offsets = [0, 8], sizes = [8, 8], strides = [1, 1]} : vector<8x32xf32> to vector<8x8xf32>
    %197 = arith.truncf %196 : vector<8x8xf32> to vector<8x8xbf16>
    %198 = tpu.transpose %195, [1, 0] : vector<8x8xbf16> -> vector<8x8xbf16>
    %cst_60 = arith.constant dense<0.000000e+00> : vector<8x8xf32>
    %199 = tpu.matmul %193, %198, %cst_60 {dimension_numbers = #tpu.dot_dimension_numbers<[1], [0], [0], [1], [0, 0, 1, 1], [], []>} : vector<8x8xbf16>, vector<8x8xbf16>, vector<8x8xf32> -> vector<8x8xf32>
    %cst_61 = arith.constant dense<0xFF800000> : vector<8xf32>
    %200 = vector.multi_reduction <maximumf>, %199, %cst_61 [1] : vector<8x8xf32> to vector<8xf32>
    %201 = vector.shape_cast %200 : vector<8xf32> to vector<8x1xf32>
    %202 = vector.broadcast %201 : vector<8x1xf32> to vector<8x8xf32>
    %203 = arith.subf %199, %202 : vector<8x8xf32>
    %204 = math.exp %203 : vector<8x8xf32>
    %cst_62 = arith.constant dense<0.000000e+00> : vector<8xf32>
    %205 = vector.multi_reduction <add>, %204, %cst_62 [1] : vector<8x8xf32> to vector<8xf32>
    %206 = vector.shape_cast %205 : vector<8xf32> to vector<8x1xf32>
    %207 = tpu.reciprocal %206 {approx = true} : vector<8x1xf32> -> vector<8x1xf32>
    %208 = vector.broadcast %207 : vector<8x1xf32> to vector<8x8xf32>
    %209 = arith.mulf %204, %208 : vector<8x8xf32>
    %210 = arith.truncf %209 : vector<8x8xf32> to vector<8x8xbf16>
    %cst_63 = arith.constant dense<0.000000e+00> : vector<8x8xf32>
    %211 = tpu.matmul %210, %197, %cst_63 {dimension_numbers = #tpu.dot_dimension_numbers<[1], [0], [0], [1], [0, 0, 1, 1], [], []>} : vector<8x8xbf16>, vector<8x8xbf16>, vector<8x8xf32> -> vector<8x8xf32>
    %212 = arith.truncf %211 : vector<8x8xf32> to vector<8x8xbf16>
    %213 = vector.extract_strided_slice %153 {offsets = [8, 0], sizes = [8, 32], strides = [1, 1]} : vector<32x32xbf16> to vector<8x32xbf16>
    %cst_64 = arith.constant dense<0.000000e+00> : vector<8x32xf32>
    %214 = tpu.matmul %212, %213, %cst_64 {dimension_numbers = #tpu.dot_dimension_numbers<[1], [0], [0], [1], [0, 0, 1, 1], [], []>} : vector<8x8xbf16>, vector<8x32xbf16>, vector<8x32xf32> -> vector<8x32xf32>
    %215 = arith.addf %191, %214 : vector<8x32xf32>
    %216 = vector.extract_strided_slice %161 {offsets = [0, 16], sizes = [8, 8], strides = [1, 1]} : vector<8x32xf32> to vector<8x8xf32>
    %217 = arith.truncf %216 : vector<8x8xf32> to vector<8x8xbf16>
    %218 = vector.extract_strided_slice %165 {offsets = [0, 16], sizes = [8, 8], strides = [1, 1]} : vector<8x32xf32> to vector<8x8xf32>
    %219 = arith.truncf %218 : vector<8x8xf32> to vector<8x8xbf16>
    %220 = vector.extract_strided_slice %166 {offsets = [0, 16], sizes = [8, 8], strides = [1, 1]} : vector<8x32xf32> to vector<8x8xf32>
    %221 = arith.truncf %220 : vector<8x8xf32> to vector<8x8xbf16>
    %222 = tpu.transpose %219, [1, 0] : vector<8x8xbf16> -> vector<8x8xbf16>
    %cst_65 = arith.constant dense<0.000000e+00> : vector<8x8xf32>
    %223 = tpu.matmul %217, %222, %cst_65 {dimension_numbers = #tpu.dot_dimension_numbers<[1], [0], [0], [1], [0, 0, 1, 1], [], []>} : vector<8x8xbf16>, vector<8x8xbf16>, vector<8x8xf32> -> vector<8x8xf32>
    %cst_66 = arith.constant dense<0xFF800000> : vector<8xf32>
    %224 = vector.multi_reduction <maximumf>, %223, %cst_66 [1] : vector<8x8xf32> to vector<8xf32>
    %225 = vector.shape_cast %224 : vector<8xf32> to vector<8x1xf32>
    %226 = vector.broadcast %225 : vector<8x1xf32> to vector<8x8xf32>
    %227 = arith.subf %223, %226 : vector<8x8xf32>
    %228 = math.exp %227 : vector<8x8xf32>
    %cst_67 = arith.constant dense<0.000000e+00> : vector<8xf32>
    %229 = vector.multi_reduction <add>, %228, %cst_67 [1] : vector<8x8xf32> to vector<8xf32>
    %230 = vector.shape_cast %229 : vector<8xf32> to vector<8x1xf32>
    %231 = tpu.reciprocal %230 {approx = true} : vector<8x1xf32> -> vector<8x1xf32>
    %232 = vector.broadcast %231 : vector<8x1xf32> to vector<8x8xf32>
    %233 = arith.mulf %228, %232 : vector<8x8xf32>
    %234 = arith.truncf %233 : vector<8x8xf32> to vector<8x8xbf16>
    %cst_68 = arith.constant dense<0.000000e+00> : vector<8x8xf32>
    %235 = tpu.matmul %234, %221, %cst_68 {dimension_numbers = #tpu.dot_dimension_numbers<[1], [0], [0], [1], [0, 0, 1, 1], [], []>} : vector<8x8xbf16>, vector<8x8xbf16>, vector<8x8xf32> -> vector<8x8xf32>
    %236 = arith.truncf %235 : vector<8x8xf32> to vector<8x8xbf16>
    %237 = vector.extract_strided_slice %153 {offsets = [16, 0], sizes = [8, 32], strides = [1, 1]} : vector<32x32xbf16> to vector<8x32xbf16>
    %cst_69 = arith.constant dense<0.000000e+00> : vector<8x32xf32>
    %238 = tpu.matmul %236, %237, %cst_69 {dimension_numbers = #tpu.dot_dimension_numbers<[1], [0], [0], [1], [0, 0, 1, 1], [], []>} : vector<8x8xbf16>, vector<8x32xbf16>, vector<8x32xf32> -> vector<8x32xf32>
    %239 = arith.addf %215, %238 : vector<8x32xf32>
    %240 = vector.extract_strided_slice %161 {offsets = [0, 24], sizes = [8, 8], strides = [1, 1]} : vector<8x32xf32> to vector<8x8xf32>
    %241 = arith.truncf %240 : vector<8x8xf32> to vector<8x8xbf16>
    %242 = vector.extract_strided_slice %165 {offsets = [0, 24], sizes = [8, 8], strides = [1, 1]} : vector<8x32xf32> to vector<8x8xf32>
    %243 = arith.truncf %242 : vector<8x8xf32> to vector<8x8xbf16>
    %244 = vector.extract_strided_slice %166 {offsets = [0, 24], sizes = [8, 8], strides = [1, 1]} : vector<8x32xf32> to vector<8x8xf32>
    %245 = arith.truncf %244 : vector<8x8xf32> to vector<8x8xbf16>
    %246 = tpu.transpose %243, [1, 0] : vector<8x8xbf16> -> vector<8x8xbf16>
    %cst_70 = arith.constant dense<0.000000e+00> : vector<8x8xf32>
    %247 = tpu.matmul %241, %246, %cst_70 {dimension_numbers = #tpu.dot_dimension_numbers<[1], [0], [0], [1], [0, 0, 1, 1], [], []>} : vector<8x8xbf16>, vector<8x8xbf16>, vector<8x8xf32> -> vector<8x8xf32>
    %cst_71 = arith.constant dense<0xFF800000> : vector<8xf32>
    %248 = vector.multi_reduction <maximumf>, %247, %cst_71 [1] : vector<8x8xf32> to vector<8xf32>
    %249 = vector.shape_cast %248 : vector<8xf32> to vector<8x1xf32>
    %250 = vector.broadcast %249 : vector<8x1xf32> to vector<8x8xf32>
    %251 = arith.subf %247, %250 : vector<8x8xf32>
    %252 = math.exp %251 : vector<8x8xf32>
    %cst_72 = arith.constant dense<0.000000e+00> : vector<8xf32>
    %253 = vector.multi_reduction <add>, %252, %cst_72 [1] : vector<8x8xf32> to vector<8xf32>
    %254 = vector.shape_cast %253 : vector<8xf32> to vector<8x1xf32>
    %255 = tpu.reciprocal %254 {approx = true} : vector<8x1xf32> -> vector<8x1xf32>
    %256 = vector.broadcast %255 : vector<8x1xf32> to vector<8x8xf32>
    %257 = arith.mulf %252, %256 : vector<8x8xf32>
    %258 = arith.truncf %257 : vector<8x8xf32> to vector<8x8xbf16>
    %cst_73 = arith.constant dense<0.000000e+00> : vector<8x8xf32>
    %259 = tpu.matmul %258, %245, %cst_73 {dimension_numbers = #tpu.dot_dimension_numbers<[1], [0], [0], [1], [0, 0, 1, 1], [], []>} : vector<8x8xbf16>, vector<8x8xbf16>, vector<8x8xf32> -> vector<8x8xf32>
    %260 = arith.truncf %259 : vector<8x8xf32> to vector<8x8xbf16>
    %261 = vector.extract_strided_slice %153 {offsets = [24, 0], sizes = [8, 32], strides = [1, 1]} : vector<32x32xbf16> to vector<8x32xbf16>
    %cst_74 = arith.constant dense<0.000000e+00> : vector<8x32xf32>
    %262 = tpu.matmul %260, %261, %cst_74 {dimension_numbers = #tpu.dot_dimension_numbers<[1], [0], [0], [1], [0, 0, 1, 1], [], []>} : vector<8x8xbf16>, vector<8x32xbf16>, vector<8x32xf32> -> vector<8x32xf32>
    %263 = arith.addf %239, %262 : vector<8x32xf32>
    %264 = vector.broadcast %156 : vector<1x32xf32> to vector<8x32xf32>
    %265 = arith.addf %263, %264 : vector<8x32xf32>
    %266 = tpu.concatenate %185, %209, %233, %257 in 1 : vector<8x8xf32>, vector<8x8xf32>, vector<8x8xf32>, vector<8x8xf32> -> vector<8x32xf32>
    %c0_75 = arith.constant 0 : index
    %c0_76 = arith.constant 0 : index
    %c0_77 = arith.constant 0 : index
    %267 = vector.load %arg16[%c0_75, %c0_76, %c0_77] : memref<1x8x32xf32, #tpu.memory_space<vmem>>, vector<1x8x32xf32>
    %268 = vector.shape_cast %267 : vector<1x8x32xf32> to vector<8x32xf32>
    %269 = vector.shape_cast %266 : vector<8x32xf32> to vector<1x8x32xf32>
    tpu.vector_store %arg16[%c0_75, %c0_76, %c0_77], %269 {strides = array<i32>} : memref<1x8x32xf32, #tpu.memory_space<vmem>>, vector<1x8x32xf32>,
    %270 = arith.addf %265, %148 : vector<8x32xf32>
    %271 = vector.extract_strided_slice %0 {offsets = [10, 0], sizes = [1, 32], strides = [1, 1]} : vector<14x64xf32> to vector<1x32xf32>
    %272 = vector.extract_strided_slice %0 {offsets = [11, 0], sizes = [1, 32], strides = [1, 1]} : vector<14x64xf32> to vector<1x32xf32>
    %cst_78 = arith.constant dense<0.000000e+00> : vector<8xf32>
    %273 = vector.multi_reduction <add>, %270, %cst_78 [1] : vector<8x32xf32> to vector<8xf32>
    %274 = vector.shape_cast %273 : vector<8xf32> to vector<8x1xf32>
    %cst_79 = arith.constant 3.200000e+01 : f32
    %275 = vector.broadcast %cst_79 : f32 to vector<8x1xf32>
    %276 = arith.divf %274, %275 : vector<8x1xf32>
    %277 = vector.broadcast %276 : vector<8x1xf32> to vector<8x32xf32>
    %278 = arith.subf %270, %277 : vector<8x32xf32>
    %279 = arith.mulf %278, %278 : vector<8x32xf32>
    %cst_80 = arith.constant dense<0.000000e+00> : vector<8xf32>
    %280 = vector.multi_reduction <add>, %279, %cst_80 [1] : vector<8x32xf32> to vector<8xf32>
    %281 = vector.shape_cast %280 : vector<8xf32> to vector<8x1xf32>
    %cst_81 = arith.constant 3.200000e+01 : f32
    %282 = vector.broadcast %cst_81 : f32 to vector<8x1xf32>
    %283 = arith.divf %281, %282 : vector<8x1xf32>
    %284 = vector.broadcast %276 : vector<8x1xf32> to vector<8x32xf32>
    %285 = arith.subf %270, %284 : vector<8x32xf32>
    %cst_82 = arith.constant 9.99999974E-6 : f32
    %286 = vector.broadcast %cst_82 : f32 to vector<8x1xf32>
    %287 = arith.addf %283, %286 : vector<8x1xf32>
    %288 = math.rsqrt %287 : vector<8x1xf32>
    %289 = vector.broadcast %288 : vector<8x1xf32> to vector<8x32xf32>
    %290 = arith.mulf %285, %289 : vector<8x32xf32>
    %291 = vector.broadcast %271 : vector<1x32xf32> to vector<8x32xf32>
    %292 = arith.mulf %290, %291 : vector<8x32xf32>
    %293 = vector.broadcast %272 : vector<1x32xf32> to vector<8x32xf32>
    %294 = arith.addf %292, %293 : vector<8x32xf32>
    %295 = arith.truncf %294 : vector<8x32xf32> to vector<8x32xbf16>
    %c0_83 = arith.constant 0 : index
    %c0_84 = arith.constant 0 : index
    %296 = vector.load %arg11[%c0_83, %c0_84] : memref<32x64xbf16, #tpu.memory_space<vmem>>, vector<32x64xbf16>
    %cst_85 = arith.constant dense<0.000000e+00> : vector<8x64xf32>
    %297 = tpu.matmul %295, %296, %cst_85 {dimension_numbers = #tpu.dot_dimension_numbers<[1], [0], [0], [1], [0, 0, 1, 1], [], []>} : vector<8x32xbf16>, vector<32x64xbf16>, vector<8x64xf32> -> vector<8x64xf32>
    %298 = vector.extract_strided_slice %0 {offsets = [6, 0], sizes = [1, 64], strides = [1, 1]} : vector<14x64xf32> to vector<1x64xf32>
    %299 = vector.broadcast %298 : vector<1x64xf32> to vector<8x64xf32>
    %300 = arith.addf %297, %299 : vector<8x64xf32>
    %cst_86 = arith.constant 0.000000e+00 : f32
    %301 = vector.broadcast %cst_86 : f32 to vector<8x64xf32>
    %302 = arith.maximumf %300, %301 : vector<8x64xf32>
    %303 = arith.truncf %302 : vector<8x64xf32> to vector<8x64xbf16>
    %c0_87 = arith.constant 0 : index
    %c0_88 = arith.constant 0 : index
    %304 = vector.load %arg12[%c0_87, %c0_88] : memref<64x32xbf16, #tpu.memory_space<vmem>>, vector<64x32xbf16>
    %cst_89 = arith.constant dense<0.000000e+00> : vector<8x32xf32>
    %305 = tpu.matmul %303, %304, %cst_89 {dimension_numbers = #tpu.dot_dimension_numbers<[1], [0], [0], [1], [0, 0, 1, 1], [], []>} : vector<8x64xbf16>, vector<64x32xbf16>, vector<8x32xf32> -> vector<8x32xf32>
    %306 = vector.extract_strided_slice %0 {offsets = [7, 0], sizes = [1, 32], strides = [1, 1]} : vector<14x64xf32> to vector<1x32xf32>
    %307 = vector.broadcast %306 : vector<1x32xf32> to vector<8x32xf32>
    %308 = arith.addf %305, %307 : vector<8x32xf32>
    %309 = arith.addf %308, %294 : vector<8x32xf32>
    %310 = vector.extract_strided_slice %0 {offsets = [12, 0], sizes = [1, 32], strides = [1, 1]} : vector<14x64xf32> to vector<1x32xf32>
    %311 = vector.extract_strided_slice %0 {offsets = [13, 0], sizes = [1, 32], strides = [1, 1]} : vector<14x64xf32> to vector<1x32xf32>
    %cst_90 = arith.constant dense<0.000000e+00> : vector<8xf32>
    %312 = vector.multi_reduction <add>, %309, %cst_90 [1] : vector<8x32xf32> to vector<8xf32>
    %313 = vector.shape_cast %312 : vector<8xf32> to vector<8x1xf32>
    %cst_91 = arith.constant 3.200000e+01 : f32
    %314 = vector.broadcast %cst_91 : f32 to vector<8x1xf32>
    %315 = arith.divf %313, %314 : vector<8x1xf32>
    %316 = vector.broadcast %315 : vector<8x1xf32> to vector<8x32xf32>
    %317 = arith.subf %309, %316 : vector<8x32xf32>
    %318 = arith.mulf %317, %317 : vector<8x32xf32>
    %cst_92 = arith.constant dense<0.000000e+00> : vector<8xf32>
    %319 = vector.multi_reduction <add>, %318, %cst_92 [1] : vector<8x32xf32> to vector<8xf32>
    %320 = vector.shape_cast %319 : vector<8xf32> to vector<8x1xf32>
    %cst_93 = arith.constant 3.200000e+01 : f32
    %321 = vector.broadcast %cst_93 : f32 to vector<8x1xf32>
    %322 = arith.divf %320, %321 : vector<8x1xf32>
    %323 = vector.broadcast %315 : vector<8x1xf32> to vector<8x32xf32>
    %324 = arith.subf %309, %323 : vector<8x32xf32>
    %cst_94 = arith.constant 9.99999974E-6 : f32
    %325 = vector.broadcast %cst_94 : f32 to vector<8x1xf32>
    %326 = arith.addf %322, %325 : vector<8x1xf32>
    %327 = math.rsqrt %326 : vector<8x1xf32>
    %328 = vector.broadcast %327 : vector<8x1xf32> to vector<8x32xf32>
    %329 = arith.mulf %324, %328 : vector<8x32xf32>
    %330 = vector.broadcast %310 : vector<1x32xf32> to vector<8x32xf32>
    %331 = arith.mulf %329, %330 : vector<8x32xf32>
    %332 = vector.broadcast %311 : vector<1x32xf32> to vector<8x32xf32>
    %333 = arith.addf %331, %332 : vector<8x32xf32>
    %c0_95 = arith.constant 0 : index
    %c0_96 = arith.constant 0 : index
    %c0_97 = arith.constant 0 : index
    %334 = vector.load %arg14[%c0_95, %c0_96, %c0_97] : memref<1x8x32xf32, #tpu.memory_space<vmem>>, vector<1x8x32xf32>
    %335 = vector.shape_cast %334 : vector<1x8x32xf32> to vector<8x32xf32>
    %336 = vector.shape_cast %333 : vector<8x32xf32> to vector<1x8x32xf32>
    tpu.vector_store %arg14[%c0_95, %c0_96, %c0_97], %336 {strides = array<i32>} : memref<1x8x32xf32, #tpu.memory_space<vmem>>, vector<1x8x32xf32>,
    return
  }
  func.func @transform_0(%arg0: i32, %arg1: i32) -> (i32, i32, i32) {
    %c0_i32 = arith.constant 0 : i32
    %c0_i32_0 = arith.constant 0 : i32
    return %arg0, %arg1, %c0_i32 : i32, i32, i32
  }
  func.func @transform_1(%arg0: i32, %arg1: i32) -> (i32, i32, i32) {
    %c0_i32 = arith.constant 0 : i32
    %c0_i32_0 = arith.constant 0 : i32
    %c0_i32_1 = arith.constant 0 : i32
    return %arg0, %c0_i32, %c0_i32_0 : i32, i32, i32
  }
  func.func @transform_2(%arg0: i32, %arg1: i32) -> (i32, i32, i32) {
    %c0_i32 = arith.constant 0 : i32
    %c0_i32_0 = arith.constant 0 : i32
    %c0_i32_1 = arith.constant 0 : i32
    return %arg0, %c0_i32, %c0_i32_0 : i32, i32, i32
  }
  func.func @transform_3(%arg0: i32, %arg1: i32) -> (i32, i32) {
    %c0_i32 = arith.constant 0 : i32
    %c0_i32_0 = arith.constant 0 : i32
    %c0_i32_1 = arith.constant 0 : i32
    return %c0_i32, %c0_i32_0 : i32, i32
  }
  func.func @transform_4(%arg0: i32, %arg1: i32) -> (i32, i32) {
    %c0_i32 = arith.constant 0 : i32
    %c0_i32_0 = arith.constant 0 : i32
    %c0_i32_1 = arith.constant 0 : i32
    return %c0_i32, %c0_i32_0 : i32, i32
  }
  func.func @transform_5(%arg0: i32, %arg1: i32) -> (i32, i32) {
    %c0_i32 = arith.constant 0 : i32
    %c0_i32_0 = arith.constant 0 : i32
    %c0_i32_1 = arith.constant 0 : i32
    return %c0_i32, %c0_i32_0 : i32, i32
  }
  func.func @transform_6(%arg0: i32, %arg1: i32) -> (i32, i32) {
    %c0_i32 = arith.constant 0 : i32
    %c0_i32_0 = arith.constant 0 : i32
    %c0_i32_1 = arith.constant 0 : i32
    return %c0_i32, %c0_i32_0 : i32, i32
  }
  func.func @transform_7(%arg0: i32, %arg1: i32) -> (i32, i32) {
    %c0_i32 = arith.constant 0 : i32
    %c0_i32_0 = arith.constant 0 : i32
    %c0_i32_1 = arith.constant 0 : i32
    return %c0_i32, %c0_i32_0 : i32, i32
  }
  func.func @transform_8(%arg0: i32, %arg1: i32) -> (i32, i32) {
    %c0_i32 = arith.constant 0 : i32
    %c0_i32_0 = arith.constant 0 : i32
    %c0_i32_1 = arith.constant 0 : i32
    return %c0_i32, %c0_i32_0 : i32, i32
  }
  func.func @transform_9(%arg0: i32, %arg1: i32) -> (i32, i32) {
    %c0_i32 = arith.constant 0 : i32
    %c0_i32_0 = arith.constant 0 : i32
    %c0_i32_1 = arith.constant 0 : i32
    return %c0_i32, %c0_i32_0 : i32, i32
  }
  func.func @transform_10(%arg0: i32, %arg1: i32) -> (i32, i32) {
    %c0_i32 = arith.constant 0 : i32
    %c0_i32_0 = arith.constant 0 : i32
    %c0_i32_1 = arith.constant 0 : i32
    return %c0_i32, %c0_i32_0 : i32, i32
  }
  func.func @transform_11(%arg0: i32, %arg1: i32) -> (i32, i32) {
    %c0_i32 = arith.constant 0 : i32
    %c0_i32_0 = arith.constant 0 : i32
    %c0_i32_1 = arith.constant 0 : i32
    return %c0_i32, %c0_i32_0 : i32, i32
  }
  func.func @transform_12(%arg0: i32, %arg1: i32) -> (i32, i32, i32) {
    %c0_i32 = arith.constant 0 : i32
    %c0_i32_0 = arith.constant 0 : i32
    return %arg0, %arg1, %c0_i32 : i32, i32, i32
  }
  func.func @transform_13(%arg0: i32, %arg1: i32) -> (i32, i32, i32) {
    %c0_i32 = arith.constant 0 : i32
    %c0_i32_0 = arith.constant 0 : i32
    return %arg0, %arg1, %c0_i32 : i32, i32, i32
  }
  func.func @transform_14(%arg0: i32, %arg1: i32) -> (i32, i32, i32) {
    %c0_i32 = arith.constant 0 : i32
    %c0_i32_0 = arith.constant 0 : i32
    return %arg0, %arg1, %c0_i32 : i32, i32, i32
  }
}

</mosaic_0001>

<bundles_post_ra>
// kernel: tpu_custom_call.1
= control target key start
LH: loop header
LB: loop body
LE: loop exit
PB: predicated region body
PF: predicated region fallthrough
CT: control target
= control target key end

     0   :  { %s4345_s0 = inlined_call_operand.vmem [shape: f32[2,8,32], index: 0, kind: input, shape index: {}]   ;;  %s4346_s1 = inlined_call_operand.vmem [shape: f32[2,8,32], index: 1, kind: input, shape index: {}]   ;;  %s4347_s2 = inlined_call_operand.vmem [shape: f32[2,8,32], index: 2, kind: input, shape index: {}]   ;;  %s4348_s3 = inlined_call_operand.hbm [shape: bf16[32,32], index: 3, kind: input, shape index: {}]   ;;  %s4349_s4 = inlined_call_operand.hbm [shape: bf16[32,64], index: 4, kind: input, shape index: {}]   ;;  %s4350_s5 = inlined_call_operand.hbm [shape: bf16[32,32], index: 5, kind: input, shape index: {}]   ;;  %s4351_s6 = inlined_call_operand.hbm [shape: bf16[32,32], index: 6, kind: input, shape index: {}]   ;;  %s4352_s7 = inlined_call_operand.hbm [shape: bf16[32,64], index: 7, kind: input, shape index: {}]   ;;  %s4353_s8 = inlined_call_operand.hbm [shape: bf16[32,32], index: 8, kind: input, shape index: {}]   ;;  %s4354_s9 = inlined_call_operand.vmem [shape: bf16[32,64], index: 9, kind: input, shape index: {}]   ;;  %s4355_s10 = inlined_call_operand.vmem [shape: bf16[64,32], index: 10, kind: input, shape index: {}]   ;;  %s4356_s11 = inlined_call_operand.hbm [shape: f32[14,64], index: 11, kind: input, shape index: {}]   ;;  %s4357_s12 = inlined_call_operand.hbm [shape: f32[2,8,32], index: 12, kind: output, shape index: {0}]   ;;  %s4358_s13 = inlined_call_operand.hbm [shape: f32[2,8,32], index: 13, kind: output, shape index: {1}]   ;;  %s4359_s14 = inlined_call_operand.hbm [shape: f32[2,8,32], index: 14, kind: output, shape index: {2}]  }
   0x1   :  { %4369 = sst [smem:[#allocation31_spill]] %s4348_s3 }
   0x2   :  { %4370 = sst [smem:[#allocation32_spill]] %s4349_s4 }
   0x3   :  { %20 = vsyncpa [#allocation3], 0 }
   0x4   :  { %21 = vsyncpa [#allocation6], 0 }
   0x5   :  { %22 = vsyncpa [#allocation9], 0 }
   0x6   :  { %23 = vsyncpa [#allocation12], 0 }
   0x7   :  { %24 = vsyncpa [#allocation4], 0 }
   0x8   :  { %26 = vsyncpa [#allocation4 + $0x1], 0 }
   0x9   :  { %27 = vsyncpa [#allocation16], 0 }
   0xa   :  { %29 = vsyncpa [#allocation16 + $0x1], 0  ;;  %s3702_s29 = smov 0   ;;  %s3704_s30 = smov 0  }
   0xb   :  { %s3706_s15 = smov 0   ;;  %s3708_s16 = smov 0  }
   0xc   :  { %s3710_s17 = smov 0   ;;  %s3712_s18 = smov 0  }
   0xd LB: > { %4371 = sst [smem:[#allocation24_spill]] %s3579_s29  ;;  %s3733_s19 = sadd.s32 4294967295, %s3599_s18   ;;  %s3599_s18 = sphi %s3712_s18, %s35_s18   ;;  %s3595_s17 = sphi %s3710_s17, %s4401_s17   ;;  %s3591_s16 = sphi %s3708_s16, %s4400_s16   ;;  %s3587_s15 = sphi %s3706_s15, %s4399_s15   ;;  %s3583_s30 = sphi %s3704_s30, %s4403_s30   ;;  %s3579_s29 = sphi %s3702_s29, %s4402_s29  }
   0xe   : > { %4372 = sst [smem:[#allocation25_spill]] %s3587_s15  ;;  %s4360_s20 = sadd.s32 4294967294, %s3599_s18  }
   0xf   : > { %4373 = sst [smem:[#allocation26_spill]] %s3595_s17  ;;  %s47_s21 = sadd.s32 1, %s3595_s17 }
  0x10   : > { %4374 = sst [smem:[#allocation27_spill]] %s3599_s18  ;;  %s325_s22 = sadd.s32 1, %s3587_s15 }
  0x11   : > { %p49_p0 = scmp.ge.s32.totalorder %s47_s21, 2  ;;  %p335_p1 = scmp.ne.s32.totalorder %s3587_s15, %s3583_s30 }
  0x12   : > { %p336_p2 = scmp.eq.s32.totalorder %s3733_s19, 1  ;;  %p341_p3 = scmp.ne.s32.totalorder %s3583_s30, %s3579_s29 }
  0x13   : > { %s4405_s21 = smov (%p49_p0, %s47_s21), 0  ;;  %p342_p5 = scmp.eq.s32.totalorder %s4360_s20, 1 }
  0x14   : > { %4375 = sst [smem:[#allocation28_spill]] %s4405_s21  ;;  %p3745_p4 = por %p336_p2, %p335_p1 }
  0x15   : > { %s320_s24 = ssub.s32 %s3595_s17, %s4405_s21  ;;  %p2725_p6 = scmp.ge.s32.totalorder %s3599_s18, 1 }
  0x16   : > { %p323_p7 = scmp.eq.s32.totalorder %s320_s24, 0  ;;  %p3754_p8 = por %p342_p5, %p341_p3 }
  0x17   : > { %p405_p9 = scmp.lt.s32.totalorder %s3599_s18, 3  ;;  %p4368_p11 = scmp.eq.s32.totalorder %s3733_s19, 0 }
  0x18   : > { %s4377_s25 = scalar_select %p3754_p8, 1, 0 }
  0x19   : > { %s3760_s26 = scalar_select %p323_p7, %s3587_s15, %s325_s22  }
  0x1a   : > { %4378 = sst [smem:[#allocation29_spill]] %s4377_s25  ;;  %p3762_p10 = pnand %p2725_p6, %p405_p9 }
  0x1b   : > { %4379 = sst [smem:[#allocation30_spill]] %s3760_s26  ;;  %s3601_s28 = smov [#allocation5]  }
  0x1c   : > { %p3098_p12 = pneg %p3762_p10  ;;  %s430_s20 = sshll.u32 %s3601_s28, 4  ;;  %s431_s20 = int_to_ptr.vmem [resolvable:$true] %s430_s20 }
  0x1d   : > { %s3602_s21 = smov [#allocation8]   ;;  %s3280_s26 = scalar_lea.vmem %s431_s20, 256 }
  0x1e   : > { %p3771_p13 = pnand %p4368_p11, %p3098_p12  ;;  %s456_s22 = sshll.u32 %s3602_s21, 4  ;;  %s457_s22 = int_to_ptr.vmem [resolvable:$true] %s456_s22 }
  0x1f   : > { %p3281_p1 = scmp.ne.s32.totalorder %s431_s20, %s3280_s26  ;;  %p3288_p5 = scmp.lt.s32.totalorder %s431_s20, %s431_s20 }
  0x20   : > { %p3777_p0 = pneg %p3771_p13  ;;  %p3289_p6 = scmp.lt.s32.totalorder %s3280_s26, %s3280_s26 }
  0x22   : > { %p3283_p2 = pnand %p3281_p1, %p3777_p0  ;;  %p3290_p7 = por %p3289_p6, %p3288_p5 }
  0x24   : > { %p3284_p3 = pneg %p3283_p2 }
  0x26   : > { %p3291_p9 = pnand %p3290_p7, %p3284_p3 }
  0x28   : > { %3294 = shalt.err (!%p3291_p9)
}
  0x29   : > { %s3603_s28 = smov 64   ;;  %s3604_s21 = smov 4  }
  0x2a   : > { %s4383_s4 = sld [smem:[#allocation32_spill]]  ;;  %s3306_s29 = scalar_lea.vmem %s457_s22, 256 }
  0x2b   : > { %p3307_p12 = scmp.ne.s32.totalorder %s457_s22, %s3306_s29  ;;  %p3314_p5 = scmp.lt.s32.totalorder %s457_s22, %s457_s22 }
  0x2c   : > { %p3315_p3 = scmp.lt.s32.totalorder %s3306_s29, %s3306_s29 }
  0x2d   : > { %p3309_p1 = pnand %p3307_p12, %p3777_p0 }
  0x2e   : > { %p3316_p6 = por %p3315_p3, %p3314_p5 }
  0x2f   : > { %p3310_p2 = pneg %p3309_p1 }
  0x30   : > { %3104 = dma.hbm_to_vmem [thread:$0]  (!%p3771_p13), %s4383_s4, 256, %s431_s20, [#allocation6], %s3603_s28, %s3603_s28, %s3604_s21  }
  0x31   : > { %p3317_p7 = pnand %p3316_p6, %p3310_p2 }
  0x33   : > { %3320 = shalt.err (!%p3317_p7)
}
  0x34   : > { %3110 = dma.hbm_to_vmem [thread:$0]  (!%p3771_p13), %s4351_s6, 256, %s457_s22, [#allocation9], %s3603_s28, %s3603_s28, %s3604_s21  }
  0x35   : > { %s3605_s15 = smov [#allocation11]  }
  0x36   : > { %s482_s20 = sshll.u32 %s3605_s15, 4  ;;  %s483_s20 = int_to_ptr.vmem [resolvable:$true] %s482_s20 }
  0x37   : > { %s3332_s25 = scalar_lea.vmem %s483_s20, 256  ;;  %p3340_p2 = scmp.lt.s32.totalorder %s483_s20, %s483_s20 }
  0x38   : > { %p3333_p9 = scmp.ne.s32.totalorder %s483_s20, %s3332_s25  ;;  %p3341_p5 = scmp.lt.s32.totalorder %s3332_s25, %s3332_s25 }
  0x3a   : > { %p3335_p12 = pnand %p3333_p9, %p3777_p0  ;;  %p3342_p3 = por %p3341_p5, %p3340_p2 }
  0x3c   : > { %p3336_p1 = pneg %p3335_p12 }
  0x3e   : > { %p3343_p6 = pnand %p3342_p3, %p3336_p1 }
  0x40   : > { %3346 = shalt.err (!%p3343_p6)
}
  0x41   : > { %3116 = dma.hbm_to_vmem [thread:$0]  (!%p3771_p13), %s4353_s8, 256, %s483_s20, [#allocation12], %s3603_s28, %s3603_s28, %s3604_s21  }
  0x42   : > { %s3606_s22 = smov [#allocation2]   ;;  %s3607_s15 = smov [#allocation7]  }
  0x43   : > { %s417_s26 = sshll.u32 %s3606_s22, 4  ;;  %s443_s4 = sshll.u32 %s3607_s15, 4  ;;  %s418_s26 = int_to_ptr.vmem [resolvable:$true] %s417_s26  ;;  %s444_s4 = int_to_ptr.vmem [resolvable:$true] %s443_s4 }
  0x44   : > { %s3358_s25 = scalar_lea.vmem %s418_s26, 256  ;;  %p3366_p1 = scmp.lt.s32.totalorder %s418_s26, %s418_s26 }
  0x45   : > { %p3359_p7 = scmp.ne.s32.totalorder %s418_s26, %s3358_s25  ;;  %p3367_p2 = scmp.lt.s32.totalorder %s3358_s25, %s3358_s25 }
  0x47   : > { %p3361_p9 = pnand %p3359_p7, %p3777_p0  ;;  %p3368_p5 = por %p3367_p2, %p3366_p1 }
  0x49   : > { %p3362_p12 = pneg %p3361_p9 }
  0x4b   : > { %p3369_p3 = pnand %p3368_p5, %p3362_p12 }
  0x4d   : > { %3372 = shalt.err (!%p3369_p3)
}
  0x4e   : > { %s4384_s3 = sld [smem:[#allocation31_spill]]  ;;  %s3384_s18 = scalar_lea.vmem %s444_s4, 256 }
  0x4f   : > { %p3385_p6 = scmp.ne.s32.totalorder %s444_s4, %s3384_s18  ;;  %p3392_p11 = scmp.lt.s32.totalorder %s444_s4, %s444_s4 }
  0x50   : > { %p3393_p8 = scmp.lt.s32.totalorder %s3384_s18, %s3384_s18 }
  0x51   : > { %p3387_p7 = pnand %p3385_p6, %p3777_p0 }
  0x52   : > { %p3394_p1 = por %p3393_p8, %p3392_p11 }
  0x53   : > { %p3388_p9 = pneg %p3387_p7 }
  0x54   : > { %3101 = dma.hbm_to_vmem [thread:$0]  (!%p3771_p13), %s4384_s3, 256, %s418_s26, [#allocation3], %s3603_s28, %s3603_s28, %s3604_s21  }
  0x55   : > { %p3395_p12 = pnand %p3394_p1, %p3388_p9 }
  0x57   : > { %3398 = shalt.err (!%p3395_p12)
}
  0x58   : > { %3107 = dma.hbm_to_vmem [thread:$0]  (!%p3771_p13), %s4350_s5, 256, %s444_s4, [#allocation6], %s3603_s28, %s3603_s28, %s3604_s21  }
  0x59   : > { %s3608_s26 = smov [#allocation10]   ;;  %s3609_s20 = smov [#allocation13]  }
  0x5a   : > { %s469_s25 = sshll.u32 %s3608_s26, 4  ;;  %s501_s29 = sshll.u32 %s3609_s20, 4  ;;  %s470_s25 = int_to_ptr.vmem [resolvable:$true] %s469_s25  ;;  %s502_s29 = int_to_ptr.vmem [resolvable:$true] %s501_s29 }
  0x5b   : > { %s3410_s18 = scalar_lea.vmem %s470_s25, 256  ;;  %p3418_p5 = scmp.lt.s32.totalorder %s470_s25, %s470_s25 }
  0x5c   : > { %p3411_p8 = scmp.ne.s32.totalorder %s470_s25, %s3410_s18  ;;  %p3419_p3 = scmp.lt.s32.totalorder %s3410_s18, %s3410_s18 }
  0x5e   : > { %p3413_p11 = pnand %p3411_p8, %p3777_p0  ;;  %p3420_p6 = por %p3419_p3, %p3418_p5 }
  0x60   : > { %p3414_p2 = pneg %p3413_p11 }
  0x62   : > { %p3421_p7 = pnand %p3420_p6, %p3414_p2 }
  0x64   : > { %3424 = shalt.err (!%p3421_p7)
}
  0x65   : > { %3113 = dma.hbm_to_vmem [thread:$0]  (!%p3771_p13), %s4352_s7, 256, %s470_s25, [#allocation9], %s3603_s28, %s3603_s28, %s3604_s21  }
  0x66   : > { %s3436_s15 = scalar_lea.vmem %s502_s29, 256  ;;  %p3444_p8 = scmp.lt.s32.totalorder %s502_s29, %s502_s29 }
  0x67   : > { %p3437_p9 = scmp.ne.s32.totalorder %s502_s29, %s3436_s15  ;;  %p3445_p11 = scmp.lt.s32.totalorder %s3436_s15, %s3436_s15 }
  0x69   : > { %p3439_p1 = pnand %p3437_p9, %p3777_p0  ;;  %p3446_p5 = por %p3445_p11, %p3444_p8 }
  0x6b   : > { %p3440_p12 = pneg %p3439_p1 }
  0x6d   : > { %p3447_p2 = pnand %p3446_p5, %p3440_p12 }
  0x6f   : > { %3450 = shalt.err (!%p3447_p2)
}
  0x70   : > { %s3610_s26 = smov 128   ;;  %s3611_s20 = smov 8  }
  0x71   : > { %3119 = dma.hbm_to_vmem [thread:$0]  (!%p3771_p13), %s4356_s11, 256, %s502_s29, [#allocation12], %s3610_s26, %s3610_s26, %s3611_s20  }
  0x72   : > { %541 = sbr.rel (%p3762_p10) target bundleno = 6365 (0x18dd), region = 68  ;;  %p4385_p3 = scmp.eq.s32.totalorder (!%p3762_p10), %s3733_s19, 0 }
  0x77   : > { %3554 = dma.done.wait (%p4385_p3), [#allocation3], 256   ;;  %p4386_p0 = pmov %p4385_p3 }
  0x79   : > { %3556 = vsyncadd (%p4386_p0), [#allocation3], 4294967040  ;;  %p4387_p6 = pmov %p4386_p0 }
  0x7a   : > { %p4388_p7 = pmov %p4386_p0 }
  0x7b   : > { %3558 = dma.done.wait (%p4387_p6), [#allocation6], 512  }
  0x7c   : > { %3560 = vsyncadd (%p4388_p7), [#allocation6], 4294966784  ;;  %p4389_p9 = pmov %p4386_p0 }
  0x7d   : > { %p4390_p13 = pmov %p4386_p0 }
  0x7e   : > { %3562 = dma.done.wait (%p4389_p9), [#allocation9], 512  }
  0x7f   : > { %3564 = vsyncadd (%p4390_p13), [#allocation9], 4294966784  ;;  %p4391_p10 = pmov %p4386_p0 }
  0x80   : > { %p4392_p1 = pmov %p4386_p0 }
  0x81   : > { %3566 = dma.done.wait (%p4391_p10), [#allocation12], 512  }
  0x82   : > { %3568 = vsyncadd (%p4392_p1), [#allocation12], 4294966784  ;;  %p631_p12 = scmp.lt.s32.totalorder %s3591_s16, 1  ;;  %v3612_v0 = vmov 0.0   ;;  %vm3613_vm0 = vmmov 0   ;;  %v3216_v1 = vld [vmem:[#allocation5 + $0x8] sm:$0xff]   ;;  %v665_v9 = vlaneseq }
  0x83   : > { %2876 = vmatprep.subr.bf16.mxu1 %v3612_v0  ;;  %2868 = vmatprep.subr.bf16.mxu0 %v3612_v0  ;;  %v3217_v2 = vld [vmem:[#allocation2 + $0x8] sm:$0xff]   ;;  %v3218_v3 = vld [vmem:[#allocation5] sm:$0xff]   ;;  %v3219_v4 = vld [vmem:[#allocation2] sm:$0xff]   ;;  %vm681_vm1 = vcmask 261120   ;;  %vm786_vm2 = vcmask 64512   ;;  %s3614_s4 = smov 120  }
  0x84   : > { %2880 = vmatprep.mubr.msk.bf16.mxu1 %vm3613_vm0, %v3612_v0  ;;  %s632_s3 = scalar_select %p631_p12, %s3591_s16, 1  ;;  %2872 = vmatprep.mubr.msk.bf16.mxu0 %vm3613_vm0, %v3612_v0  ;;  %v3898_v10 = vshrl.u32 %v665_v9, 7  ;;  %v3901_v12 = vld [vmem:[#allocation13] sm:$0xff]  ;;  %vm851_vm3 = vcmask 1043456   ;;  %vm2374_vm4 = vcmask 523264   ;;  %vm1434_vm5 = vcmask 130048  }
  0x85   : > { %2877 = vmatpush3.bf16.msra.mxu1 %v3216_v1  ;;  %2869 = vmatpush3.bf16.msra.mxu0 %v3217_v2  ;;  %s3615_s22 = smov 96   ;;  %s3616_s15 = smov 88   ;;  %v660_v58 = vld [vmem:[#allocation7 + $0x4] sm:$0xf]  ;;  %v659_v1 = vld [vmem:[#allocation7] sm:$0xf] }
  0x86   : > { %s3874_s17 = sshll.u32 %s632_s3, 3  ;;  %2878 = vmatprep.subr.bf16.mxu1 %v3612_v0  ;;  %2870 = vmatprep.subr.bf16.mxu0 %v3612_v0  ;;  %v727_v11 = vsub.s32 1, %v3898_v10  ;;  %v667_v13 = vsub.s32 0, %v3898_v10  ;;  %s3617_s26 = smov 112   ;;  %v1012_v59 = vsel %vm851_vm3, %v660_v58, 0  ;;  %vm1436_vm6 = vcmask 195584  }
  0x87   : > { %s641_s28 = scalar_lea.vmem %s4346_s1, %s3874_s17  ;;  %s637_s29 = scalar_lea.vmem %s4345_s0, %s3874_s17 }
  0x88   : > { %v650_v5 = vld [vmem:[%s641_s28] sm:$0xff]  ;;  %v728_v14 = vrot.slane %v3901_v12, %v727_v11  ;;  %v668_v15 = vrot.slane %v3901_v12, %v667_v13  ;;  %s3618_s20 = smov 80   ;;  %s3619_s18 = smov 104  }
  0x89   : > { %v3886_v6 = vld [vmem:[%s637_s29] sm:$0xff]  ;;  %v664_v7 = vpack.c.bf16 %v650_v5, %v650_v5  ;;  %2879 = vmatpush3.bf16.msra.mxu1 %v3218_v3  ;;  %2871 = vmatpush3.bf16.msra.mxu0 %v3219_v4  ;;  %v1058_v4 = vsel %vm851_vm3, %v659_v1, 0  ;;  %s3620_s3 = smov 72   ;;  %s645_s28 = scalar_lea.vmem %s4347_s2, %s3874_s17 }
  0x8a   : > { %v663_v8 = vpack.c.bf16 %v3886_v6, %v3886_v6  ;;  %2890 = vmatprep.subr.bf16.mxu1 %v3612_v0  ;;  %2884 = vmatprep.subr.bf16.mxu0 %v3612_v0  ;;  %s3621_s24 = smov 8   ;;  %s3623_s17 = smov 24  }
  0x8b   : > { %s614_s21 = sand.u32 1, %s3583_s30  }
  0x8c   : > { %2881 = vmatmul.mubr.msk.bf16.vlgmr.msra.gmra.mxu1 %vm681_vm1, %v664_v7  ;;  %2873 = vmatmul.mubr.msk.bf16.vlgmr.msra.gmra.mxu0 %vm681_vm1, %v663_v8  ;;  %s4235_s25 = sshll.u32 %s614_s21, 3 }
  0x8d   : > { %2892 = vmatprep.mubr.msk.bf16.mxu1 %vm3613_vm0, %v3612_v0  ;;  %2886 = vmatprep.mubr.msk.bf16.mxu0 %vm3613_vm0, %v3612_v0  ;;  %s623_s29 = scalar_lea.vmem [#allocation15], %s4235_s25 }
 0x14c   : > { %v778_v16 = vpop.f32.mrf.mxu1  ;;  %v719_v18 = vpop.f32.mrf.mxu0 }
 0x14d   : > { %v779_v17 = vadd.f32 %v778_v16, %v728_v14  ;;  %v720_v20 = vadd.f32 %v719_v18, %v668_v15 }
 0x14e   : > { %v2882_v19 = vpop.f32.mrf.mxu1  ;;  %v2874_v22 = vpop.f32.mrf.mxu0 }
 0x14f   : > { %v3910_v21 = vpack.c.bf16 %v779_v17, %v779_v17  ;;  %v3912_v24 = vpack.c.bf16 %v720_v20, %v720_v20 }
 0x150   : > { %v781_v23 = vpop.f32.mrf.mxu1  ;;  %v722_v26 = vpop.f32.mrf.mxu0 }
 0x151   : > { %899 = vrot.lane.b32.xlu0 %v3910_v21, %s3614_s4  ;;  %v791_v25 = vsel %vm786_vm2, %v3910_v21, 0 }
 0x152   : > { %v2883_v27 = vpop.f32.mrf.mxu1  ;;  %2885 = vmatpush3.bf16.xpose.msra.mxu0 %v791_v25  ;;  %v2875_v28 = vpop.f32.mrf.mxu0 }
 0x153   : > { %2896 = vmatprep.subr.bf16.mxu0 %v3612_v0 }
 0x155   : > { %897 = vrot.lane.b32.xlu0 %v3912_v24, %s3614_s4 }
 0x159   : > { %2887 = vmatmul.mubr.msk.bf16.vlgmr.msra.gmra.mxu0 %vm786_vm2, %v3912_v24 }
 0x15a   : > { %2898 = vmatprep.mubr.msk.bf16.mxu0 %vm3613_vm0, %v3612_v0 }
 0x1c3   : > { %v900_v29 = vpop.permute.xlu0 %899 }
 0x1c4   : > { %v905_v30 = vsel %vm786_vm2, %v900_v29, 0 }
 0x1c5   : > { %2897 = vmatpush3.bf16.xpose.msra.mxu0 %v905_v30 }
 0x1c6   : > { %2908 = vmatprep.subr.bf16.mxu0 %v3612_v0 }
 0x1c7   : > { %v898_v31 = vpop.permute.xlu0 %897 }
 0x1cc   : > { %2899 = vmatmul.mubr.msk.bf16.vlgmr.msra.gmra.mxu0 %vm786_vm2, %v898_v31 }
 0x1cd   : > { %2910 = vmatprep.mubr.msk.bf16.mxu0 %vm3613_vm0, %v3612_v0  ;;  %2909 = vmatpush3.bf16.msra.mxu0 %v1012_v59 }
 0x1ce   : > { %2920 = vmatprep.subr.bf16.mxu0 %v3612_v0 }
 0x219   : > { %v827_v32 = vpop.f32.mrf.mxu0 }
 0x21a   : > { %v833_v33 = vsel %vm786_vm2, %v827_v32, -inf }
 0x21b   : > { %834 = vmax.xlane.f32.xlu1 %v833_v33  ;;  %v2888_v34 = vpop.f32.mrf.mxu0 }
 0x21d   : > { %v830_v35 = vpop.f32.mrf.mxu0 }
 0x21f   : > { %v2889_v36 = vpop.f32.mrf.mxu0 }
 0x28c   : > { %v941_v37 = vpop.f32.mrf.mxu0 }
 0x28d   : > { %v947_v38 = vsel %vm786_vm2, %v941_v37, -inf }
 0x28e   : > { %948 = vmax.xlane.f32.xlu1 %v947_v38  ;;  %v2900_v39 = vpop.f32.mrf.mxu0 }
 0x290   : > { %v944_v40 = vpop.f32.mrf.mxu0 }
 0x292   : > { %v2901_v41 = vpop.f32.mrf.mxu0 }
 0x29f   : > { %846 = vrot.lane.b32.xlu1 %v3910_v21, %s3615_s22 }
 0x2a4   : > { %v835_v42 = vpop.xlane.xlu1 %834 }
 0x2a5   : > { %v836_v43 = vsub.f32 %v827_v32, %v835_v42 }
 0x2a7   : > { %v837_v44 = vmul.f32 1.442695, %v836_v43 }
 0x2a9   : > { %3230 = vpow2.f32 %v837_v44 }
 0x2b6   : > { %v3231_v45 = vpop.eup %3230 }
 0x2b7   : > { %v839_v46 = vsel %vm786_vm2, %v3231_v45, 0.0 }
 0x2b8   : > { %840 = vadd.xlane.f32.xlu0 %v839_v46 }
 0x317   : > { %v949_v47 = vpop.xlane.xlu1 %948 }
 0x318   : > { %v950_v48 = vsub.f32 %v941_v37, %v949_v47 }
 0x31a   : > { %v951_v49 = vmul.f32 1.442695, %v950_v48 }
 0x31b   : > { %v847_v50 = vpop.permute.xlu1 %846 }
 0x31c   : > { %3232 = vpow2.f32 %v951_v49  ;;  %v853_v51 = vsel %vm851_vm3, %v847_v50, 0 }
 0x31d   : > { %2891 = vmatpush3.bf16.msra.mxu1 %v853_v51  ;;  %v661_v51 = vld [vmem:[#allocation7 + $0x8] sm:$0xf] }
 0x31e   : > { %2902 = vmatprep.subr.bf16.mxu1 %v3612_v0 }
 0x329   : > { %v3233_v52 = vpop.eup %3232 }
 0x32a   : > { %v953_v53 = vsel %vm786_vm2, %v3233_v52, 0.0 }
 0x32b   : > { %954 = vadd.xlane.f32.xlu1 %v953_v53 }
 0x33c   : > { %959 = vrot.lane.b32.xlu1 %v3910_v21, %s3616_s15 }
 0x340   : > { %1102 = vrot.lane.b32.xlu1 %v3910_v21, %s3617_s26 }
 0x341   : > { %v841_v54 = vpop.xlane.xlu0 %840 }
 0x342   : > { %3234 = vrcp.f32 %v841_v54 }
 0x344   : > { %1100 = vrot.lane.b32.xlu1 %v3912_v24, %s3617_s26 }
 0x34f   : > { %v3235_v55 = vpop.eup %3234 }
 0x350   : > { %v3944_v56 = vmul.f32 %v3235_v55, %v3231_v45 }
 0x352   : > { %v844_v57 = vpack.c.bf16 %v3944_v56, %v3944_v56 }
 0x354   : > { %2893 = vmatmul.mubr.msk.bf16.vlgmr.msra.gmra.mxu1 %vm786_vm2, %v844_v57 }
 0x355   : > { %2904 = vmatprep.mubr.msk.bf16.mxu1 %vm3613_vm0, %v3612_v0 }
 0x3b4   : > { %v955_v60 = vpop.xlane.xlu1 %954 }
 0x3b5   : > { %3236 = vrcp.f32 %v955_v60 }
 0x3b8   : > { %v960_v61 = vpop.permute.xlu1 %959 }
 0x3b9   : > { %v965_v62 = vsel %vm851_vm3, %v960_v61, 0 }
 0x3ba   : > { %2903 = vmatpush3.bf16.msra.mxu1 %v965_v62 }
 0x3bb   : > { %2914 = vmatprep.subr.bf16.mxu1 %v3612_v0 }
 0x3bc   : > { %v1103_v15 = vpop.permute.xlu1 %1102 }
 0x3bd   : > { %v1108_v19 = vsel %vm786_vm2, %v1103_v15, 0 }
 0x3c0   : > { %v1101_v23 = vpop.permute.xlu1 %1100 }
 0x3c2   : > { %v3237_v63 = vpop.eup %3236 }
 0x3c3   : > { %v3955_v2 = vmul.f32 %v3237_v63, %v3233_v52  ;;  %v1215_v52 = vsel %vm851_vm3, %v661_v51, 0  ;;  %v3223_v51 = vld [vmem:[#allocation8] sm:$0xff]  }
 0x3c5   : > { %v958_v3 = vpack.c.bf16 %v3955_v2, %v3955_v2 }
 0x3c7   : > { %2905 = vmatmul.mubr.msk.bf16.vlgmr.msra.gmra.mxu1 %vm786_vm2, %v958_v3 }
 0x3c8   : > { %2915 = vmatpush3.bf16.msra.mxu1 %v1058_v4  ;;  %2916 = vmatprep.mubr.msk.bf16.mxu1 %vm3613_vm0, %v3612_v0 }
 0x3c9   : > { %2926 = vmatprep.subr.bf16.mxu1 %v3612_v0 }
 0x414   : > { %v889_v5 = vpop.f32.mrf.mxu1 }
 0x415   : > { %v895_v7 = vpack.c.bf16 %v889_v5, %v889_v5 }
 0x416   : > { %v2894_v8 = vpop.f32.mrf.mxu1 }
 0x417   : > { %2917 = vmatmul.mubr.msk.bf16.vlgmr.msra.gmra.mxu1 %vm786_vm2, %v895_v7 }
 0x418   : > { %v892_v9 = vpop.f32.mrf.mxu1  ;;  %2928 = vmatprep.mubr.msk.bf16.mxu1 %vm3613_vm0, %v3612_v0 }
 0x41a   : > { %v2895_v14 = vpop.f32.mrf.mxu1 }
 0x41b   : > { %v662_v14 = vld [vmem:[#allocation7 + $0xc] sm:$0xf] }
 0x487   : > { %v1001_v16 = vpop.f32.mrf.mxu1 }
 0x488   : > { %v1007_v17 = vpack.c.bf16 %v1001_v16, %v1001_v16  ;;  %v1373_v16 = vsel %vm851_vm3, %v662_v14, 0  ;;  %v1481_v14 = vsub.s32 3, %v3898_v10 }
 0x489   : > { %v2906_v18 = vpop.f32.mrf.mxu1 }
 0x48a   : > { %2911 = vmatmul.mubr.msk.bf16.vlgmr.msra.gmra.mxu0 %vm786_vm2, %v1007_v17 }
 0x48b   : > { %2921 = vmatpush3.bf16.xpose.msra.mxu0 %v1108_v19  ;;  %v1004_v20 = vpop.f32.mrf.mxu1  ;;  %2922 = vmatprep.mubr.msk.bf16.mxu0 %vm3613_vm0, %v3612_v0 }
 0x48c   : > { %2932 = vmatprep.subr.bf16.mxu0 %v3612_v0 }
 0x48d   : > { %v2907_v22 = vpop.f32.mrf.mxu1 }
 0x492   : > { %2923 = vmatmul.mubr.msk.bf16.vlgmr.msra.gmra.mxu0 %vm786_vm2, %v1101_v23 }
 0x493   : > { %2934 = vmatprep.mubr.msk.bf16.mxu0 %vm3613_vm0, %v3612_v0  ;;  %2933 = vmatpush3.bf16.msra.mxu0 %v1215_v52 }
 0x494   : > { %2944 = vmatprep.subr.bf16.mxu0 %v3612_v0 }
 0x4d7   : > { %v3975_v25 = vpop.f32.mrf.mxu1 }
 0x4d9   : > { %v2918_v26 = vpop.f32.mrf.mxu1 }
 0x4db   : > { %v1097_v27 = vpop.f32.mrf.mxu1 }
 0x4dd   : > { %v2919_v28 = vpop.f32.mrf.mxu1 }
 0x54a   : > { %v3977_v29 = vpop.f32.mrf.mxu0 }
 0x54b   : > { %v1095_v8 = vadd.f32 %v3975_v25, %v3977_v29 }
 0x54c   : > { %v2912_v30 = vpop.f32.mrf.mxu0 }
 0x54e   : > { %v1051_v31 = vpop.f32.mrf.mxu0 }
 0x550   : > { %v2913_v32 = vpop.f32.mrf.mxu0 }
 0x551   : > { %v1418_v32 = vsub.s32 2, %v3898_v10 }
 0x552   : > { %v1144_v33 = vpop.f32.mrf.mxu0 }
 0x553   : > { %v1150_v34 = vsel %vm786_vm2, %v1144_v33, -inf }
 0x554   : > { %1151 = vmax.xlane.f32.xlu0 %v1150_v34  ;;  %v2924_v35 = vpop.f32.mrf.mxu0 }
 0x556   : > { %v1147_v36 = vpop.f32.mrf.mxu0 }
 0x558   : > { %v2925_v37 = vpop.f32.mrf.mxu0 }
 0x56a   : > { %1162 = vrot.lane.b32.xlu0 %v3910_v21, %s3618_s20 }
 0x56e   : > { %1260 = vrot.lane.b32.xlu0 %v3910_v21, %s3619_s18 }
 0x572   : > { %1258 = vrot.lane.b32.xlu0 %v3912_v24, %s3619_s18 }
 0x5dd   : > { %v1152_v38 = vpop.xlane.xlu0 %1151 }
 0x5de   : > { %v1153_v39 = vsub.f32 %v1144_v33, %v1152_v38  ;;  %v1419_v33 = vrot.slane %v3901_v12, %v1418_v32 }
 0x5e0   : > { %v1154_v40 = vmul.f32 1.442695, %v1153_v39 }
 0x5e1   : > { %v1163_v41 = vpop.permute.xlu0 %1162 }
 0x5e2   : > { %3238 = vpow2.f32 %v1154_v40  ;;  %v1168_v42 = vsel %vm851_vm3, %v1163_v41, 0 }
 0x5e3   : > { %2927 = vmatpush3.bf16.msra.mxu1 %v1168_v42 }
 0x5e4   : > { %2938 = vmatprep.subr.bf16.mxu1 %v3612_v0 }
 0x5e5   : > { %v1261_v24 = vpop.permute.xlu0 %1260 }
 0x5e6   : > { %v1266_v49 = vsel %vm786_vm2, %v1261_v24, 0  ;;  %v3220_v24 = vld [vmem:[#allocation10 + $0x8] sm:$0xff]  }
 0x5e9   : > { %v1259_v50 = vpop.permute.xlu0 %1258 }
 0x5ef   : > { %v3239_v43 = vpop.eup %3238 }
 0x5f0   : > { %v1156_v44 = vsel %vm786_vm2, %v3239_v43, 0.0 }
 0x5f1   : > { %1157 = vadd.xlane.f32.xlu1 %v1156_v44 }
 0x67a   : > { %v1158_v45 = vpop.xlane.xlu1 %1157 }
 0x67b   : > { %3240 = vrcp.f32 %v1158_v45 }
 0x688   : > { %v3241_v46 = vpop.eup %3240 }
 0x689   : > { %v3989_v47 = vmul.f32 %v3241_v46, %v3239_v43 }
 0x68b   : > { %v1161_v48 = vpack.c.bf16 %v3989_v47, %v3989_v47 }
 0x68d   : > { %2929 = vmatmul.mubr.msk.bf16.vlgmr.msra.gmra.mxu1 %vm786_vm2, %v1161_v48  ;;  %v3221_v48 = vld [vmem:[#allocation10] sm:$0xff]  }
 0x68e   : > { %2939 = vmatpush3.bf16.xpose.msra.mxu1 %v1266_v49  ;;  %2940 = vmatprep.mubr.msk.bf16.mxu1 %vm3613_vm0, %v3612_v0 }
 0x68f   : > { %2950 = vmatprep.subr.bf16.mxu1 %v3612_v0 }
 0x695   : > { %2941 = vmatmul.mubr.msk.bf16.vlgmr.msra.gmra.mxu1 %vm786_vm2, %v1259_v50  ;;  %v3222_v50 = vld [vmem:[#allocation8 + $0x8] sm:$0xff]  }
 0x696   : > { %2952 = vmatprep.mubr.msk.bf16.mxu1 %vm3613_vm0, %v3612_v0  ;;  %2951 = vmatpush3.bf16.msra.mxu1 %v1373_v16 }
 0x697   : > { %2964 = vmatprep.subr.bf16.mxu1 %v3612_v0 }
 0x74d   : > { %v1204_v53 = vpop.f32.mrf.mxu1 }
 0x74e   : > { %v1210_v54 = vpack.c.bf16 %v1204_v53, %v1204_v53 }
 0x74f   : > { %v2930_v55 = vpop.f32.mrf.mxu1 }
 0x750   : > { %2935 = vmatmul.mubr.msk.bf16.vlgmr.msra.gmra.mxu0 %vm786_vm2, %v1210_v54  ;;  %v4044_v55 = vld [vmem:[#allocation13 + $0x8] sm:$0x3f] }
 0x751   : > { %v1207_v57 = vpop.f32.mrf.mxu1  ;;  %2946 = vmatprep.mubr.msk.bf16.mxu0 %vm3613_vm0, %v3612_v0 }
 0x752   : > { %v1457_v57 = vrot.slane %v4044_v55, %v667_v13 }
 0x753   : > { %v2931_v58 = vpop.f32.mrf.mxu1 }
 0x755   : > { %v1302_v59 = vpop.f32.mrf.mxu1 }
 0x756   : > { %v1308_v60 = vsel %vm786_vm2, %v1302_v59, -inf }
 0x757   : > { %1309 = vmax.xlane.f32.xlu0 %v1308_v60  ;;  %v2942_v61 = vpop.f32.mrf.mxu1 }
 0x759   : > { %v1305_v62 = vpop.f32.mrf.mxu1 }
 0x75b   : > { %v2943_v63 = vpop.f32.mrf.mxu1 }
 0x7e0   : > { %v1310_v1 = vpop.xlane.xlu0 %1309 }
 0x7e1   : > { %v1311_v3 = vsub.f32 %v1302_v59, %v1310_v1  ;;  %v1462_v59 = vrot.slane %v4044_v55, %v727_v11  ;;  %v1540_v1 = vsub.s32 4, %v3898_v10 }
 0x7e3   : > { %v1312_v4 = vmul.f32 1.442695, %v1311_v3  ;;  %v1541_v13 = vrot.slane %v3901_v12, %v1540_v1 }
 0x7e5   : > { %3242 = vpow2.f32 %v1312_v4 }
 0x7f2   : > { %v3243_v5 = vpop.eup %3242 }
 0x7f3   : > { %v1314_v7 = vsel %vm786_vm2, %v3243_v5, 0.0 }
 0x7f4   : > { %1315 = vadd.xlane.f32.xlu1 %v1314_v7 }
 0x805   : > { %1320 = vrot.lane.b32.xlu1 %v3910_v21, %s3620_s3 }
 0x810   : > { %v1251_v9 = vpop.f32.mrf.mxu0 }
 0x811   : > { %v1257_v15 = vadd.f32 %v1251_v9, %v1095_v8 }
 0x812   : > { %v2936_v17 = vpop.f32.mrf.mxu0 }
 0x814   : > { %v1254_v18 = vpop.f32.mrf.mxu0 }
 0x816   : > { %v2937_v19 = vpop.f32.mrf.mxu0 }
 0x87d   : > { %v1316_v20 = vpop.xlane.xlu1 %1315 }
 0x87e   : > { %3244 = vrcp.f32 %v1316_v20 }
 0x881   : > { %v1321_v22 = vpop.permute.xlu1 %1320 }
 0x882   : > { %v1326_v23 = vsel %vm851_vm3, %v1321_v22, 0 }
 0x883   : > { %2945 = vmatpush3.bf16.msra.mxu0 %v1326_v23 }
 0x884   : > { %2956 = vmatprep.subr.bf16.mxu0 %v3612_v0 }
 0x88b   : > { %v3245_v21 = vpop.eup %3244 }
 0x88c   : > { %v4016_v25 = vmul.f32 %v3245_v21, %v3243_v5 }
 0x88e   : > { %v1319_v26 = vpack.c.bf16 %v4016_v25, %v4016_v25 }
 0x890   : > { %2947 = vmatmul.mubr.msk.bf16.vlgmr.msra.gmra.mxu0 %vm786_vm2, %v1319_v26 }
 0x891   : > { %2960 = vmatprep.mubr.msk.bf16.mxu0 %vm3613_vm0, %v3612_v0  ;;  %2957 = vmatpush3.bf16.msra.mxu0 %v3222_v50 }
 0x892   : > { %2958 = vmatprep.subr.bf16.mxu0 %v3612_v0 }
 0x895   : > { %2959 = vmatpush3.bf16.msra.mxu0 %v3223_v51 }
 0x896   : > { %2972 = vmatprep.subr.bf16.mxu0 %v3612_v0 }
 0x950   : > { %v1362_v27 = vpop.f32.mrf.mxu0 }
 0x951   : > { %v1368_v28 = vpack.c.bf16 %v1362_v27, %v1362_v27 }
 0x952   : > { %v2948_v29 = vpop.f32.mrf.mxu0 }
 0x953   : > { %2953 = vmatmul.mubr.msk.bf16.vlgmr.msra.gmra.mxu1 %vm786_vm2, %v1368_v28 }
 0x954   : > { %v1365_v30 = vpop.f32.mrf.mxu0  ;;  %2968 = vmatprep.mubr.msk.bf16.mxu1 %vm3613_vm0, %v3612_v0  ;;  %2965 = vmatpush3.bf16.msra.mxu1 %v3220_v24 }
 0x955   : > { %2966 = vmatprep.subr.bf16.mxu1 %v3612_v0 }
 0x956   : > { %v2949_v31 = vpop.f32.mrf.mxu0 }
 0x958   : > { %2967 = vmatpush3.bf16.msra.mxu1 %v3221_v48 }
 0x959   : > { %2978 = vmatprep.subr.bf16.mxu1 %v3612_v0 }
 0xa13   : > { %v1409_v34 = vpop.f32.mrf.mxu1 }
 0xa14   : > { %v1415_v35 = vadd.f32 %v1409_v34, %v1257_v15  ;;  %v1482_v15 = vrot.slane %v3901_v12, %v1481_v14 }
 0xa15   : > { %v2954_v36 = vpop.f32.mrf.mxu1 }
 0xa16   : > { %v1420_v37 = vadd.f32 %v1419_v33, %v1415_v35 }
 0xa17   : > { %v1412_v38 = vpop.f32.mrf.mxu1 }
 0xa18   : > { %v1439_v39 = vadd.f32 %v1420_v37, %v3886_v6  ;;  %v1464_v6 = vld [vmem:[%s645_s28] sm:$0xff]  ;;  %s3622_s28 = smov 16  }
 0xa19   : > { %v2955_v40 = vpop.f32.mrf.mxu1  ;;  %v1478_v49 = vpack.c.bf16 %v1464_v6, %v1464_v6 }
 0xa1a   : > { %v1440_v41 = vsel %vm681_vm1, %v1439_v39, 0.0 }
 0xa1b   : > { %1441 = vadd.xlane.f32.xlu1 %v1440_v41  ;;  %2969 = vmatmul.mubr.msk.bf16.vlgmr.msra.gmra.mxu1 %vm681_vm1, %v1478_v49 }
 0xa1c   : > { %2980 = vmatprep.mubr.msk.bf16.mxu1 %vm3613_vm0, %v3612_v0 }
 0xaa4   : > { %v1442_v42 = vpop.xlane.xlu1 %1441 }
 0xaa5   : > { %v1444_v43 = vmul.f32 0.03125, %v1442_v42 }
 0xaa7   : > { %v1445_v44 = vsub.f32 %v1439_v39, %v1444_v43 }
 0xaa9   : > { %v1446_v45 = vmul.f32 %v1445_v44, %v1445_v44 }
 0xaab   : > { %v1447_v46 = vsel %vm681_vm1, %v1446_v45, 0.0 }
 0xaac   : > { %1448 = vadd.xlane.f32.xlu0 %v1447_v46 }
 0xadb   : > { %v1591_v3 = vpop.f32.mrf.mxu1 }
 0xadc   : > { %v1592_v11 = vadd.f32 %v1591_v3, %v1541_v13 }
 0xadd   : > { %v2970_v4 = vpop.f32.mrf.mxu1 }
 0xade   : > { %v4063_v5 = vpack.c.bf16 %v1592_v11, %v1592_v11 }
 0xadf   : > { %v1594_v7 = vpop.f32.mrf.mxu1 }
 0xae0   : > { %1710 = vrot.lane.b32.xlu0 %v4063_v5, %s3614_s4  ;;  %v1603_v8 = vsel %vm786_vm2, %v4063_v5, 0 }
 0xae1   : > { %v2971_v9 = vpop.f32.mrf.mxu1 }
 0xb35   : > { %v1449_v52 = vpop.xlane.xlu0 %1448 }
 0xb36   : > { %v1450_v53 = vmul.f32 0.03125, %v1449_v52 }
 0xb38   : > { %v1451_v54 = vadd.f32 1e-05, %v1450_v53  ;;  %v1474_v53 = vld [vmem:[#allocation11 + $0x4] sm:$0xf] }
 0xb3a   : > { %3246 = vrsqrt.f32 %v1451_v54  ;;  %v1823_v54 = vsel %vm851_vm3, %v1474_v53, 0  ;;  %v1475_v53 = vld [vmem:[#allocation11 + $0x8] sm:$0xf] }
 0xb47   : > { %v3247_v58 = vpop.eup %3246 }
 0xb48   : > { %v1453_v60 = vmul.f32 %v3247_v58, %v1445_v44 }
 0xb4a   : > { %v1458_v61 = vmul.f32 %v1457_v57, %v1453_v60 }
 0xb4c   : > { %v4052_v62 = vadd.f32 %v1462_v59, %v1458_v61  ;;  %v1473_v61 = vld [vmem:[#allocation11] sm:$0xf] }
 0xb4d   : > { %v1869_v3 = vsel %vm851_vm3, %v1473_v61, 0 }
 0xb4e   : > { %v1477_v63 = vpack.c.bf16 %v4052_v62, %v4052_v62 }
 0xb50   : > { %2961 = vmatmul.mubr.msk.bf16.vlgmr.msra.gmra.mxu0 %vm681_vm1, %v1477_v63 }
 0xb51   : > { %2974 = vmatprep.mubr.msk.bf16.mxu0 %vm3613_vm0, %v3612_v0  ;;  %2973 = vmatpush3.bf16.xpose.msra.mxu0 %v1603_v8 }
 0xb52   : > { %2984 = vmatprep.subr.bf16.mxu0 %v3612_v0  ;;  %v1711_v17 = vpop.permute.xlu0 %1710 }
 0xb53   : > { %v1716_v22 = vsel %vm786_vm2, %v1711_v17, 0 }
 0xc10   : > { %v1532_v16 = vpop.f32.mrf.mxu0 }
 0xc11   : > { %v1533_v18 = vadd.f32 %v1532_v16, %v1482_v15 }
 0xc12   : > { %v2962_v19 = vpop.f32.mrf.mxu0 }
 0xc13   : > { %v4074_v20 = vpack.c.bf16 %v1533_v18, %v1533_v18 }
 0xc14   : > { %v1535_v23 = vpop.f32.mrf.mxu0 }
 0xc15   : > { %1708 = vrot.lane.b32.xlu0 %v4074_v20, %s3614_s4  ;;  %2975 = vmatmul.mubr.msk.bf16.vlgmr.msra.gmra.mxu0 %vm786_vm2, %v4074_v20  ;;  %s2448_s4 = sand.u32 1, %s3733_s19  }
 0xc16   : > { %v2963_v21 = vpop.f32.mrf.mxu0  ;;  %2985 = vmatpush3.bf16.xpose.msra.mxu0 %v1716_v22  ;;  %2986 = vmatprep.mubr.msk.bf16.mxu0 %vm3613_vm0, %v3612_v0 }
 0xc17   : > { %2996 = vmatprep.subr.bf16.mxu0 %v3612_v0 }
 0xc87   : > { %v1709_v26 = vpop.permute.xlu0 %1708 }
 0xc88   : > { %2987 = vmatmul.mubr.msk.bf16.vlgmr.msra.gmra.mxu0 %vm786_vm2, %v1709_v26 }
 0xc89   : > { %2998 = vmatprep.mubr.msk.bf16.mxu0 %vm3613_vm0, %v3612_v0  ;;  %2997 = vmatpush3.bf16.msra.mxu0 %v1823_v54  ;;  %v2026_v54 = vsel %vm851_vm3, %v1475_v53, 0 }
 0xc8a   : > { %3008 = vmatprep.subr.bf16.mxu0 %v3612_v0 }
 0xcd5   : > { %v1639_v27 = vpop.f32.mrf.mxu0 }
 0xcd6   : > { %v1645_v28 = vsel %vm786_vm2, %v1639_v27, -inf }
 0xcd7   : > { %1646 = vmax.xlane.f32.xlu0 %v1645_v28  ;;  %v2976_v29 = vpop.f32.mrf.mxu0 }
 0xcd9   : > { %v1642_v30 = vpop.f32.mrf.mxu0 }
 0xcdb   : > { %v2977_v31 = vpop.f32.mrf.mxu0 }
 0xced   : > { %1913 = vrot.lane.b32.xlu0 %v4063_v5, %s3617_s26 }
 0xd48   : > { %v1752_v33 = vpop.f32.mrf.mxu0 }
 0xd49   : > { %v1758_v34 = vsel %vm786_vm2, %v1752_v33, -inf }
 0xd4a   : > { %1759 = vmax.xlane.f32.xlu1 %v1758_v34  ;;  %v2988_v35 = vpop.f32.mrf.mxu0 }
 0xd4c   : > { %v1755_v36 = vpop.f32.mrf.mxu0 }
 0xd4e   : > { %v2989_v37 = vpop.f32.mrf.mxu0 }
 0xd5b   : > { %1658 = vrot.lane.b32.xlu1 %v4063_v5, %s3615_s22  ;;  %s4247_s22 = sshll.u32 %s3591_s16, 7 }
 0xd60   : > { %v1647_v38 = vpop.xlane.xlu0 %1646 }
 0xd61   : > { %v1648_v39 = vsub.f32 %v1639_v27, %v1647_v38 }
 0xd63   : > { %v1649_v40 = vmul.f32 1.442695, %v1648_v39 }
 0xd64   : > { %v1914_v15 = vpop.permute.xlu0 %1913 }
 0xd65   : > { %3248 = vpow2.f32 %v1649_v40  ;;  %v1919_v19 = vsel %vm786_vm2, %v1914_v15, 0 }
 0xd72   : > { %v3249_v41 = vpop.eup %3248 }
 0xd73   : > { %v1651_v42 = vsel %vm786_vm2, %v3249_v41, 0.0 }
 0xd7f   : > { %1652 = vadd.xlane.f32.xlu1 %v1651_v42 }
 0xdd3   : > { %v1760_v43 = vpop.xlane.xlu1 %1759 }
 0xdd4   : > { %v1761_v44 = vsub.f32 %v1752_v33, %v1760_v43 }
 0xdd6   : > { %v1762_v45 = vmul.f32 1.442695, %v1761_v44 }
 0xdd7   : > { %v1659_v46 = vpop.permute.xlu1 %1658 }
 0xdd8   : > { %3250 = vpow2.f32 %v1762_v45  ;;  %v1664_v24 = vsel %vm851_vm3, %v1659_v46, 0 }
 0xdd9   : > { %2979 = vmatpush3.bf16.msra.mxu1 %v1664_v24 }
 0xdda   : > { %2990 = vmatprep.subr.bf16.mxu1 %v3612_v0 }
 0xde5   : > { %v3251_v48 = vpop.eup %3250 }
 0xde6   : > { %v1764_v6 = vsel %vm786_vm2, %v3251_v48, 0.0 }
 0xde7   : > { %1765 = vadd.xlane.f32.xlu1 %v1764_v6 }
 0xdf8   : > { %1770 = vrot.lane.b32.xlu1 %v4063_v5, %s3616_s15 }
 0xdfc   : > { %1911 = vrot.lane.b32.xlu1 %v4074_v20, %s3617_s26 }
 0xe08   : > { %v1653_v49 = vpop.xlane.xlu1 %1652 }
 0xe09   : > { %3252 = vrcp.f32 %v1653_v49 }
 0xe16   : > { %v3253_v50 = vpop.eup %3252 }
 0xe17   : > { %v4101_v51 = vmul.f32 %v3253_v50, %v3249_v41 }
 0xe19   : > { %v1656_v52 = vpack.c.bf16 %v4101_v51, %v4101_v51 }
 0xe1b   : > { %2981 = vmatmul.mubr.msk.bf16.vlgmr.msra.gmra.mxu1 %vm786_vm2, %v1656_v52 }
 0xe1c   : > { %2992 = vmatprep.mubr.msk.bf16.mxu1 %vm3613_vm0, %v3612_v0 }
 0xe70   : > { %v1766_v57 = vpop.xlane.xlu1 %1765 }
 0xe71   : > { %3254 = vrcp.f32 %v1766_v57 }
 0xe74   : > { %v1771_v58 = vpop.permute.xlu1 %1770 }
 0xe75   : > { %v1776_v59 = vsel %vm851_vm3, %v1771_v58, 0 }
 0xe76   : > { %2991 = vmatpush3.bf16.msra.mxu1 %v1776_v59 }
 0xe77   : > { %3002 = vmatprep.subr.bf16.mxu1 %v3612_v0 }
 0xe78   : > { %v1912_v21 = vpop.permute.xlu1 %1911 }
 0xe7e   : > { %v3255_v60 = vpop.eup %3254 }
 0xe7f   : > { %v4112_v63 = vmul.f32 %v3255_v60, %v3251_v48 }
 0xe81   : > { %v1769_v13 = vpack.c.bf16 %v4112_v63, %v4112_v63 }
 0xe83   : > { %2993 = vmatmul.mubr.msk.bf16.vlgmr.msra.gmra.mxu1 %vm786_vm2, %v1769_v13 }
 0xe84   : > { %3003 = vmatpush3.bf16.msra.mxu1 %v1869_v3  ;;  %3004 = vmatprep.mubr.msk.bf16.mxu1 %vm3613_vm0, %v3612_v0 }
 0xe85   : > { %3014 = vmatprep.subr.bf16.mxu1 %v3612_v0 }
 0xedb   : > { %v1700_v11 = vpop.f32.mrf.mxu1 }
 0xedc   : > { %v1706_v4 = vpack.c.bf16 %v1700_v11, %v1700_v11 }
 0xedd   : > { %v2982_v7 = vpop.f32.mrf.mxu1 }
 0xede   : > { %3005 = vmatmul.mubr.msk.bf16.vlgmr.msra.gmra.mxu1 %vm786_vm2, %v1706_v4 }
 0xedf   : > { %v1703_v8 = vpop.f32.mrf.mxu1  ;;  %3016 = vmatprep.mubr.msk.bf16.mxu1 %vm3613_vm0, %v3612_v0 }
 0xee1   : > { %v2983_v9 = vpop.f32.mrf.mxu1 }
 0xf43   : > { %v1812_v16 = vpop.f32.mrf.mxu1 }
 0xf44   : > { %v1818_v17 = vpack.c.bf16 %v1812_v16, %v1812_v16 }
 0xf45   : > { %v2994_v18 = vpop.f32.mrf.mxu1 }
 0xf46   : > { %2999 = vmatmul.mubr.msk.bf16.vlgmr.msra.gmra.mxu0 %vm786_vm2, %v1818_v17 }
 0xf47   : > { %3009 = vmatpush3.bf16.xpose.msra.mxu0 %v1919_v19  ;;  %v1815_v22 = vpop.f32.mrf.mxu1  ;;  %3010 = vmatprep.mubr.msk.bf16.mxu0 %vm3613_vm0, %v3612_v0 }
 0xf48   : > { %3020 = vmatprep.subr.bf16.mxu0 %v3612_v0 }
 0xf49   : > { %v2995_v23 = vpop.f32.mrf.mxu1 }
 0xf4e   : > { %3011 = vmatmul.mubr.msk.bf16.vlgmr.msra.gmra.mxu0 %vm786_vm2, %v1912_v21  ;;  %v1476_v21 = vld [vmem:[#allocation11 + $0xc] sm:$0xf] }
 0xf4f   : > { %3022 = vmatprep.mubr.msk.bf16.mxu0 %vm3613_vm0, %v3612_v0  ;;  %3021 = vmatpush3.bf16.msra.mxu0 %v2026_v54 }
 0xf50   : > { %3032 = vmatprep.subr.bf16.mxu0 %v3612_v0 }
 0xf9e   : > { %v4132_v26 = vpop.f32.mrf.mxu1 }
 0xfa0   : > { %v3006_v27 = vpop.f32.mrf.mxu1 }
 0xfa1   : > { %v2184_v27 = vsel %vm851_vm3, %v1476_v21, 0 }
 0xfa2   : > { %v1908_v28 = vpop.f32.mrf.mxu1 }
 0xfa4   : > { %v3007_v29 = vpop.f32.mrf.mxu1 }
0x1006   : > { %v4134_v30 = vpop.f32.mrf.mxu0 }
0x1007   : > { %v1906_v22 = vadd.f32 %v4132_v26, %v4134_v30 }
0x1008   : > { %v3000_v31 = vpop.f32.mrf.mxu0 }
0x100a   : > { %v1862_v33 = vpop.f32.mrf.mxu0 }
0x100c   : > { %v3001_v34 = vpop.f32.mrf.mxu0 }
0x100e   : > { %v1955_v35 = vpop.f32.mrf.mxu0 }
0x100f   : > { %v1961_v36 = vsel %vm786_vm2, %v1955_v35, -inf }
0x1010   : > { %1962 = vmax.xlane.f32.xlu1 %v1961_v36  ;;  %v3012_v37 = vpop.f32.mrf.mxu0 }
0x1012   : > { %v1958_v38 = vpop.f32.mrf.mxu0 }
0x1014   : > { %v3013_v39 = vpop.f32.mrf.mxu0 }
0x1021   : > { %1973 = vrot.lane.b32.xlu1 %v4063_v5, %s3618_s20  ;;  %s2480_s20 = scalar_lea.hbm %s4358_s13, %s4247_s22 }
0x1025   : > { %2069 = vrot.lane.b32.xlu1 %v4074_v20, %s3619_s18 }
0x1099   : > { %v1963_v40 = vpop.xlane.xlu1 %1962 }
0x109a   : > { %v1964_v41 = vsub.f32 %v1955_v35, %v1963_v40  ;;  %v2229_v40 = vsub.s32 5, %v3898_v10 }
0x109c   : > { %v1965_v42 = vmul.f32 1.442695, %v1964_v41  ;;  %v2230_v41 = vrot.slane %v3901_v12, %v2229_v40  ;;  %v3224_v12 = vld [vmem:[%s4354_s9 + $0x8] sm:$0xff]  }
0x109d   : > { %v1974_v43 = vpop.permute.xlu1 %1973 }
0x109e   : > { %3256 = vpow2.f32 %v1965_v42  ;;  %v1979_v44 = vsel %vm851_vm3, %v1974_v43, 0 }
0x109f   : > { %3015 = vmatpush3.bf16.msra.mxu1 %v1979_v44 }
0x10a0   : > { %3026 = vmatprep.subr.bf16.mxu1 %v3612_v0 }
0x10a1   : > { %v2070_v52 = vpop.permute.xlu1 %2069 }
0x10ab   : > { %v3257_v45 = vpop.eup %3256 }
0x10ac   : > { %v1967_v46 = vsel %vm786_vm2, %v3257_v45, 0.0 }
0x10ad   : > { %1968 = vadd.xlane.f32.xlu0 %v1967_v46 }
0x10c3   : > { %2071 = vrot.lane.b32.xlu0 %v4063_v5, %s3619_s18  ;;  %s2482_s18 = sshll.u32 %s623_s29, 4  ;;  %s2483_s18 = int_to_ptr.vmem [resolvable:$true] %s2482_s18 }
0x10c4   : > { %s3451_s27 = scalar_lea.vmem %s2483_s18, 128 }
0x10c5   : > { %p3452_p8 = scmp.ne.s32.totalorder %s2483_s18, %s3451_s27 }
0x10c7   : > { %p3453_p11 = pnand %p3452_p8, %p3745_p4 }
0x10c9   : > { %p3454_p5 = pneg %p3453_p11 }
0x1136   : > { %v1969_v24 = vpop.xlane.xlu0 %1968 }
0x1137   : > { %3258 = vrcp.f32 %v1969_v24 }
0x113a   : > { %v2072_v6 = vpop.permute.xlu0 %2071 }
0x113b   : > { %v2077_v50 = vsel %vm786_vm2, %v2072_v6, 0 }
0x1144   : > { %v3259_v20 = vpop.eup %3258 }
0x1145   : > { %v4146_v48 = vmul.f32 %v3259_v20, %v3257_v45 }
0x1147   : > { %v1972_v49 = vpack.c.bf16 %v4146_v48, %v4146_v48 }
0x1149   : > { %3017 = vmatmul.mubr.msk.bf16.vlgmr.msra.gmra.mxu1 %vm786_vm2, %v1972_v49 }
0x114a   : > { %3027 = vmatpush3.bf16.xpose.msra.mxu1 %v2077_v50  ;;  %3028 = vmatprep.mubr.msk.bf16.mxu1 %vm3613_vm0, %v3612_v0 }
0x114b   : > { %3038 = vmatprep.subr.bf16.mxu1 %v3612_v0 }
0x1151   : > { %3029 = vmatmul.mubr.msk.bf16.vlgmr.msra.gmra.mxu1 %vm786_vm2, %v2070_v52 }
0x1152   : > { %3040 = vmatprep.mubr.msk.bf16.mxu1 %vm3613_vm0, %v3612_v0  ;;  %3039 = vmatpush3.bf16.msra.mxu1 %v2184_v27 }
0x1153   : > { %3052 = vmatprep.subr.bf16.mxu1 %v3612_v0 }
0x1209   : > { %v2015_v57 = vpop.f32.mrf.mxu1 }
0x120a   : > { %v2021_v58 = vpack.c.bf16 %v2015_v57, %v2015_v57  ;;  %v3226_v57 = vld [vmem:[%s4355_s10 + $0x18] sm:$0xff]  }
0x120b   : > { %v3018_v59 = vpop.f32.mrf.mxu1 }
0x120c   : > { %3023 = vmatmul.mubr.msk.bf16.vlgmr.msra.gmra.mxu0 %vm786_vm2, %v2021_v58  ;;  %v3227_v58 = vld [vmem:[%s4355_s10 + $0x10] sm:$0xff]  }
0x120d   : > { %v2018_v60 = vpop.f32.mrf.mxu1  ;;  %3034 = vmatprep.mubr.msk.bf16.mxu0 %vm3613_vm0, %v3612_v0 }
0x120f   : > { %v3019_v61 = vpop.f32.mrf.mxu1 }
0x1211   : > { %v2113_v13 = vpop.f32.mrf.mxu1 }
0x1212   : > { %v2119_v3 = vsel %vm786_vm2, %v2113_v13, -inf }
0x1213   : > { %2120 = vmax.xlane.f32.xlu1 %v2119_v3  ;;  %v3030_v11 = vpop.f32.mrf.mxu1 }
0x1214   : > { %v2270_v11 = vrot.slane %v4044_v55, %v1481_v14  ;;  %v2279_v14 = vsub.s32 6, %v3898_v10 }
0x1215   : > { %v2116_v4 = vpop.f32.mrf.mxu1 }
0x1217   : > { %v3031_v7 = vpop.f32.mrf.mxu1 }
0x1224   : > { %2131 = vrot.lane.b32.xlu1 %v4063_v5, %s3620_s3  ;;  %s4253_s3 = scalar_lea.sflag [#allocation16], %s2448_s4 }
0x129c   : > { %v2121_v8 = vpop.xlane.xlu1 %2120 }
0x129d   : > { %v2122_v9 = vsub.f32 %v2113_v13, %v2121_v8  ;;  %v2265_v13 = vrot.slane %v4044_v55, %v1418_v32  ;;  %v3229_v32 = vld [vmem:[%s4355_s10] sm:$0xff]  }
0x129f   : > { %v2123_v15 = vmul.f32 1.442695, %v2122_v9 }
0x12a0   : > { %v2132_v16 = vpop.permute.xlu1 %2131 }
0x12a1   : > { %3260 = vpow2.f32 %v2123_v15  ;;  %v2137_v17 = vsel %vm851_vm3, %v2132_v16, 0  ;;  %v3228_v15 = vld [vmem:[%s4355_s10 + $0x8] sm:$0xff]   ;;  %v3268_v16 = vld [vmem:[#allocation13] sm:$0xff] }
0x12a2   : > { %3033 = vmatpush3.bf16.msra.mxu0 %v2137_v17  ;;  %v2280_v17 = vrot.slane %v3268_v16, %v2279_v14 }
0x12a3   : > { %3044 = vmatprep.subr.bf16.mxu0 %v3612_v0 }
0x12ae   : > { %v3261_v18 = vpop.eup %3260 }
0x12af   : > { %v2125_v19 = vsel %vm786_vm2, %v3261_v18, 0.0 }
0x12b0   : > { %2126 = vadd.xlane.f32.xlu0 %v2125_v19 }
0x12cc   : > { %v2062_v23 = vpop.f32.mrf.mxu0 }
0x12cd   : > { %v2068_v5 = vadd.f32 %v2062_v23, %v1906_v22 }
0x12ce   : > { %v3024_v28 = vpop.f32.mrf.mxu0 }
0x12d0   : > { %v2065_v29 = vpop.f32.mrf.mxu0 }
0x12d2   : > { %v3025_v31 = vpop.f32.mrf.mxu0 }
0x1339   : > { %v2127_v33 = vpop.xlane.xlu0 %2126 }
0x133a   : > { %3262 = vrcp.f32 %v2127_v33 }
0x1347   : > { %v3263_v34 = vpop.eup %3262 }
0x1348   : > { %v4173_v35 = vmul.f32 %v3263_v34, %v3261_v18 }
0x134a   : > { %v2130_v36 = vpack.c.bf16 %v4173_v35, %v4173_v35 }
0x134c   : > { %3035 = vmatmul.mubr.msk.bf16.vlgmr.msra.gmra.mxu0 %vm786_vm2, %v2130_v36 }
0x134d   : > { %3048 = vmatprep.mubr.msk.bf16.mxu0 %vm3613_vm0, %v3612_v0  ;;  %3045 = vmatpush3.bf16.msra.mxu0 %v3224_v12 }
0x134e   : > { %3046 = vmatprep.subr.bf16.mxu0 %v3612_v0 }
0x140c   : > { %v2173_v26 = vpop.f32.mrf.mxu0 }
0x140d   : > { %v2179_v30 = vpack.c.bf16 %v2173_v26, %v2173_v26 }
0x140e   : > { %v3036_v37 = vpop.f32.mrf.mxu0 }
0x140f   : > { %3041 = vmatmul.mubr.msk.bf16.vlgmr.msra.gmra.mxu1 %vm786_vm2, %v2179_v30 }
0x1410   : > { %v2176_v38 = vpop.f32.mrf.mxu0  ;;  %3060 = vmatprep.mubr.msk.bf16.mxu1 %vm3613_vm0, %v3612_v0  ;;  %3053 = vmatpush3.bf16.msra.mxu1 %v3226_v57 }
0x1411   : > { %3054 = vmatprep.subr.bf16.mxu1 %v3612_v0 }
0x1412   : > { %v3037_v39 = vpop.f32.mrf.mxu0 }
0x1414   : > { %3055 = vmatpush3.bf16.msra.mxu1 %v3227_v58 }
0x1415   : > { %3056 = vmatprep.subr.bf16.mxu1 %v3612_v0 }
0x1418   : > { %3057 = vmatpush3.bf16.msra.mxu1 %v3228_v15 }
0x1419   : > { %3058 = vmatprep.subr.bf16.mxu1 %v3612_v0  ;;  %v2348_v0 = vsub.s32 7, %v3898_v10 }
0x141b   : > { %v2349_v28 = vrot.slane %v3268_v16, %v2348_v0 }
0x141c   : > { %3059 = vmatpush3.bf16.msra.mxu1 %v3229_v32 }
0x14cf   : > { %v2220_v42 = vpop.f32.mrf.mxu1 }
0x14d0   : > { %v2226_v43 = vadd.f32 %v2220_v42, %v2068_v5 }
0x14d1   : > { %v3042_v44 = vpop.f32.mrf.mxu1 }
0x14d2   : > { %v2231_v45 = vadd.f32 %v2230_v41, %v2226_v43 }
0x14d3   : > { %v2223_v46 = vpop.f32.mrf.mxu1 }
0x14d4   : > { %v2248_v24 = vadd.f32 %v2231_v45, %v4052_v62  ;;  %v3225_v62 = vld [vmem:[%s4354_s9] sm:$0xff]  }
0x14d5   : > { %v3043_v20 = vpop.f32.mrf.mxu1  ;;  %3047 = vmatpush3.bf16.msra.mxu0 %v3225_v62 }
0x14d6   : > { %v2249_v6 = vsel %vm681_vm1, %v2248_v24, 0.0 }
0x14d7   : > { %2250 = vadd.xlane.f32.xlu0 %v2249_v6 }
0x1560   : > { %v2251_v49 = vpop.xlane.xlu0 %2250 }
0x1561   : > { %v2252_v50 = vmul.f32 0.03125, %v2251_v49 }
0x1563   : > { %v2253_v52 = vsub.f32 %v2248_v24, %v2252_v50 }
0x1565   : > { %v2254_v53 = vmul.f32 %v2253_v52, %v2253_v52 }
0x1567   : > { %v2255_v54 = vsel %vm681_vm1, %v2254_v53, 0.0 }
0x1568   : > { %2256 = vadd.xlane.f32.xlu0 %v2255_v54 }
0x15f1   : > { %v2257_v59 = vpop.xlane.xlu0 %2256 }
0x15f2   : > { %v2258_v60 = vmul.f32 0.03125, %v2257_v59 }
0x15f4   : > { %v2259_v61 = vadd.f32 1e-05, %v2258_v60 }
0x15f6   : > { %3264 = vrsqrt.f32 %v2259_v61 }
0x1603   : > { %v3265_v3 = vpop.eup %3264 }
0x1604   : > { %v2261_v4 = vmul.f32 %v3265_v3, %v2253_v52 }
0x1606   : > { %v2266_v7 = vmul.f32 %v2265_v13, %v2261_v4 }
0x1608   : > { %v2271_v8 = vadd.f32 %v2270_v11, %v2266_v7 }
0x160a   : > { %v2272_v9 = vpack.c.bf16 %v2271_v8, %v2271_v8 }
0x160c   : > { %3049 = vmatmul.mubr.msk.bf16.vlgmr.msra.gmra.mxu0 %vm681_vm1, %v2272_v9 }
0x16cc   : > { %v2330_v18 = vpop.f32.mrf.mxu0 }
0x16cd   : > { %v2331_v19 = vadd.f32 %v2330_v18, %v2280_v17 }
0x16ce   : > { %v3050_v22 = vpop.f32.mrf.mxu0 }
0x16cf   : > { %v2336_v23 = vmax.f32 %v2331_v19, 0.0 }
0x16d0   : > { %v2333_v21 = vpop.f32.mrf.mxu0 }
0x16d1   : > { %v2337_v5 = vpack.c.bf16 %v2336_v23, %v2336_v23 }
0x16d2   : > { %v3051_v27 = vpop.f32.mrf.mxu0 }
0x16d3   : > { %3061 = vmatmul.mubr.msk.bf16.vlgmr.msra.gmra.mxu1 %vm2374_vm4, %v2337_v5 }
0x1793   : > { %v2412_v29 = vpop.f32.mrf.mxu1 }
0x1794   : > { %v2413_v31 = vadd.f32 %v2412_v29, %v2349_v28 }
0x1795   : > { %v3062_v33 = vpop.f32.mrf.mxu1 }
0x1796   : > { %v2418_v34 = vadd.f32 %v2413_v31, %v2271_v8 }
0x1797   : > { %v2415_v36 = vpop.f32.mrf.mxu1 }
0x1798   : > { %v2419_v26 = vsel %vm681_vm1, %v2418_v34, 0.0 }
0x1799   : > { %2420 = vadd.xlane.f32.xlu0 %v2419_v26  ;;  %v3063_v30 = vpop.f32.mrf.mxu1 }
0x17af   : > { %1422 = vrot.lane.b32.xlu0 %v3955_v2, %s3621_s24 }
0x17b3   : > { %1426 = vrot.lane.b32.xlu0 %v3989_v47, %s3622_s28 }
0x17b7   : > { %2233 = vrot.lane.b32.xlu0 %v4112_v63, %s3621_s24  ;;  %s3624_s24 = smov [#allocation15]  }
0x17bb   : > { %1430 = vrot.lane.b32.xlu0 %v4016_v25, %s3623_s17 }
0x17bf   : > { %2237 = vrot.lane.b32.xlu0 %v4146_v48, %s3622_s28  ;;  %s3455_s28 = sshll.u32 %s3624_s24, 4  ;;  %s3456_s28 = int_to_ptr.vmem [resolvable:$false] %s3455_s28 }
0x17c0   : > { %s3457_s19 = scalar_lea.vmem %s3456_s28, 256  ;;  %p3458_p2 = scmp.lt.s32.totalorder %s2483_s18, %s3456_s28 }
0x17c1   : > { %p3459_p3 = scmp.lt.s32.totalorder %s3457_s19, %s3451_s27 }
0x17c3   : > { %p3460_p0 = por %p3459_p3, %p3458_p2 }
0x17c5   : > { %p3461_p6 = pnand %p3460_p0, %p3454_p5 }
0x1822   : > { %v2421_v37 = vpop.xlane.xlu0 %2420 }
0x1823   : > { %v2422_v38 = vmul.f32 0.03125, %v2421_v37 }
0x1825   : > { %v4227_v39 = vsub.f32 %v2418_v34, %v2422_v38 }
0x1826   : > { %v1423_v41 = vpop.permute.xlu0 %1422 }
0x1827   : > { %v2424_v42 = vmul.f32 %v4227_v39, %v4227_v39  ;;  %v1433_v25 = vsel %vm786_vm2, %v3944_v56, %v1423_v41 }
0x1829   : > { %v2425_v2 = vsel %vm681_vm1, %v2424_v42, 0.0 }
0x182a   : > { %2426 = vadd.xlane.f32.xlu1 %v2425_v2  ;;  %v1427_v43 = vpop.permute.xlu0 %1426 }
0x182b   : > { %v1435_v63 = vsel %vm1434_vm5, %v1433_v25, %v1427_v43 }
0x182e   : > { %v2234_v47 = vpop.permute.xlu0 %2233 }
0x182f   : > { %v2244_v45 = vsel %vm786_vm2, %v4101_v51, %v2234_v47 }
0x1832   : > { %v1431_v48 = vpop.permute.xlu0 %1430 }
0x1833   : > { %v1437_v44 = vsel %vm1436_vm6, %v1435_v63, %v1431_v48 }
0x1834   : > { %1438 = vst.msk [vmem:[%s623_s29] sm:$0xff] %vm681_vm1, %v1437_v44 }
0x1836   : > { %v2238_v46 = vpop.permute.xlu0 %2237 }
0x1837   : > { %v2245_v24 = vsel %vm1434_vm5, %v2244_v45, %v2238_v46 }
0x183b   : > { %2241 = vrot.lane.b32.xlu1 %v4173_v35, %s3623_s17 }
0x183c   : > { %3464 = shalt.err (!%p3461_p6)
}
0x183d   : > { %s3465_s16 = scalar_lea.hbm %s2480_s20, 128  ;;  %s3469_s4 = scalar_lea.hbm %s4358_s13, 256 }
0x183e   : > { %p3466_p7 = scmp.ne.s32.totalorder %s2480_s20, %s3465_s16  ;;  %p3470_p10 = scmp.lt.s32.totalorder %s2480_s20, %s4358_s13 }
0x183f   : > { %p3471_p1 = scmp.lt.s32.totalorder %s3469_s4, %s3465_s16 }
0x1840   : > { %p3467_p9 = pnand %p3466_p7, %p3745_p4 }
0x1841   : > { %p3472_p12 = por %p3471_p1, %p3470_p10 }
0x1842   : > { %p3468_p13 = pneg %p3467_p9 }
0x1844   : > { %p3473_p8 = pnand %p3472_p12, %p3468_p13 }
0x1846   : > { %3476 = shalt.err (!%p3473_p8)
}
0x1847   : > { %3093 = dma.vmem_to_hbm [thread:$0]  (%p3745_p4), %s2483_s18, 128, %s2480_s20, %s4253_s3  }
0x1848   : > { %s630_s27 = scalar_lea.vmem [#allocation17], %s4235_s25  ;;  %s4273_s16 = scalar_lea.hbm %s4359_s14, %s4247_s22 }
0x1849   : > { %s2496_s24 = sshll.u32 %s630_s27, 4  ;;  %s3625_s20 = smov [#allocation17]   ;;  %s2497_s24 = int_to_ptr.vmem [resolvable:$true] %s2496_s24 }
0x184a   : > { %s3477_s17 = scalar_lea.vmem %s2497_s24, 128  ;;  %s3481_s18 = sshll.u32 %s3625_s20, 4  ;;  %s3482_s18 = int_to_ptr.vmem [resolvable:$false] %s3481_s18 }
0x184b   : > { %p3478_p11 = scmp.ne.s32.totalorder %s2497_s24, %s3477_s17  ;;  %s3483_s29 = scalar_lea.vmem %s3482_s18, 256 }
0x184c   : > { %p3484_p3 = scmp.lt.s32.totalorder %s2497_s24, %s3482_s18  ;;  %p3485_p0 = scmp.lt.s32.totalorder %s3483_s29, %s3477_s17 }
0x184d   : > { %p3479_p5 = pnand %p3478_p11, %p3745_p4 }
0x184e   : > { %p3486_p6 = por %p3485_p0, %p3484_p3 }
0x184f   : > { %p3480_p2 = pneg %p3479_p5 }
0x1851   : > { %p3487_p7 = pnand %p3486_p6, %p3480_p2 }
0x18b3   : > { %v2427_v56 = vpop.xlane.xlu1 %2426 }
0x18b4   : > { %v2428_v51 = vmul.f32 0.03125, %v2427_v56 }
0x18b6   : > { %v2429_v35 = vadd.f32 1e-05, %v2428_v51 }
0x18b7   : > { %v2242_v20 = vpop.permute.xlu1 %2241 }
0x18b8   : > { %3266 = vrsqrt.f32 %v2429_v35  ;;  %v2246_v6 = vsel %vm1436_vm6, %v2245_v24, %v2242_v20 }
0x18b9   : > { %2247 = vst.msk [vmem:[%s630_s27] sm:$0xff] %vm681_vm1, %v2246_v6 }
0x18ba   : > { %3490 = shalt.err (!%p3487_p7)
}
0x18bb   : > { %s3491_s4 = scalar_lea.hbm %s4273_s16, 128  ;;  %s3495_s27 = scalar_lea.hbm %s4359_s14, 256 }
0x18bc   : > { %p3492_p9 = scmp.ne.s32.totalorder %s4273_s16, %s3491_s4  ;;  %p3496_p1 = scmp.lt.s32.totalorder %s4273_s16, %s4359_s14 }
0x18bd   : > { %p3497_p12 = scmp.lt.s32.totalorder %s3495_s27, %s3491_s4 }
0x18be   : > { %p3493_p13 = pnand %p3492_p9, %p3745_p4 }
0x18bf   : > { %p3498_p8 = por %p3497_p12, %p3496_p1 }
0x18c0   : > { %p3494_p10 = pneg %p3493_p13 }
0x18c2   : > { %p3499_p11 = pnand %p3498_p8, %p3494_p10 }
0x18c4   : > { %3502 = shalt.err (!%p3499_p11)
}
0x18c5   : > { %3094 = dma.vmem_to_hbm [thread:$0]  (%p3745_p4), %s2497_s24, 128, %s4273_s16, %s4253_s3   ;;  %v2435_v49 = vrot.slane %v4044_v55, %v1540_v1  ;;  %v3267_v50 = vpop.eup %3266  ;;  %v2440_v52 = vrot.slane %v4044_v55, %v2229_v40 }
0x18c6   : > { %v2431_v53 = vmul.f32 %v3267_v50, %v4227_v39  ;;  %s616_s17 = scalar_lea.vmem [#allocation14], %s4235_s25  ;;  %s2466_s4 = scalar_lea.hbm %s4357_s12, %s4247_s22 }
0x18c7   : > { %s2468_s20 = sshll.u32 %s616_s17, 4  ;;  %s2444_s3 = scalar_lea.sflag [#allocation4], %s614_s21  ;;  %s2469_s20 = int_to_ptr.vmem [resolvable:$true] %s2468_s20 }
0x18c8   : > { %v2436_v54 = vmul.f32 %v2435_v49, %v2431_v53  ;;  %s3503_s24 = scalar_lea.vmem %s2469_s20, 128  ;;  %s3626_s16 = smov [#allocation14]  }
0x18c9   : > { %p3504_p5 = scmp.ne.s32.totalorder %s2469_s20, %s3503_s24  ;;  %s3507_s15 = sshll.u32 %s3626_s16, 4  ;;  %s3508_s15 = int_to_ptr.vmem [resolvable:$false] %s3507_s15 }
0x18ca   : > { %v2441_v12 = vadd.f32 %v2440_v52, %v2436_v54  ;;  %s3509_s25 = scalar_lea.vmem %s3508_s15, 256  ;;  %p3510_p0 = scmp.lt.s32.totalorder %s2469_s20, %s3508_s15 }
0x18cb   : > { %p3505_p2 = pnand %p3504_p5, %p3745_p4  ;;  %p3511_p6 = scmp.lt.s32.totalorder %s3509_s25, %s3503_s24 }
0x18cc   : > { %2442 = vst.msk [vmem:[%s616_s17] sm:$0xff] %vm681_vm1, %v2441_v12 }
0x18cd   : > { %p3506_p3 = pneg %p3505_p2  ;;  %p3512_p7 = por %p3511_p6, %p3510_p0 }
0x18cf   : > { %p3513_p9 = pnand %p3512_p7, %p3506_p3 }
0x18d1   : > { %3516 = shalt.err (!%p3513_p9)
}
0x18d2   : > { %s3517_s22 = scalar_lea.hbm %s2466_s4, 128  ;;  %s3521_s27 = scalar_lea.hbm %s4357_s12, 256 }
0x18d3   : > { %p3518_p13 = scmp.ne.s32.totalorder %s2466_s4, %s3517_s22  ;;  %p3522_p12 = scmp.lt.s32.totalorder %s2466_s4, %s4357_s12 }
0x18d4   : > { %p3523_p8 = scmp.lt.s32.totalorder %s3521_s27, %s3517_s22 }
0x18d5   : > { %p3519_p10 = pnand %p3518_p13, %p3745_p4 }
0x18d6   : > { %p3524_p11 = por %p3523_p8, %p3522_p12 }
0x18d7   : > { %p3520_p1 = pneg %p3519_p10 }
0x18d9   : > { %p3525_p5 = pnand %p3524_p11, %p3520_p1 }
0x18db   : > { %3528 = shalt.err (!%p3525_p5)
}
0x18dc   : > { %3092 = dma.vmem_to_hbm [thread:$0]  (%p3745_p4), %s2469_s20, 128, %s2466_s4, %s2444_s3  }
0x18dd PF: > { %s4393_s17 = sld [smem:[#allocation27_spill]] }
0x18de   : > { %s4394_s18 = sld [smem:[#allocation24_spill]] }
0x18df   : > { %s4395_s29 = sld [smem:[#allocation29_spill]] }
0x18e3   : > { %p3144_p2 = scmp.ge.s32.totalorder %s4393_s17, 2 }
0x18e4   : > { %s2508_s24 = sand.u32 1, %s4394_s18  }
0x18e5   : > { %p4396_p3 = scmp.ne.s32.totalorder %s4395_s29, 0  ;;  %s2509_s16 = scalar_lea.sflag [#allocation4], %s2508_s24 }
0x18e7   : > { %p3121_p0 = pnand %p3144_p2, %p4396_p3 }
0x18e9   : > { %p3122_p6 = pneg %p3121_p0 }
0x18eb   : > { %3570 = dma.done.wait (%p3122_p6), %s2509_s16, 128  }
0x18ec   : > { %3572 = vsyncadd (%p3122_p6), %s2509_s16, 4294967168  ;;  %s4397_s15 = sadd.s32 4294967294, %s4393_s17  }
0x18ed   : > { %s2517_s25 = sand.u32 1, %s4397_s15  }
0x18ee   : > { %s2518_s22 = scalar_lea.sflag [#allocation16], %s2517_s25 }
0x18ef   : > { %3574 = dma.done.wait (%p3122_p6), %s2518_s22, 256  }
0x18f0   : > { %3576 = vsyncadd (%p3122_p6), %s2518_s22, 4294967040  ;;  %s35_s18 = sadd.s32 1, %s4393_s17   ;;  %s4398_s23 = sld [smem:[#allocation25_spill]] }
0x18f1   : > { %p32_p4 = scmp.ge.s32.totalorder %s35_s18, 4   ;;  %s4399_s15 = sld [smem:[#allocation30_spill]] }
0x18f2   : > { %s4400_s16 = sld [smem:[#allocation26_spill]]  ;;  %s4402_s29 = smov %s3583_s30 }
0x18f3   : > { %s4401_s17 = sld [smem:[#allocation28_spill]]  ;;  %34 = sbr.rel (!%p32_p4) target bundleno = 13 (0xd), region = 170 }
0x18f6   : > { %s4403_s30 = smov %s4398_s23 }
0x18f8   :  { %2532 = vsyncpa [#allocation3], 1 }
0x18f9   :  { %2534 = vsyncpa [#allocation3 + $0x1], 1 }
0x18fa   :  { %2535 = vsyncpa [#allocation6], 1 }
0x18fb   :  { %2536 = vsyncpa [#allocation9], 1 }
0x18fc   :  { %2537 = vsyncpa [#allocation12], 1 }
0x18fd   :  { %2538 = vsyncpa [#allocation4], 1 }
0x18fe   :  { %2540 = vsyncpa [#allocation4 + $0x1], 1 }
0x18ff   :  { %2541 = vsyncpa [#allocation16], 1 }
0x1900   :  { %2543 = vsyncpa [#allocation16 + $0x1], 1 }

// kernel: tpu_custom_call.1
= control target key start
LH: loop header
LB: loop body
LE: loop exit
PB: predicated region body
PF: predicated region fallthrough
CT: control target
= control target key end

     0   :  { %s4345_s0 = inlined_call_operand.vmem [shape: f32[2,8,32], index: 0, kind: input, shape index: {}]   ;;  %s4346_s1 = inlined_call_operand.vmem [shape: f32[2,8,32], index: 1, kind: input, shape index: {}]   ;;  %s4347_s2 = inlined_call_operand.vmem [shape: f32[2,8,32], index: 2, kind: input, shape index: {}]   ;;  %s4348_s3 = inlined_call_operand.hbm [shape: bf16[32,32], index: 3, kind: input, shape index: {}]   ;;  %s4349_s4 = inlined_call_operand.hbm [shape: bf16[32,64], index: 4, kind: input, shape index: {}]   ;;  %s4350_s5 = inlined_call_operand.hbm [shape: bf16[32,32], index: 5, kind: input, shape index: {}]   ;;  %s4351_s6 = inlined_call_operand.hbm [shape: bf16[32,32], index: 6, kind: input, shape index: {}]   ;;  %s4352_s7 = inlined_call_operand.hbm [shape: bf16[32,64], index: 7, kind: input, shape index: {}]   ;;  %s4353_s8 = inlined_call_operand.hbm [shape: bf16[32,32], index: 8, kind: input, shape index: {}]   ;;  %s4354_s9 = inlined_call_operand.vmem [shape: bf16[32,64], index: 9, kind: input, shape index: {}]   ;;  %s4355_s10 = inlined_call_operand.vmem [shape: bf16[64,32], index: 10, kind: input, shape index: {}]   ;;  %s4356_s11 = inlined_call_operand.hbm [shape: f32[14,64], index: 11, kind: input, shape index: {}]   ;;  %s4357_s12 = inlined_call_operand.hbm [shape: f32[2,8,32], index: 12, kind: output, shape index: {0}]   ;;  %s4358_s13 = inlined_call_operand.hbm [shape: f32[2,8,32], index: 13, kind: output, shape index: {1}]   ;;  %s4359_s14 = inlined_call_operand.hbm [shape: f32[2,8,32], index: 14, kind: output, shape index: {2}]  }
   0x1   :  { %4369 = sst [smem:[#allocation31_spill]] %s4348_s3 }
   0x2   :  { %4370 = sst [smem:[#allocation32_spill]] %s4349_s4 }
   0x3   :  { %20 = vsyncpa [#allocation3], 0 }
   0x4   :  { %21 = vsyncpa [#allocation6], 0 }
   0x5   :  { %22 = vsyncpa [#allocation9], 0 }
   0x6   :  { %23 = vsyncpa [#allocation12], 0 }
   0x7   :  { %24 = vsyncpa [#allocation4], 0 }
   0x8   :  { %26 = vsyncpa [#allocation4 + $0x1], 0 }
   0x9   :  { %27 = vsyncpa [#allocation16], 0 }
   0xa   :  { %29 = vsyncpa [#allocation16 + $0x1], 0  ;;  %s3702_s29 = smov 0   ;;  %s3704_s30 = smov 0  }
   0xb   :  { %s3706_s15 = smov 0   ;;  %s3708_s16 = smov 0  }
   0xc   :  { %s3710_s17 = smov 0   ;;  %s3712_s18 = smov 0  }
   0xd LB: > { %4371 = sst [smem:[#allocation24_spill]] %s3579_s29  ;;  %s3733_s19 = sadd.s32 4294967295, %s3599_s18   ;;  %s3599_s18 = sphi %s3712_s18, %s35_s18   ;;  %s3595_s17 = sphi %s3710_s17, %s4401_s17   ;;  %s3591_s16 = sphi %s3708_s16, %s4400_s16   ;;  %s3587_s15 = sphi %s3706_s15, %s4399_s15   ;;  %s3583_s30 = sphi %s3704_s30, %s4403_s30   ;;  %s3579_s29 = sphi %s3702_s29, %s4402_s29  }
   0xe   : > { %4372 = sst [smem:[#allocation25_spill]] %s3587_s15  ;;  %s4360_s20 = sadd.s32 4294967294, %s3599_s18  }
   0xf   : > { %4373 = sst [smem:[#allocation26_spill]] %s3595_s17  ;;  %s47_s21 = sadd.s32 1, %s3595_s17 }
  0x10   : > { %4374 = sst [smem:[#allocation27_spill]] %s3599_s18  ;;  %s325_s22 = sadd.s32 1, %s3587_s15 }
  0x11   : > { %p49_p0 = scmp.ge.s32.totalorder %s47_s21, 2  ;;  %p335_p1 = scmp.ne.s32.totalorder %s3587_s15, %s3583_s30 }
  0x12   : > { %p336_p2 = scmp.eq.s32.totalorder %s3733_s19, 1  ;;  %p341_p3 = scmp.ne.s32.totalorder %s3583_s30, %s3579_s29 }
  0x13   : > { %s4405_s21 = smov (%p49_p0, %s47_s21), 0  ;;  %p342_p5 = scmp.eq.s32.totalorder %s4360_s20, 1 }
  0x14   : > { %4375 = sst [smem:[#allocation28_spill]] %s4405_s21  ;;  %p3745_p4 = por %p336_p2, %p335_p1 }
  0x15   : > { %s320_s24 = ssub.s32 %s3595_s17, %s4405_s21  ;;  %p2725_p6 = scmp.ge.s32.totalorder %s3599_s18, 1 }
  0x16   : > { %p323_p7 = scmp.eq.s32.totalorder %s320_s24, 0  ;;  %p3754_p8 = por %p342_p5, %p341_p3 }
  0x17   : > { %p405_p9 = scmp.lt.s32.totalorder %s3599_s18, 3  ;;  %p4368_p11 = scmp.eq.s32.totalorder %s3733_s19, 0 }
  0x18   : > { %s4377_s25 = scalar_select %p3754_p8, 1, 0 }
  0x19   : > { %s3760_s26 = scalar_select %p323_p7, %s3587_s15, %s325_s22  }
  0x1a   : > { %4378 = sst [smem:[#allocation29_spill]] %s4377_s25  ;;  %p3762_p10 = pnand %p2725_p6, %p405_p9 }
  0x1b   : > { %4379 = sst [smem:[#allocation30_spill]] %s3760_s26  ;;  %s3601_s28 = smov [#allocation5]  }
  0x1c   : > { %p3098_p12 = pneg %p3762_p10  ;;  %s430_s20 = sshll.u32 %s3601_s28, 4  ;;  %s431_s20 = int_to_ptr.vmem [resolvable:$true] %s430_s20 }
  0x1d   : > { %s3602_s21 = smov [#allocation8]   ;;  %s3280_s26 = scalar_lea.vmem %s431_s20, 256 }
  0x1e   : > { %p3771_p13 = pnand %p4368_p11, %p3098_p12  ;;  %s456_s22 = sshll.u32 %s3602_s21, 4  ;;  %s457_s22 = int_to_ptr.vmem [resolvable:$true] %s456_s22 }
  0x1f   : > { %p3281_p1 = scmp.ne.s32.totalorder %s431_s20, %s3280_s26  ;;  %p3288_p5 = scmp.lt.s32.totalorder %s431_s20, %s431_s20 }
  0x20   : > { %p3777_p0 = pneg %p3771_p13  ;;  %p3289_p6 = scmp.lt.s32.totalorder %s3280_s26, %s3280_s26 }
  0x22   : > { %p3283_p2 = pnand %p3281_p1, %p3777_p0  ;;  %p3290_p7 = por %p3289_p6, %p3288_p5 }
  0x24   : > { %p3284_p3 = pneg %p3283_p2 }
  0x26   : > { %p3291_p9 = pnand %p3290_p7, %p3284_p3 }
  0x28   : > { %3294 = shalt.err (!%p3291_p9)
}
  0x29   : > { %s3603_s28 = smov 64   ;;  %s3604_s21 = smov 4  }
  0x2a   : > { %s4383_s4 = sld [smem:[#allocation32_spill]]  ;;  %s3306_s29 = scalar_lea.vmem %s457_s22, 256 }
  0x2b   : > { %p3307_p12 = scmp.ne.s32.totalorder %s457_s22, %s3306_s29  ;;  %p3314_p5 = scmp.lt.s32.totalorder %s457_s22, %s457_s22 }
  0x2c   : > { %p3315_p3 = scmp.lt.s32.totalorder %s3306_s29, %s3306_s29 }
  0x2d   : > { %p3309_p1 = pnand %p3307_p12, %p3777_p0 }
  0x2e   : > { %p3316_p6 = por %p3315_p3, %p3314_p5 }
  0x2f   : > { %p3310_p2 = pneg %p3309_p1 }
  0x30   : > { %3104 = dma.hbm_to_vmem [thread:$0]  (!%p3771_p13), %s4383_s4, 256, %s431_s20, [#allocation6], %s3603_s28, %s3603_s28, %s3604_s21  }
  0x31   : > { %p3317_p7 = pnand %p3316_p6, %p3310_p2 }
  0x33   : > { %3320 = shalt.err (!%p3317_p7)
}
  0x34   : > { %3110 = dma.hbm_to_vmem [thread:$0]  (!%p3771_p13), %s4351_s6, 256, %s457_s22, [#allocation9], %s3603_s28, %s3603_s28, %s3604_s21  }
  0x35   : > { %s3605_s15 = smov [#allocation11]  }
  0x36   : > { %s482_s20 = sshll.u32 %s3605_s15, 4  ;;  %s483_s20 = int_to_ptr.vmem [resolvable:$true] %s482_s20 }
  0x37   : > { %s3332_s25 = scalar_lea.vmem %s483_s20, 256  ;;  %p3340_p2 = scmp.lt.s32.totalorder %s483_s20, %s483_s20 }
  0x38   : > { %p3333_p9 = scmp.ne.s32.totalorder %s483_s20, %s3332_s25  ;;  %p3341_p5 = scmp.lt.s32.totalorder %s3332_s25, %s3332_s25 }
  0x3a   : > { %p3335_p12 = pnand %p3333_p9, %p3777_p0  ;;  %p3342_p3 = por %p3341_p5, %p3340_p2 }
  0x3c   : > { %p3336_p1 = pneg %p3335_p12 }
  0x3e   : > { %p3343_p6 = pnand %p3342_p3, %p3336_p1 }
  0x40   : > { %3346 = shalt.err (!%p3343_p6)
}
  0x41   : > { %3116 = dma.hbm_to_vmem [thread:$0]  (!%p3771_p13), %s4353_s8, 256, %s483_s20, [#allocation12], %s3603_s28, %s3603_s28, %s3604_s21  }
  0x42   : > { %s3606_s22 = smov [#allocation2]   ;;  %s3607_s15 = smov [#allocation7]  }
  0x43   : > { %s417_s26 = sshll.u32 %s3606_s22, 4  ;;  %s443_s4 = sshll.u32 %s3607_s15, 4  ;;  %s418_s26 = int_to_ptr.vmem [resolvable:$true] %s417_s26  ;;  %s444_s4 = int_to_ptr.vmem [resolvable:$true] %s443_s4 }
  0x44   : > { %s3358_s25 = scalar_lea.vmem %s418_s26, 256  ;;  %p3366_p1 = scmp.lt.s32.totalorder %s418_s26, %s418_s26 }
  0x45   : > { %p3359_p7 = scmp.ne.s32.totalorder %s418_s26, %s3358_s25  ;;  %p3367_p2 = scmp.lt.s32.totalorder %s3358_s25, %s3358_s25 }
  0x47   : > { %p3361_p9 = pnand %p3359_p7, %p3777_p0  ;;  %p3368_p5 = por %p3367_p2, %p3366_p1 }
  0x49   : > { %p3362_p12 = pneg %p3361_p9 }
  0x4b   : > { %p3369_p3 = pnand %p3368_p5, %p3362_p12 }
  0x4d   : > { %3372 = shalt.err (!%p3369_p3)
}
  0x4e   : > { %s4384_s3 = sld [smem:[#allocation31_spill]]  ;;  %s3384_s18 = scalar_lea.vmem %s444_s4, 256 }
  0x4f   : > { %p3385_p6 = scmp.ne.s32.totalorder %s444_s4, %s3384_s18  ;;  %p3392_p11 = scmp.lt.s32.totalorder %s444_s4, %s444_s4 }
  0x50   : > { %p3393_p8 = scmp.lt.s32.totalorder %s3384_s18, %s3384_s18 }
  0x51   : > { %p3387_p7 = pnand %p3385_p6, %p3777_p0 }
  0x52   : > { %p3394_p1 = por %p3393_p8, %p3392_p11 }
  0x53   : > { %p3388_p9 = pneg %p3387_p7 }
  0x54   : > { %3101 = dma.hbm_to_vmem [thread:$0]  (!%p3771_p13), %s4384_s3, 256, %s418_s26, [#allocation3], %s3603_s28, %s3603_s28, %s3604_s21  }
  0x55   : > { %p3395_p12 = pnand %p3394_p1, %p3388_p9 }
  0x57   : > { %3398 = shalt.err (!%p3395_p12)
}
  0x58   : > { %3107 = dma.hbm_to_vmem [thread:$0]  (!%p3771_p13), %s4350_s5, 256, %s444_s4, [#allocation6], %s3603_s28, %s3603_s28, %s3604_s21  }
  0x59   : > { %s3608_s26 = smov [#allocation10]   ;;  %s3609_s20 = smov [#allocation13]  }
  0x5a   : > { %s469_s25 = sshll.u32 %s3608_s26, 4  ;;  %s501_s29 = sshll.u32 %s3609_s20, 4  ;;  %s470_s25 = int_to_ptr.vmem [resolvable:$true] %s469_s25  ;;  %s502_s29 = int_to_ptr.vmem [resolvable:$true] %s501_s29 }
  0x5b   : > { %s3410_s18 = scalar_lea.vmem %s470_s25, 256  ;;  %p3418_p5 = scmp.lt.s32.totalorder %s470_s25, %s470_s25 }
  0x5c   : > { %p3411_p8 = scmp.ne.s32.totalorder %s470_s25, %s3410_s18  ;;  %p3419_p3 = scmp.lt.s32.totalorder %s3410_s18, %s3410_s18 }
  0x5e   : > { %p3413_p11 = pnand %p3411_p8, %p3777_p0  ;;  %p3420_p6 = por %p3419_p3, %p3418_p5 }
  0x60   : > { %p3414_p2 = pneg %p3413_p11 }
  0x62   : > { %p3421_p7 = pnand %p3420_p6, %p3414_p2 }
  0x64   : > { %3424 = shalt.err (!%p3421_p7)
}
  0x65   : > { %3113 = dma.hbm_to_vmem [thread:$0]  (!%p3771_p13), %s4352_s7, 256, %s470_s25, [#allocation9], %s3603_s28, %s3603_s28, %s3604_s21  }
  0x66   : > { %s3436_s15 = scalar_lea.vmem %s502_s29, 256  ;;  %p3444_p8 = scmp.lt.s32.totalorder %s502_s29, %s502_s29 }
  0x67   : > { %p3437_p9 = scmp.ne.s32.totalorder %s502_s29, %s3436_s15  ;;  %p3445_p11 = scmp.lt.s32.totalorder %s3436_s15, %s3436_s15 }
  0x69   : > { %p3439_p1 = pnand %p3437_p9, %p3777_p0  ;;  %p3446_p5 = por %p3445_p11, %p3444_p8 }
  0x6b   : > { %p3440_p12 = pneg %p3439_p1 }
  0x6d   : > { %p3447_p2 = pnand %p3446_p5, %p3440_p12 }
  0x6f   : > { %3450 = shalt.err (!%p3447_p2)
}
  0x70   : > { %s3610_s26 = smov 128   ;;  %s3611_s20 = smov 8  }
  0x71   : > { %3119 = dma.hbm_to_vmem [thread:$0]  (!%p3771_p13), %s4356_s11, 256, %s502_s29, [#allocation12], %s3610_s26, %s3610_s26, %s3611_s20  }
  0x72   : > { %541 = sbr.rel (%p3762_p10) target bundleno = 6365 (0x18dd), region = 68  ;;  %p4385_p3 = scmp.eq.s32.totalorder (!%p3762_p10), %s3733_s19, 0 }
  0x77   : > { %3554 = dma.done.wait (%p4385_p3), [#allocation3], 256   ;;  %p4386_p0 = pmov %p4385_p3 }
  0x79   : > { %3556 = vsyncadd (%p4386_p0), [#allocation3], 4294967040  ;;  %p4387_p6 = pmov %p4386_p0 }
  0x7a   : > { %p4388_p7 = pmov %p4386_p0 }
  0x7b   : > { %3558 = dma.done.wait (%p4387_p6), [#allocation6], 512  }
  0x7c   : > { %3560 = vsyncadd (%p4388_p7), [#allocation6], 4294966784  ;;  %p4389_p9 = pmov %p4386_p0 }
  0x7d   : > { %p4390_p13 = pmov %p4386_p0 }
  0x7e   : > { %3562 = dma.done.wait (%p4389_p9), [#allocation9], 512  }
  0x7f   : > { %3564 = vsyncadd (%p4390_p13), [#allocation9], 4294966784  ;;  %p4391_p10 = pmov %p4386_p0 }
  0x80   : > { %p4392_p1 = pmov %p4386_p0 }
  0x81   : > { %3566 = dma.done.wait (%p4391_p10), [#allocation12], 512  }
  0x82   : > { %3568 = vsyncadd (%p4392_p1), [#allocation12], 4294966784  ;;  %p631_p12 = scmp.lt.s32.totalorder %s3591_s16, 1  ;;  %v3612_v0 = vmov 0.0   ;;  %vm3613_vm0 = vmmov 0   ;;  %v3216_v1 = vld [vmem:[#allocation5 + $0x8] sm:$0xff]   ;;  %v665_v9 = vlaneseq }
  0x83   : > { %2876 = vmatprep.subr.bf16.mxu1 %v3612_v0  ;;  %2868 = vmatprep.subr.bf16.mxu0 %v3612_v0  ;;  %v3217_v2 = vld [vmem:[#allocation2 + $0x8] sm:$0xff]   ;;  %v3218_v3 = vld [vmem:[#allocation5] sm:$0xff]   ;;  %v3219_v4 = vld [vmem:[#allocation2] sm:$0xff]   ;;  %vm681_vm1 = vcmask 261120   ;;  %vm786_vm2 = vcmask 64512   ;;  %s3614_s4 = smov 120  }
  0x84   : > { %2880 = vmatprep.mubr.msk.bf16.mxu1 %vm3613_vm0, %v3612_v0  ;;  %s632_s3 = scalar_select %p631_p12, %s3591_s16, 1  ;;  %2872 = vmatprep.mubr.msk.bf16.mxu0 %vm3613_vm0, %v3612_v0  ;;  %v3898_v10 = vshrl.u32 %v665_v9, 7  ;;  %v3901_v12 = vld [vmem:[#allocation13] sm:$0xff]  ;;  %vm851_vm3 = vcmask 1043456   ;;  %vm2374_vm4 = vcmask 523264   ;;  %vm1434_vm5 = vcmask 130048  }
  0x85   : > { %2877 = vmatpush3.bf16.msra.mxu1 %v3216_v1  ;;  %2869 = vmatpush3.bf16.msra.mxu0 %v3217_v2  ;;  %s3615_s22 = smov 96   ;;  %s3616_s15 = smov 88   ;;  %v660_v58 = vld [vmem:[#allocation7 + $0x4] sm:$0xf]  ;;  %v659_v1 = vld [vmem:[#allocation7] sm:$0xf] }
  0x86   : > { %s3874_s17 = sshll.u32 %s632_s3, 3  ;;  %2878 = vmatprep.subr.bf16.mxu1 %v3612_v0  ;;  %2870 = vmatprep.subr.bf16.mxu0 %v3612_v0  ;;  %v727_v11 = vsub.s32 1, %v3898_v10  ;;  %v667_v13 = vsub.s32 0, %v3898_v10  ;;  %s3617_s26 = smov 112   ;;  %v1012_v59 = vsel %vm851_vm3, %v660_v58, 0  ;;  %vm1436_vm6 = vcmask 195584  }
  0x87   : > { %s641_s28 = scalar_lea.vmem %s4346_s1, %s3874_s17  ;;  %s637_s29 = scalar_lea.vmem %s4345_s0, %s3874_s17 }
  0x88   : > { %v650_v5 = vld [vmem:[%s641_s28] sm:$0xff]  ;;  %v728_v14 = vrot.slane %v3901_v12, %v727_v11  ;;  %v668_v15 = vrot.slane %v3901_v12, %v667_v13  ;;  %s3618_s20 = smov 80   ;;  %s3619_s18 = smov 104  }
  0x89   : > { %v3886_v6 = vld [vmem:[%s637_s29] sm:$0xff]  ;;  %v664_v7 = vpack.c.bf16 %v650_v5, %v650_v5  ;;  %2879 = vmatpush3.bf16.msra.mxu1 %v3218_v3  ;;  %2871 = vmatpush3.bf16.msra.mxu0 %v3219_v4  ;;  %v1058_v4 = vsel %vm851_vm3, %v659_v1, 0  ;;  %s3620_s3 = smov 72   ;;  %s645_s28 = scalar_lea.vmem %s4347_s2, %s3874_s17 }
  0x8a   : > { %v663_v8 = vpack.c.bf16 %v3886_v6, %v3886_v6  ;;  %2890 = vmatprep.subr.bf16.mxu1 %v3612_v0  ;;  %2884 = vmatprep.subr.bf16.mxu0 %v3612_v0  ;;  %s3621_s24 = smov 8   ;;  %s3623_s17 = smov 24  }
  0x8b   : > { %s614_s21 = sand.u32 1, %s3583_s30  }
  0x8c   : > { %2881 = vmatmul.mubr.msk.bf16.vlgmr.msra.gmra.mxu1 %vm681_vm1, %v664_v7  ;;  %2873 = vmatmul.mubr.msk.bf16.vlgmr.msra.gmra.mxu0 %vm681_vm1, %v663_v8  ;;  %s4235_s25 = sshll.u32 %s614_s21, 3 }
  0x8d   : > { %2892 = vmatprep.mubr.msk.bf16.mxu1 %vm3613_vm0, %v3612_v0  ;;  %2886 = vmatprep.mubr.msk.bf16.mxu0 %vm3613_vm0, %v3612_v0  ;;  %s623_s29 = scalar_lea.vmem [#allocation15], %s4235_s25 }
 0x14c   : > { %v778_v16 = vpop.f32.mrf.mxu1  ;;  %v719_v18 = vpop.f32.mrf.mxu0 }
 0x14d   : > { %v779_v17 = vadd.f32 %v778_v16, %v728_v14  ;;  %v720_v20 = vadd.f32 %v719_v18, %v668_v15 }
 0x14e   : > { %v2882_v19 = vpop.f32.mrf.mxu1  ;;  %v2874_v22 = vpop.f32.mrf.mxu0 }
 0x14f   : > { %v3910_v21 = vpack.c.bf16 %v779_v17, %v779_v17  ;;  %v3912_v24 = vpack.c.bf16 %v720_v20, %v720_v20 }
 0x150   : > { %v781_v23 = vpop.f32.mrf.mxu1  ;;  %v722_v26 = vpop.f32.mrf.mxu0 }
 0x151   : > { %899 = vrot.lane.b32.xlu0 %v3910_v21, %s3614_s4  ;;  %v791_v25 = vsel %vm786_vm2, %v3910_v21, 0 }
 0x152   : > { %v2883_v27 = vpop.f32.mrf.mxu1  ;;  %2885 = vmatpush3.bf16.xpose.msra.mxu0 %v791_v25  ;;  %v2875_v28 = vpop.f32.mrf.mxu0 }
 0x153   : > { %2896 = vmatprep.subr.bf16.mxu0 %v3612_v0 }
 0x155   : > { %897 = vrot.lane.b32.xlu0 %v3912_v24, %s3614_s4 }
 0x159   : > { %2887 = vmatmul.mubr.msk.bf16.vlgmr.msra.gmra.mxu0 %vm786_vm2, %v3912_v24 }
 0x15a   : > { %2898 = vmatprep.mubr.msk.bf16.mxu0 %vm3613_vm0, %v3612_v0 }
 0x1c3   : > { %v900_v29 = vpop.permute.xlu0 %899 }
 0x1c4   : > { %v905_v30 = vsel %vm786_vm2, %v900_v29, 0 }
 0x1c5   : > { %2897 = vmatpush3.bf16.xpose.msra.mxu0 %v905_v30 }
 0x1c6   : > { %2908 = vmatprep.subr.bf16.mxu0 %v3612_v0 }
 0x1c7   : > { %v898_v31 = vpop.permute.xlu0 %897 }
 0x1cc   : > { %2899 = vmatmul.mubr.msk.bf16.vlgmr.msra.gmra.mxu0 %vm786_vm2, %v898_v31 }
 0x1cd   : > { %2910 = vmatprep.mubr.msk.bf16.mxu0 %vm3613_vm0, %v3612_v0  ;;  %2909 = vmatpush3.bf16.msra.mxu0 %v1012_v59 }
 0x1ce   : > { %2920 = vmatprep.subr.bf16.mxu0 %v3612_v0 }
 0x219   : > { %v827_v32 = vpop.f32.mrf.mxu0 }
 0x21a   : > { %v833_v33 = vsel %vm786_vm2, %v827_v32, -inf }
 0x21b   : > { %834 = vmax.xlane.f32.xlu1 %v833_v33  ;;  %v2888_v34 = vpop.f32.mrf.mxu0 }
 0x21d   : > { %v830_v35 = vpop.f32.mrf.mxu0 }
 0x21f   : > { %v2889_v36 = vpop.f32.mrf.mxu0 }
 0x28c   : > { %v941_v37 = vpop.f32.mrf.mxu0 }
 0x28d   : > { %v947_v38 = vsel %vm786_vm2, %v941_v37, -inf }
 0x28e   : > { %948 = vmax.xlane.f32.xlu1 %v947_v38  ;;  %v2900_v39 = vpop.f32.mrf.mxu0 }
 0x290   : > { %v944_v40 = vpop.f32.mrf.mxu0 }
 0x292   : > { %v2901_v41 = vpop.f32.mrf.mxu0 }
 0x29f   : > { %846 = vrot.lane.b32.xlu1 %v3910_v21, %s3615_s22 }
 0x2a4   : > { %v835_v42 = vpop.xlane.xlu1 %834 }
 0x2a5   : > { %v836_v43 = vsub.f32 %v827_v32, %v835_v42 }
 0x2a7   : > { %v837_v44 = vmul.f32 1.442695, %v836_v43 }
 0x2a9   : > { %3230 = vpow2.f32 %v837_v44 }
 0x2b6   : > { %v3231_v45 = vpop.eup %3230 }
 0x2b7   : > { %v839_v46 = vsel %vm786_vm2, %v3231_v45, 0.0 }
 0x2b8   : > { %840 = vadd.xlane.f32.xlu0 %v839_v46 }
 0x317   : > { %v949_v47 = vpop.xlane.xlu1 %948 }
 0x318   : > { %v950_v48 = vsub.f32 %v941_v37, %v949_v47 }
 0x31a   : > { %v951_v49 = vmul.f32 1.442695, %v950_v48 }
 0x31b   : > { %v847_v50 = vpop.permute.xlu1 %846 }
 0x31c   : > { %3232 = vpow2.f32 %v951_v49  ;;  %v853_v51 = vsel %vm851_vm3, %v847_v50, 0 }
 0x31d   : > { %2891 = vmatpush3.bf16.msra.mxu1 %v853_v51  ;;  %v661_v51 = vld [vmem:[#allocation7 + $0x8] sm:$0xf] }
 0x31e   : > { %2902 = vmatprep.subr.bf16.mxu1 %v3612_v0 }
 0x329   : > { %v3233_v52 = vpop.eup %3232 }
 0x32a   : > { %v953_v53 = vsel %vm786_vm2, %v3233_v52, 0.0 }
 0x32b   : > { %954 = vadd.xlane.f32.xlu1 %v953_v53 }
 0x33c   : > { %959 = vrot.lane.b32.xlu1 %v3910_v21, %s3616_s15 }
 0x340   : > { %1102 = vrot.lane.b32.xlu1 %v3910_v21, %s3617_s26 }
 0x341   : > { %v841_v54 = vpop.xlane.xlu0 %840 }
 0x342   : > { %3234 = vrcp.f32 %v841_v54 }
 0x344   : > { %1100 = vrot.lane.b32.xlu1 %v3912_v24, %s3617_s26 }
 0x34f   : > { %v3235_v55 = vpop.eup %3234 }
 0x350   : > { %v3944_v56 = vmul.f32 %v3235_v55, %v3231_v45 }
 0x352   : > { %v844_v57 = vpack.c.bf16 %v3944_v56, %v3944_v56 }
 0x354   : > { %2893 = vmatmul.mubr.msk.bf16.vlgmr.msra.gmra.mxu1 %vm786_vm2, %v844_v57 }
 0x355   : > { %2904 = vmatprep.mubr.msk.bf16.mxu1 %vm3613_vm0, %v3612_v0 }
 0x3b4   : > { %v955_v60 = vpop.xlane.xlu1 %954 }
 0x3b5   : > { %3236 = vrcp.f32 %v955_v60 }
 0x3b8   : > { %v960_v61 = vpop.permute.xlu1 %959 }
 0x3b9   : > { %v965_v62 = vsel %vm851_vm3, %v960_v61, 0 }
 0x3ba   : > { %2903 = vmatpush3.bf16.msra.mxu1 %v965_v62 }
 0x3bb   : > { %2914 = vmatprep.subr.bf16.mxu1 %v3612_v0 }
 0x3bc   : > { %v1103_v15 = vpop.permute.xlu1 %1102 }
 0x3bd   : > { %v1108_v19 = vsel %vm786_vm2, %v1103_v15, 0 }
 0x3c0   : > { %v1101_v23 = vpop.permute.xlu1 %1100 }
 0x3c2   : > { %v3237_v63 = vpop.eup %3236 }
 0x3c3   : > { %v3955_v2 = vmul.f32 %v3237_v63, %v3233_v52  ;;  %v1215_v52 = vsel %vm851_vm3, %v661_v51, 0  ;;  %v3223_v51 = vld [vmem:[#allocation8] sm:$0xff]  }
 0x3c5   : > { %v958_v3 = vpack.c.bf16 %v3955_v2, %v3955_v2 }
 0x3c7   : > { %2905 = vmatmul.mubr.msk.bf16.vlgmr.msra.gmra.mxu1 %vm786_vm2, %v958_v3 }
 0x3c8   : > { %2915 = vmatpush3.bf16.msra.mxu1 %v1058_v4  ;;  %2916 = vmatprep.mubr.msk.bf16.mxu1 %vm3613_vm0, %v3612_v0 }
 0x3c9   : > { %2926 = vmatprep.subr.bf16.mxu1 %v3612_v0 }
 0x414   : > { %v889_v5 = vpop.f32.mrf.mxu1 }
 0x415   : > { %v895_v7 = vpack.c.bf16 %v889_v5, %v889_v5 }
 0x416   : > { %v2894_v8 = vpop.f32.mrf.mxu1 }
 0x417   : > { %2917 = vmatmul.mubr.msk.bf16.vlgmr.msra.gmra.mxu1 %vm786_vm2, %v895_v7 }
 0x418   : > { %v892_v9 = vpop.f32.mrf.mxu1  ;;  %2928 = vmatprep.mubr.msk.bf16.mxu1 %vm3613_vm0, %v3612_v0 }
 0x41a   : > { %v2895_v14 = vpop.f32.mrf.mxu1 }
 0x41b   : > { %v662_v14 = vld [vmem:[#allocation7 + $0xc] sm:$0xf] }
 0x487   : > { %v1001_v16 = vpop.f32.mrf.mxu1 }
 0x488   : > { %v1007_v17 = vpack.c.bf16 %v1001_v16, %v1001_v16  ;;  %v1373_v16 = vsel %vm851_vm3, %v662_v14, 0  ;;  %v1481_v14 = vsub.s32 3, %v3898_v10 }
 0x489   : > { %v2906_v18 = vpop.f32.mrf.mxu1 }
 0x48a   : > { %2911 = vmatmul.mubr.msk.bf16.vlgmr.msra.gmra.mxu0 %vm786_vm2, %v1007_v17 }
 0x48b   : > { %2921 = vmatpush3.bf16.xpose.msra.mxu0 %v1108_v19  ;;  %v1004_v20 = vpop.f32.mrf.mxu1  ;;  %2922 = vmatprep.mubr.msk.bf16.mxu0 %vm3613_vm0, %v3612_v0 }
 0x48c   : > { %2932 = vmatprep.subr.bf16.mxu0 %v3612_v0 }
 0x48d   : > { %v2907_v22 = vpop.f32.mrf.mxu1 }
 0x492   : > { %2923 = vmatmul.mubr.msk.bf16.vlgmr.msra.gmra.mxu0 %vm786_vm2, %v1101_v23 }
 0x493   : > { %2934 = vmatprep.mubr.msk.bf16.mxu0 %vm3613_vm0, %v3612_v0  ;;  %2933 = vmatpush3.bf16.msra.mxu0 %v1215_v52 }
 0x494   : > { %2944 = vmatprep.subr.bf16.mxu0 %v3612_v0 }
 0x4d7   : > { %v3975_v25 = vpop.f32.mrf.mxu1 }
 0x4d9   : > { %v2918_v26 = vpop.f32.mrf.mxu1 }
 0x4db   : > { %v1097_v27 = vpop.f32.mrf.mxu1 }
 0x4dd   : > { %v2919_v28 = vpop.f32.mrf.mxu1 }
 0x54a   : > { %v3977_v29 = vpop.f32.mrf.mxu0 }
 0x54b   : > { %v1095_v8 = vadd.f32 %v3975_v25, %v3977_v29 }
 0x54c   : > { %v2912_v30 = vpop.f32.mrf.mxu0 }
 0x54e   : > { %v1051_v31 = vpop.f32.mrf.mxu0 }
 0x550   : > { %v2913_v32 = vpop.f32.mrf.mxu0 }
 0x551   : > { %v1418_v32 = vsub.s32 2, %v3898_v10 }
 0x552   : > { %v1144_v33 = vpop.f32.mrf.mxu0 }
 0x553   : > { %v1150_v34 = vsel %vm786_vm2, %v1144_v33, -inf }
 0x554   : > { %1151 = vmax.xlane.f32.xlu0 %v1150_v34  ;;  %v2924_v35 = vpop.f32.mrf.mxu0 }
 0x556   : > { %v1147_v36 = vpop.f32.mrf.mxu0 }
 0x558   : > { %v2925_v37 = vpop.f32.mrf.mxu0 }
 0x56a   : > { %1162 = vrot.lane.b32.xlu0 %v3910_v21, %s3618_s20 }
 0x56e   : > { %1260 = vrot.lane.b32.xlu0 %v3910_v21, %s3619_s18 }
 0x572   : > { %1258 = vrot.lane.b32.xlu0 %v3912_v24, %s3619_s18 }
 0x5dd   : > { %v1152_v38 = vpop.xlane.xlu0 %1151 }
 0x5de   : > { %v1153_v39 = vsub.f32 %v1144_v33, %v1152_v38  ;;  %v1419_v33 = vrot.slane %v3901_v12, %v1418_v32 }
 0x5e0   : > { %v1154_v40 = vmul.f32 1.442695, %v1153_v39 }
 0x5e1   : > { %v1163_v41 = vpop.permute.xlu0 %1162 }
 0x5e2   : > { %3238 = vpow2.f32 %v1154_v40  ;;  %v1168_v42 = vsel %vm851_vm3, %v1163_v41, 0 }
 0x5e3   : > { %2927 = vmatpush3.bf16.msra.mxu1 %v1168_v42 }
 0x5e4   : > { %2938 = vmatprep.subr.bf16.mxu1 %v3612_v0 }
 0x5e5   : > { %v1261_v24 = vpop.permute.xlu0 %1260 }
 0x5e6   : > { %v1266_v49 = vsel %vm786_vm2, %v1261_v24, 0  ;;  %v3220_v24 = vld [vmem:[#allocation10 + $0x8] sm:$0xff]  }
 0x5e9   : > { %v1259_v50 = vpop.permute.xlu0 %1258 }
 0x5ef   : > { %v3239_v43 = vpop.eup %3238 }
 0x5f0   : > { %v1156_v44 = vsel %vm786_vm2, %v3239_v43, 0.0 }
 0x5f1   : > { %1157 = vadd.xlane.f32.xlu1 %v1156_v44 }
 0x67a   : > { %v1158_v45 = vpop.xlane.xlu1 %1157 }
 0x67b   : > { %3240 = vrcp.f32 %v1158_v45 }
 0x688   : > { %v3241_v46 = vpop.eup %3240 }
 0x689   : > { %v3989_v47 = vmul.f32 %v3241_v46, %v3239_v43 }
 0x68b   : > { %v1161_v48 = vpack.c.bf16 %v3989_v47, %v3989_v47 }
 0x68d   : > { %2929 = vmatmul.mubr.msk.bf16.vlgmr.msra.gmra.mxu1 %vm786_vm2, %v1161_v48  ;;  %v3221_v48 = vld [vmem:[#allocation10] sm:$0xff]  }
 0x68e   : > { %2939 = vmatpush3.bf16.xpose.msra.mxu1 %v1266_v49  ;;  %2940 = vmatprep.mubr.msk.bf16.mxu1 %vm3613_vm0, %v3612_v0 }
 0x68f   : > { %2950 = vmatprep.subr.bf16.mxu1 %v3612_v0 }
 0x695   : > { %2941 = vmatmul.mubr.msk.bf16.vlgmr.msra.gmra.mxu1 %vm786_vm2, %v1259_v50  ;;  %v3222_v50 = vld [vmem:[#allocation8 + $0x8] sm:$0xff]  }
 0x696   : > { %2952 = vmatprep.mubr.msk.bf16.mxu1 %vm3613_vm0, %v3612_v0  ;;  %2951 = vmatpush3.bf16.msra.mxu1 %v1373_v16 }
 0x697   : > { %2964 = vmatprep.subr.bf16.mxu1 %v3612_v0 }
 0x74d   : > { %v1204_v53 = vpop.f32.mrf.mxu1 }
 0x74e   : > { %v1210_v54 = vpack.c.bf16 %v1204_v53, %v1204_v53 }
 0x74f   : > { %v2930_v55 = vpop.f32.mrf.mxu1 }
 0x750   : > { %2935 = vmatmul.mubr.msk.bf16.vlgmr.msra.gmra.mxu0 %vm786_vm2, %v1210_v54  ;;  %v4044_v55 = vld [vmem:[#allocation13 + $0x8] sm:$0x3f] }
 0x751   : > { %v1207_v57 = vpop.f32.mrf.mxu1  ;;  %2946 = vmatprep.mubr.msk.bf16.mxu0 %vm3613_vm0, %v3612_v0 }
 0x752   : > { %v1457_v57 = vrot.slane %v4044_v55, %v667_v13 }
 0x753   : > { %v2931_v58 = vpop.f32.mrf.mxu1 }
 0x755   : > { %v1302_v59 = vpop.f32.mrf.mxu1 }
 0x756   : > { %v1308_v60 = vsel %vm786_vm2, %v1302_v59, -inf }
 0x757   : > { %1309 = vmax.xlane.f32.xlu0 %v1308_v60  ;;  %v2942_v61 = vpop.f32.mrf.mxu1 }
 0x759   : > { %v1305_v62 = vpop.f32.mrf.mxu1 }
 0x75b   : > { %v2943_v63 = vpop.f32.mrf.mxu1 }
 0x7e0   : > { %v1310_v1 = vpop.xlane.xlu0 %1309 }
 0x7e1   : > { %v1311_v3 = vsub.f32 %v1302_v59, %v1310_v1  ;;  %v1462_v59 = vrot.slane %v4044_v55, %v727_v11  ;;  %v1540_v1 = vsub.s32 4, %v3898_v10 }
 0x7e3   : > { %v1312_v4 = vmul.f32 1.442695, %v1311_v3  ;;  %v1541_v13 = vrot.slane %v3901_v12, %v1540_v1 }
 0x7e5   : > { %3242 = vpow2.f32 %v1312_v4 }
 0x7f2   : > { %v3243_v5 = vpop.eup %3242 }
 0x7f3   : > { %v1314_v7 = vsel %vm786_vm2, %v3243_v5, 0.0 }
 0x7f4   : > { %1315 = vadd.xlane.f32.xlu1 %v1314_v7 }
 0x805   : > { %1320 = vrot.lane.b32.xlu1 %v3910_v21, %s3620_s3 }
 0x810   : > { %v1251_v9 = vpop.f32.mrf.mxu0 }
 0x811   : > { %v1257_v15 = vadd.f32 %v1251_v9, %v1095_v8 }
 0x812   : > { %v2936_v17 = vpop.f32.mrf.mxu0 }
 0x814   : > { %v1254_v18 = vpop.f32.mrf.mxu0 }
 0x816   : > { %v2937_v19 = vpop.f32.mrf.mxu0 }
 0x87d   : > { %v1316_v20 = vpop.xlane.xlu1 %1315 }
 0x87e   : > { %3244 = vrcp.f32 %v1316_v20 }
 0x881   : > { %v1321_v22 = vpop.permute.xlu1 %1320 }
 0x882   : > { %v1326_v23 = vsel %vm851_vm3, %v1321_v22, 0 }
 0x883   : > { %2945 = vmatpush3.bf16.msra.mxu0 %v1326_v23 }
 0x884   : > { %2956 = vmatprep.subr.bf16.mxu0 %v3612_v0 }
 0x88b   : > { %v3245_v21 = vpop.eup %3244 }
 0x88c   : > { %v4016_v25 = vmul.f32 %v3245_v21, %v3243_v5 }
 0x88e   : > { %v1319_v26 = vpack.c.bf16 %v4016_v25, %v4016_v25 }
 0x890   : > { %2947 = vmatmul.mubr.msk.bf16.vlgmr.msra.gmra.mxu0 %vm786_vm2, %v1319_v26 }
 0x891   : > { %2960 = vmatprep.mubr.msk.bf16.mxu0 %vm3613_vm0, %v3612_v0  ;;  %2957 = vmatpush3.bf16.msra.mxu0 %v3222_v50 }
 0x892   : > { %2958 = vmatprep.subr.bf16.mxu0 %v3612_v0 }
 0x895   : > { %2959 = vmatpush3.bf16.msra.mxu0 %v3223_v51 }
 0x896   : > { %2972 = vmatprep.subr.bf16.mxu0 %v3612_v0 }
 0x950   : > { %v1362_v27 = vpop.f32.mrf.mxu0 }
 0x951   : > { %v1368_v28 = vpack.c.bf16 %v1362_v27, %v1362_v27 }
 0x952   : > { %v2948_v29 = vpop.f32.mrf.mxu0 }
 0x953   : > { %2953 = vmatmul.mubr.msk.bf16.vlgmr.msra.gmra.mxu1 %vm786_vm2, %v1368_v28 }
 0x954   : > { %v1365_v30 = vpop.f32.mrf.mxu0  ;;  %2968 = vmatprep.mubr.msk.bf16.mxu1 %vm3613_vm0, %v3612_v0  ;;  %2965 = vmatpush3.bf16.msra.mxu1 %v3220_v24 }
 0x955   : > { %2966 = vmatprep.subr.bf16.mxu1 %v3612_v0 }
 0x956   : > { %v2949_v31 = vpop.f32.mrf.mxu0 }
 0x958   : > { %2967 = vmatpush3.bf16.msra.mxu1 %v3221_v48 }
 0x959   : > { %2978 = vmatprep.subr.bf16.mxu1 %v3612_v0 }
 0xa13   : > { %v1409_v34 = vpop.f32.mrf.mxu1 }
 0xa14   : > { %v1415_v35 = vadd.f32 %v1409_v34, %v1257_v15  ;;  %v1482_v15 = vrot.slane %v3901_v12, %v1481_v14 }
 0xa15   : > { %v2954_v36 = vpop.f32.mrf.mxu1 }
 0xa16   : > { %v1420_v37 = vadd.f32 %v1419_v33, %v1415_v35 }
 0xa17   : > { %v1412_v38 = vpop.f32.mrf.mxu1 }
 0xa18   : > { %v1439_v39 = vadd.f32 %v1420_v37, %v3886_v6  ;;  %v1464_v6 = vld [vmem:[%s645_s28] sm:$0xff]  ;;  %s3622_s28 = smov 16  }
 0xa19   : > { %v2955_v40 = vpop.f32.mrf.mxu1  ;;  %v1478_v49 = vpack.c.bf16 %v1464_v6, %v1464_v6 }
 0xa1a   : > { %v1440_v41 = vsel %vm681_vm1, %v1439_v39, 0.0 }
 0xa1b   : > { %1441 = vadd.xlane.f32.xlu1 %v1440_v41  ;;  %2969 = vmatmul.mubr.msk.bf16.vlgmr.msra.gmra.mxu1 %vm681_vm1, %v1478_v49 }
 0xa1c   : > { %2980 = vmatprep.mubr.msk.bf16.mxu1 %vm3613_vm0, %v3612_v0 }
 0xaa4   : > { %v1442_v42 = vpop.xlane.xlu1 %1441 }
 0xaa5   : > { %v1444_v43 = vmul.f32 0.03125, %v1442_v42 }
 0xaa7   : > { %v1445_v44 = vsub.f32 %v1439_v39, %v1444_v43 }
 0xaa9   : > { %v1446_v45 = vmul.f32 %v1445_v44, %v1445_v44 }
 0xaab   : > { %v1447_v46 = vsel %vm681_vm1, %v1446_v45, 0.0 }
 0xaac   : > { %1448 = vadd.xlane.f32.xlu0 %v1447_v46 }
 0xadb   : > { %v1591_v3 = vpop.f32.mrf.mxu1 }
 0xadc   : > { %v1592_v11 = vadd.f32 %v1591_v3, %v1541_v13 }
 0xadd   : > { %v2970_v4 = vpop.f32.mrf.mxu1 }
 0xade   : > { %v4063_v5 = vpack.c.bf16 %v1592_v11, %v1592_v11 }
 0xadf   : > { %v1594_v7 = vpop.f32.mrf.mxu1 }
 0xae0   : > { %1710 = vrot.lane.b32.xlu0 %v4063_v5, %s3614_s4  ;;  %v1603_v8 = vsel %vm786_vm2, %v4063_v5, 0 }
 0xae1   : > { %v2971_v9 = vpop.f32.mrf.mxu1 }
 0xb35   : > { %v1449_v52 = vpop.xlane.xlu0 %1448 }
 0xb36   : > { %v1450_v53 = vmul.f32 0.03125, %v1449_v52 }
 0xb38   : > { %v1451_v54 = vadd.f32 1e-05, %v1450_v53  ;;  %v1474_v53 = vld [vmem:[#allocation11 + $0x4] sm:$0xf] }
 0xb3a   : > { %3246 = vrsqrt.f32 %v1451_v54  ;;  %v1823_v54 = vsel %vm851_vm3, %v1474_v53, 0  ;;  %v1475_v53 = vld [vmem:[#allocation11 + $0x8] sm:$0xf] }
 0xb47   : > { %v3247_v58 = vpop.eup %3246 }
 0xb48   : > { %v1453_v60 = vmul.f32 %v3247_v58, %v1445_v44 }
 0xb4a   : > { %v1458_v61 = vmul.f32 %v1457_v57, %v1453_v60 }
 0xb4c   : > { %v4052_v62 = vadd.f32 %v1462_v59, %v1458_v61  ;;  %v1473_v61 = vld [vmem:[#allocation11] sm:$0xf] }
 0xb4d   : > { %v1869_v3 = vsel %vm851_vm3, %v1473_v61, 0 }
 0xb4e   : > { %v1477_v63 = vpack.c.bf16 %v4052_v62, %v4052_v62 }
 0xb50   : > { %2961 = vmatmul.mubr.msk.bf16.vlgmr.msra.gmra.mxu0 %vm681_vm1, %v1477_v63 }
 0xb51   : > { %2974 = vmatprep.mubr.msk.bf16.mxu0 %vm3613_vm0, %v3612_v0  ;;  %2973 = vmatpush3.bf16.xpose.msra.mxu0 %v1603_v8 }
 0xb52   : > { %2984 = vmatprep.subr.bf16.mxu0 %v3612_v0  ;;  %v1711_v17 = vpop.permute.xlu0 %1710 }
 0xb53   : > { %v1716_v22 = vsel %vm786_vm2, %v1711_v17, 0 }
 0xc10   : > { %v1532_v16 = vpop.f32.mrf.mxu0 }
 0xc11   : > { %v1533_v18 = vadd.f32 %v1532_v16, %v1482_v15 }
 0xc12   : > { %v2962_v19 = vpop.f32.mrf.mxu0 }
 0xc13   : > { %v4074_v20 = vpack.c.bf16 %v1533_v18, %v1533_v18 }
 0xc14   : > { %v1535_v23 = vpop.f32.mrf.mxu0 }
 0xc15   : > { %1708 = vrot.lane.b32.xlu0 %v4074_v20, %s3614_s4  ;;  %2975 = vmatmul.mubr.msk.bf16.vlgmr.msra.gmra.mxu0 %vm786_vm2, %v4074_v20  ;;  %s2448_s4 = sand.u32 1, %s3733_s19  }
 0xc16   : > { %v2963_v21 = vpop.f32.mrf.mxu0  ;;  %2985 = vmatpush3.bf16.xpose.msra.mxu0 %v1716_v22  ;;  %2986 = vmatprep.mubr.msk.bf16.mxu0 %vm3613_vm0, %v3612_v0 }
 0xc17   : > { %2996 = vmatprep.subr.bf16.mxu0 %v3612_v0 }
 0xc87   : > { %v1709_v26 = vpop.permute.xlu0 %1708 }
 0xc88   : > { %2987 = vmatmul.mubr.msk.bf16.vlgmr.msra.gmra.mxu0 %vm786_vm2, %v1709_v26 }
 0xc89   : > { %2998 = vmatprep.mubr.msk.bf16.mxu0 %vm3613_vm0, %v3612_v0  ;;  %2997 = vmatpush3.bf16.msra.mxu0 %v1823_v54  ;;  %v2026_v54 = vsel %vm851_vm3, %v1475_v53, 0 }
 0xc8a   : > { %3008 = vmatprep.subr.bf16.mxu0 %v3612_v0 }
 0xcd5   : > { %v1639_v27 = vpop.f32.mrf.mxu0 }
 0xcd6   : > { %v1645_v28 = vsel %vm786_vm2, %v1639_v27, -inf }
 0xcd7   : > { %1646 = vmax.xlane.f32.xlu0 %v1645_v28  ;;  %v2976_v29 = vpop.f32.mrf.mxu0 }
 0xcd9   : > { %v1642_v30 = vpop.f32.mrf.mxu0 }
 0xcdb   : > { %v2977_v31 = vpop.f32.mrf.mxu0 }
 0xced   : > { %1913 = vrot.lane.b32.xlu0 %v4063_v5, %s3617_s26 }
 0xd48   : > { %v1752_v33 = vpop.f32.mrf.mxu0 }
 0xd49   : > { %v1758_v34 = vsel %vm786_vm2, %v1752_v33, -inf }
 0xd4a   : > { %1759 = vmax.xlane.f32.xlu1 %v1758_v34  ;;  %v2988_v35 = vpop.f32.mrf.mxu0 }
 0xd4c   : > { %v1755_v36 = vpop.f32.mrf.mxu0 }
 0xd4e   : > { %v2989_v37 = vpop.f32.mrf.mxu0 }
 0xd5b   : > { %1658 = vrot.lane.b32.xlu1 %v4063_v5, %s3615_s22  ;;  %s4247_s22 = sshll.u32 %s3591_s16, 7 }
 0xd60   : > { %v1647_v38 = vpop.xlane.xlu0 %1646 }
 0xd61   : > { %v1648_v39 = vsub.f32 %v1639_v27, %v1647_v38 }
 0xd63   : > { %v1649_v40 = vmul.f32 1.442695, %v1648_v39 }
 0xd64   : > { %v1914_v15 = vpop.permute.xlu0 %1913 }
 0xd65   : > { %3248 = vpow2.f32 %v1649_v40  ;;  %v1919_v19 = vsel %vm786_vm2, %v1914_v15, 0 }
 0xd72   : > { %v3249_v41 = vpop.eup %3248 }
 0xd73   : > { %v1651_v42 = vsel %vm786_vm2, %v3249_v41, 0.0 }
 0xd7f   : > { %1652 = vadd.xlane.f32.xlu1 %v1651_v42 }
 0xdd3   : > { %v1760_v43 = vpop.xlane.xlu1 %1759 }
 0xdd4   : > { %v1761_v44 = vsub.f32 %v1752_v33, %v1760_v43 }
 0xdd6   : > { %v1762_v45 = vmul.f32 1.442695, %v1761_v44 }
 0xdd7   : > { %v1659_v46 = vpop.permute.xlu1 %1658 }
 0xdd8   : > { %3250 = vpow2.f32 %v1762_v45  ;;  %v1664_v24 = vsel %vm851_vm3, %v1659_v46, 0 }
 0xdd9   : > { %2979 = vmatpush3.bf16.msra.mxu1 %v1664_v24 }
 0xdda   : > { %2990 = vmatprep.subr.bf16.mxu1 %v3612_v0 }
 0xde5   : > { %v3251_v48 = vpop.eup %3250 }
 0xde6   : > { %v1764_v6 = vsel %vm786_vm2, %v3251_v48, 0.0 }
 0xde7   : > { %1765 = vadd.xlane.f32.xlu1 %v1764_v6 }
 0xdf8   : > { %1770 = vrot.lane.b32.xlu1 %v4063_v5, %s3616_s15 }
 0xdfc   : > { %1911 = vrot.lane.b32.xlu1 %v4074_v20, %s3617_s26 }
 0xe08   : > { %v1653_v49 = vpop.xlane.xlu1 %1652 }
 0xe09   : > { %3252 = vrcp.f32 %v1653_v49 }
 0xe16   : > { %v3253_v50 = vpop.eup %3252 }
 0xe17   : > { %v4101_v51 = vmul.f32 %v3253_v50, %v3249_v41 }
 0xe19   : > { %v1656_v52 = vpack.c.bf16 %v4101_v51, %v4101_v51 }
 0xe1b   : > { %2981 = vmatmul.mubr.msk.bf16.vlgmr.msra.gmra.mxu1 %vm786_vm2, %v1656_v52 }
 0xe1c   : > { %2992 = vmatprep.mubr.msk.bf16.mxu1 %vm3613_vm0, %v3612_v0 }
 0xe70   : > { %v1766_v57 = vpop.xlane.xlu1 %1765 }
 0xe71   : > { %3254 = vrcp.f32 %v1766_v57 }
 0xe74   : > { %v1771_v58 = vpop.permute.xlu1 %1770 }
 0xe75   : > { %v1776_v59 = vsel %vm851_vm3, %v1771_v58, 0 }
 0xe76   : > { %2991 = vmatpush3.bf16.msra.mxu1 %v1776_v59 }
 0xe77   : > { %3002 = vmatprep.subr.bf16.mxu1 %v3612_v0 }
 0xe78   : > { %v1912_v21 = vpop.permute.xlu1 %1911 }
 0xe7e   : > { %v3255_v60 = vpop.eup %3254 }
 0xe7f   : > { %v4112_v63 = vmul.f32 %v3255_v60, %v3251_v48 }
 0xe81   : > { %v1769_v13 = vpack.c.bf16 %v4112_v63, %v4112_v63 }
 0xe83   : > { %2993 = vmatmul.mubr.msk.bf16.vlgmr.msra.gmra.mxu1 %vm786_vm2, %v1769_v13 }
 0xe84   : > { %3003 = vmatpush3.bf16.msra.mxu1 %v1869_v3  ;;  %3004 = vmatprep.mubr.msk.bf16.mxu1 %vm3613_vm0, %v3612_v0 }
 0xe85   : > { %3014 = vmatprep.subr.bf16.mxu1 %v3612_v0 }
 0xedb   : > { %v1700_v11 = vpop.f32.mrf.mxu1 }
 0xedc   : > { %v1706_v4 = vpack.c.bf16 %v1700_v11, %v1700_v11 }
 0xedd   : > { %v2982_v7 = vpop.f32.mrf.mxu1 }
 0xede   : > { %3005 = vmatmul.mubr.msk.bf16.vlgmr.msra.gmra.mxu1 %vm786_vm2, %v1706_v4 }
 0xedf   : > { %v1703_v8 = vpop.f32.mrf.mxu1  ;;  %3016 = vmatprep.mubr.msk.bf16.mxu1 %vm3613_vm0, %v3612_v0 }
 0xee1   : > { %v2983_v9 = vpop.f32.mrf.mxu1 }
 0xf43   : > { %v1812_v16 = vpop.f32.mrf.mxu1 }
 0xf44   : > { %v1818_v17 = vpack.c.bf16 %v1812_v16, %v1812_v16 }
 0xf45   : > { %v2994_v18 = vpop.f32.mrf.mxu1 }
 0xf46   : > { %2999 = vmatmul.mubr.msk.bf16.vlgmr.msra.gmra.mxu0 %vm786_vm2, %v1818_v17 }
 0xf47   : > { %3009 = vmatpush3.bf16.xpose.msra.mxu0 %v1919_v19  ;;  %v1815_v22 = vpop.f32.mrf.mxu1  ;;  %3010 = vmatprep.mubr.msk.bf16.mxu0 %vm3613_vm0, %v3612_v0 }
 0xf48   : > { %3020 = vmatprep.subr.bf16.mxu0 %v3612_v0 }
 0xf49   : > { %v2995_v23 = vpop.f32.mrf.mxu1 }
 0xf4e   : > { %3011 = vmatmul.mubr.msk.bf16.vlgmr.msra.gmra.mxu0 %vm786_vm2, %v1912_v21  ;;  %v1476_v21 = vld [vmem:[#allocation11 + $0xc] sm:$0xf] }
 0xf4f   : > { %3022 = vmatprep.mubr.msk.bf16.mxu0 %vm3613_vm0, %v3612_v0  ;;  %3021 = vmatpush3.bf16.msra.mxu0 %v2026_v54 }
 0xf50   : > { %3032 = vmatprep.subr.bf16.mxu0 %v3612_v0 }
 0xf9e   : > { %v4132_v26 = vpop.f32.mrf.mxu1 }
 0xfa0   : > { %v3006_v27 = vpop.f32.mrf.mxu1 }
 0xfa1   : > { %v2184_v27 = vsel %vm851_vm3, %v1476_v21, 0 }
 0xfa2   : > { %v1908_v28 = vpop.f32.mrf.mxu1 }
 0xfa4   : > { %v3007_v29 = vpop.f32.mrf.mxu1 }
0x1006   : > { %v4134_v30 = vpop.f32.mrf.mxu0 }
0x1007   : > { %v1906_v22 = vadd.f32 %v4132_v26, %v4134_v30 }
0x1008   : > { %v3000_v31 = vpop.f32.mrf.mxu0 }
0x100a   : > { %v1862_v33 = vpop.f32.mrf.mxu0 }
0x100c   : > { %v3001_v34 = vpop.f32.mrf.mxu0 }
0x100e   : > { %v1955_v35 = vpop.f32.mrf.mxu0 }
0x100f   : > { %v1961_v36 = vsel %vm786_vm2, %v1955_v35, -inf }
0x1010   : > { %1962 = vmax.xlane.f32.xlu1 %v1961_v36  ;;  %v3012_v37 = vpop.f32.mrf.mxu0 }
0x1012   : > { %v1958_v38 = vpop.f32.mrf.mxu0 }
0x1014   : > { %v3013_v39 = vpop.f32.mrf.mxu0 }
0x1021   : > { %1973 = vrot.lane.b32.xlu1 %v4063_v5, %s3618_s20  ;;  %s2480_s20 = scalar_lea.hbm %s4358_s13, %s4247_s22 }
0x1025   : > { %2069 = vrot.lane.b32.xlu1 %v4074_v20, %s3619_s18 }
0x1099   : > { %v1963_v40 = vpop.xlane.xlu1 %1962 }
0x109a   : > { %v1964_v41 = vsub.f32 %v1955_v35, %v1963_v40  ;;  %v2229_v40 = vsub.s32 5, %v3898_v10 }
0x109c   : > { %v1965_v42 = vmul.f32 1.442695, %v1964_v41  ;;  %v2230_v41 = vrot.slane %v3901_v12, %v2229_v40  ;;  %v3224_v12 = vld [vmem:[%s4354_s9 + $0x8] sm:$0xff]  }
0x109d   : > { %v1974_v43 = vpop.permute.xlu1 %1973 }
0x109e   : > { %3256 = vpow2.f32 %v1965_v42  ;;  %v1979_v44 = vsel %vm851_vm3, %v1974_v43, 0 }
0x109f   : > { %3015 = vmatpush3.bf16.msra.mxu1 %v1979_v44 }
0x10a0   : > { %3026 = vmatprep.subr.bf16.mxu1 %v3612_v0 }
0x10a1   : > { %v2070_v52 = vpop.permute.xlu1 %2069 }
0x10ab   : > { %v3257_v45 = vpop.eup %3256 }
0x10ac   : > { %v1967_v46 = vsel %vm786_vm2, %v3257_v45, 0.0 }
0x10ad   : > { %1968 = vadd.xlane.f32.xlu0 %v1967_v46 }
0x10c3   : > { %2071 = vrot.lane.b32.xlu0 %v4063_v5, %s3619_s18  ;;  %s2482_s18 = sshll.u32 %s623_s29, 4  ;;  %s2483_s18 = int_to_ptr.vmem [resolvable:$true] %s2482_s18 }
0x10c4   : > { %s3451_s27 = scalar_lea.vmem %s2483_s18, 128 }
0x10c5   : > { %p3452_p8 = scmp.ne.s32.totalorder %s2483_s18, %s3451_s27 }
0x10c7   : > { %p3453_p11 = pnand %p3452_p8, %p3745_p4 }
0x10c9   : > { %p3454_p5 = pneg %p3453_p11 }
0x1136   : > { %v1969_v24 = vpop.xlane.xlu0 %1968 }
0x1137   : > { %3258 = vrcp.f32 %v1969_v24 }
0x113a   : > { %v2072_v6 = vpop.permute.xlu0 %2071 }
0x113b   : > { %v2077_v50 = vsel %vm786_vm2, %v2072_v6, 0 }
0x1144   : > { %v3259_v20 = vpop.eup %3258 }
0x1145   : > { %v4146_v48 = vmul.f32 %v3259_v20, %v3257_v45 }
0x1147   : > { %v1972_v49 = vpack.c.bf16 %v4146_v48, %v4146_v48 }
0x1149   : > { %3017 = vmatmul.mubr.msk.bf16.vlgmr.msra.gmra.mxu1 %vm786_vm2, %v1972_v49 }
0x114a   : > { %3027 = vmatpush3.bf16.xpose.msra.mxu1 %v2077_v50  ;;  %3028 = vmatprep.mubr.msk.bf16.mxu1 %vm3613_vm0, %v3612_v0 }
0x114b   : > { %3038 = vmatprep.subr.bf16.mxu1 %v3612_v0 }
0x1151   : > { %3029 = vmatmul.mubr.msk.bf16.vlgmr.msra.gmra.mxu1 %vm786_vm2, %v2070_v52 }
0x1152   : > { %3040 = vmatprep.mubr.msk.bf16.mxu1 %vm3613_vm0, %v3612_v0  ;;  %3039 = vmatpush3.bf16.msra.mxu1 %v2184_v27 }
0x1153   : > { %3052 = vmatprep.subr.bf16.mxu1 %v3612_v0 }
0x1209   : > { %v2015_v57 = vpop.f32.mrf.mxu1 }
0x120a   : > { %v2021_v58 = vpack.c.bf16 %v2015_v57, %v2015_v57  ;;  %v3226_v57 = vld [vmem:[%s4355_s10 + $0x18] sm:$0xff]  }
0x120b   : > { %v3018_v59 = vpop.f32.mrf.mxu1 }
0x120c   : > { %3023 = vmatmul.mubr.msk.bf16.vlgmr.msra.gmra.mxu0 %vm786_vm2, %v2021_v58  ;;  %v3227_v58 = vld [vmem:[%s4355_s10 + $0x10] sm:$0xff]  }
0x120d   : > { %v2018_v60 = vpop.f32.mrf.mxu1  ;;  %3034 = vmatprep.mubr.msk.bf16.mxu0 %vm3613_vm0, %v3612_v0 }
0x120f   : > { %v3019_v61 = vpop.f32.mrf.mxu1 }
0x1211   : > { %v2113_v13 = vpop.f32.mrf.mxu1 }
0x1212   : > { %v2119_v3 = vsel %vm786_vm2, %v2113_v13, -inf }
0x1213   : > { %2120 = vmax.xlane.f32.xlu1 %v2119_v3  ;;  %v3030_v11 = vpop.f32.mrf.mxu1 }
0x1214   : > { %v2270_v11 = vrot.slane %v4044_v55, %v1481_v14  ;;  %v2279_v14 = vsub.s32 6, %v3898_v10 }
0x1215   : > { %v2116_v4 = vpop.f32.mrf.mxu1 }
0x1217   : > { %v3031_v7 = vpop.f32.mrf.mxu1 }
0x1224   : > { %2131 = vrot.lane.b32.xlu1 %v4063_v5, %s3620_s3  ;;  %s4253_s3 = scalar_lea.sflag [#allocation16], %s2448_s4 }
0x129c   : > { %v2121_v8 = vpop.xlane.xlu1 %2120 }
0x129d   : > { %v2122_v9 = vsub.f32 %v2113_v13, %v2121_v8  ;;  %v2265_v13 = vrot.slane %v4044_v55, %v1418_v32  ;;  %v3229_v32 = vld [vmem:[%s4355_s10] sm:$0xff]  }
0x129f   : > { %v2123_v15 = vmul.f32 1.442695, %v2122_v9 }
0x12a0   : > { %v2132_v16 = vpop.permute.xlu1 %2131 }
0x12a1   : > { %3260 = vpow2.f32 %v2123_v15  ;;  %v2137_v17 = vsel %vm851_vm3, %v2132_v16, 0  ;;  %v3228_v15 = vld [vmem:[%s4355_s10 + $0x8] sm:$0xff]   ;;  %v3268_v16 = vld [vmem:[#allocation13] sm:$0xff] }
0x12a2   : > { %3033 = vmatpush3.bf16.msra.mxu0 %v2137_v17  ;;  %v2280_v17 = vrot.slane %v3268_v16, %v2279_v14 }
0x12a3   : > { %3044 = vmatprep.subr.bf16.mxu0 %v3612_v0 }
0x12ae   : > { %v3261_v18 = vpop.eup %3260 }
0x12af   : > { %v2125_v19 = vsel %vm786_vm2, %v3261_v18, 0.0 }
0x12b0   : > { %2126 = vadd.xlane.f32.xlu0 %v2125_v19 }
0x12cc   : > { %v2062_v23 = vpop.f32.mrf.mxu0 }
0x12cd   : > { %v2068_v5 = vadd.f32 %v2062_v23, %v1906_v22 }
0x12ce   : > { %v3024_v28 = vpop.f32.mrf.mxu0 }
0x12d0   : > { %v2065_v29 = vpop.f32.mrf.mxu0 }
0x12d2   : > { %v3025_v31 = vpop.f32.mrf.mxu0 }
0x1339   : > { %v2127_v33 = vpop.xlane.xlu0 %2126 }
0x133a   : > { %3262 = vrcp.f32 %v2127_v33 }
0x1347   : > { %v3263_v34 = vpop.eup %3262 }
0x1348   : > { %v4173_v35 = vmul.f32 %v3263_v34, %v3261_v18 }
0x134a   : > { %v2130_v36 = vpack.c.bf16 %v4173_v35, %v4173_v35 }
0x134c   : > { %3035 = vmatmul.mubr.msk.bf16.vlgmr.msra.gmra.mxu0 %vm786_vm2, %v2130_v36 }
0x134d   : > { %3048 = vmatprep.mubr.msk.bf16.mxu0 %vm3613_vm0, %v3612_v0  ;;  %3045 = vmatpush3.bf16.msra.mxu0 %v3224_v12 }
0x134e   : > { %3046 = vmatprep.subr.bf16.mxu0 %v3612_v0 }
0x140c   : > { %v2173_v26 = vpop.f32.mrf.mxu0 }
0x140d   : > { %v2179_v30 = vpack.c.bf16 %v2173_v26, %v2173_v26 }
0x140e   : > { %v3036_v37 = vpop.f32.mrf.mxu0 }
0x140f   : > { %3041 = vmatmul.mubr.msk.bf16.vlgmr.msra.gmra.mxu1 %vm786_vm2, %v2179_v30 }
0x1410   : > { %v2176_v38 = vpop.f32.mrf.mxu0  ;;  %3060 = vmatprep.mubr.msk.bf16.mxu1 %vm3613_vm0, %v3612_v0  ;;  %3053 = vmatpush3.bf16.msra.mxu1 %v3226_v57 }
0x1411   : > { %3054 = vmatprep.subr.bf16.mxu1 %v3612_v0 }
0x1412   : > { %v3037_v39 = vpop.f32.mrf.mxu0 }
0x1414   : > { %3055 = vmatpush3.bf16.msra.mxu1 %v3227_v58 }
0x1415   : > { %3056 = vmatprep.subr.bf16.mxu1 %v3612_v0 }
0x1418   : > { %3057 = vmatpush3.bf16.msra.mxu1 %v3228_v15 }
0x1419   : > { %3058 = vmatprep.subr.bf16.mxu1 %v3612_v0  ;;  %v2348_v0 = vsub.s32 7, %v3898_v10 }
0x141b   : > { %v2349_v28 = vrot.slane %v3268_v16, %v2348_v0 }
0x141c   : > { %3059 = vmatpush3.bf16.msra.mxu1 %v3229_v32 }
0x14cf   : > { %v2220_v42 = vpop.f32.mrf.mxu1 }
0x14d0   : > { %v2226_v43 = vadd.f32 %v2220_v42, %v2068_v5 }
0x14d1   : > { %v3042_v44 = vpop.f32.mrf.mxu1 }
0x14d2   : > { %v2231_v45 = vadd.f32 %v2230_v41, %v2226_v43 }
0x14d3   : > { %v2223_v46 = vpop.f32.mrf.mxu1 }
0x14d4   : > { %v2248_v24 = vadd.f32 %v2231_v45, %v4052_v62  ;;  %v3225_v62 = vld [vmem:[%s4354_s9] sm:$0xff]  }
0x14d5   : > { %v3043_v20 = vpop.f32.mrf.mxu1  ;;  %3047 = vmatpush3.bf16.msra.mxu0 %v3225_v62 }
0x14d6   : > { %v2249_v6 = vsel %vm681_vm1, %v2248_v24, 0.0 }
0x14d7   : > { %2250 = vadd.xlane.f32.xlu0 %v2249_v6 }
0x1560   : > { %v2251_v49 = vpop.xlane.xlu0 %2250 }
0x1561   : > { %v2252_v50 = vmul.f32 0.03125, %v2251_v49 }
0x1563   : > { %v2253_v52 = vsub.f32 %v2248_v24, %v2252_v50 }
0x1565   : > { %v2254_v53 = vmul.f32 %v2253_v52, %v2253_v52 }
0x1567   : > { %v2255_v54 = vsel %vm681_vm1, %v2254_v53, 0.0 }
0x1568   : > { %2256 = vadd.xlane.f32.xlu0 %v2255_v54 }
0x15f1   : > { %v2257_v59 = vpop.xlane.xlu0 %2256 }
0x15f2   : > { %v2258_v60 = vmul.f32 0.03125, %v2257_v59 }
0x15f4   : > { %v2259_v61 = vadd.f32 1e-05, %v2258_v60 }
0x15f6   : > { %3264 = vrsqrt.f32 %v2259_v61 }
0x1603   : > { %v3265_v3 = vpop.eup %3264 }
0x1604   : > { %v2261_v4 = vmul.f32 %v3265_v3, %v2253_v52 }
0x1606   : > { %v2266_v7 = vmul.f32 %v2265_v13, %v2261_v4 }
0x1608   : > { %v2271_v8 = vadd.f32 %v2270_v11, %v2266_v7 }
0x160a   : > { %v2272_v9 = vpack.c.bf16 %v2271_v8, %v2271_v8 }
0x160c   : > { %3049 = vmatmul.mubr.msk.bf16.vlgmr.msra.gmra.mxu0 %vm681_vm1, %v2272_v9 }
0x16cc   : > { %v2330_v18 = vpop.f32.mrf.mxu0 }
0x16cd   : > { %v2331_v19 = vadd.f32 %v2330_v18, %v2280_v17 }
0x16ce   : > { %v3050_v22 = vpop.f32.mrf.mxu0 }
0x16cf   : > { %v2336_v23 = vmax.f32 %v2331_v19, 0.0 }
0x16d0   : > { %v2333_v21 = vpop.f32.mrf.mxu0 }
0x16d1   : > { %v2337_v5 = vpack.c.bf16 %v2336_v23, %v2336_v23 }
0x16d2   : > { %v3051_v27 = vpop.f32.mrf.mxu0 }
0x16d3   : > { %3061 = vmatmul.mubr.msk.bf16.vlgmr.msra.gmra.mxu1 %vm2374_vm4, %v2337_v5 }
0x1793   : > { %v2412_v29 = vpop.f32.mrf.mxu1 }
0x1794   : > { %v2413_v31 = vadd.f32 %v2412_v29, %v2349_v28 }
0x1795   : > { %v3062_v33 = vpop.f32.mrf.mxu1 }
0x1796   : > { %v2418_v34 = vadd.f32 %v2413_v31, %v2271_v8 }
0x1797   : > { %v2415_v36 = vpop.f32.mrf.mxu1 }
0x1798   : > { %v2419_v26 = vsel %vm681_vm1, %v2418_v34, 0.0 }
0x1799   : > { %2420 = vadd.xlane.f32.xlu0 %v2419_v26  ;;  %v3063_v30 = vpop.f32.mrf.mxu1 }
0x17af   : > { %1422 = vrot.lane.b32.xlu0 %v3955_v2, %s3621_s24 }
0x17b3   : > { %1426 = vrot.lane.b32.xlu0 %v3989_v47, %s3622_s28 }
0x17b7   : > { %2233 = vrot.lane.b32.xlu0 %v4112_v63, %s3621_s24  ;;  %s3624_s24 = smov [#allocation15]  }
0x17bb   : > { %1430 = vrot.lane.b32.xlu0 %v4016_v25, %s3623_s17 }
0x17bf   : > { %2237 = vrot.lane.b32.xlu0 %v4146_v48, %s3622_s28  ;;  %s3455_s28 = sshll.u32 %s3624_s24, 4  ;;  %s3456_s28 = int_to_ptr.vmem [resolvable:$false] %s3455_s28 }
0x17c0   : > { %s3457_s19 = scalar_lea.vmem %s3456_s28, 256  ;;  %p3458_p2 = scmp.lt.s32.totalorder %s2483_s18, %s3456_s28 }
0x17c1   : > { %p3459_p3 = scmp.lt.s32.totalorder %s3457_s19, %s3451_s27 }
0x17c3   : > { %p3460_p0 = por %p3459_p3, %p3458_p2 }
0x17c5   : > { %p3461_p6 = pnand %p3460_p0, %p3454_p5 }
0x1822   : > { %v2421_v37 = vpop.xlane.xlu0 %2420 }
0x1823   : > { %v2422_v38 = vmul.f32 0.03125, %v2421_v37 }
0x1825   : > { %v4227_v39 = vsub.f32 %v2418_v34, %v2422_v38 }
0x1826   : > { %v1423_v41 = vpop.permute.xlu0 %1422 }
0x1827   : > { %v2424_v42 = vmul.f32 %v4227_v39, %v4227_v39  ;;  %v1433_v25 = vsel %vm786_vm2, %v3944_v56, %v1423_v41 }
0x1829   : > { %v2425_v2 = vsel %vm681_vm1, %v2424_v42, 0.0 }
0x182a   : > { %2426 = vadd.xlane.f32.xlu1 %v2425_v2  ;;  %v1427_v43 = vpop.permute.xlu0 %1426 }
0x182b   : > { %v1435_v63 = vsel %vm1434_vm5, %v1433_v25, %v1427_v43 }
0x182e   : > { %v2234_v47 = vpop.permute.xlu0 %2233 }
0x182f   : > { %v2244_v45 = vsel %vm786_vm2, %v4101_v51, %v2234_v47 }
0x1832   : > { %v1431_v48 = vpop.permute.xlu0 %1430 }
0x1833   : > { %v1437_v44 = vsel %vm1436_vm6, %v1435_v63, %v1431_v48 }
0x1834   : > { %1438 = vst.msk [vmem:[%s623_s29] sm:$0xff] %vm681_vm1, %v1437_v44 }
0x1836   : > { %v2238_v46 = vpop.permute.xlu0 %2237 }
0x1837   : > { %v2245_v24 = vsel %vm1434_vm5, %v2244_v45, %v2238_v46 }
0x183b   : > { %2241 = vrot.lane.b32.xlu1 %v4173_v35, %s3623_s17 }
0x183c   : > { %3464 = shalt.err (!%p3461_p6)
}
0x183d   : > { %s3465_s16 = scalar_lea.hbm %s2480_s20, 128  ;;  %s3469_s4 = scalar_lea.hbm %s4358_s13, 256 }
0x183e   : > { %p3466_p7 = scmp.ne.s32.totalorder %s2480_s20, %s3465_s16  ;;  %p3470_p10 = scmp.lt.s32.totalorder %s2480_s20, %s4358_s13 }
0x183f   : > { %p3471_p1 = scmp.lt.s32.totalorder %s3469_s4, %s3465_s16 }
0x1840   : > { %p3467_p9 = pnand %p3466_p7, %p3745_p4 }
0x1841   : > { %p3472_p12 = por %p3471_p1, %p3470_p10 }
0x1842   : > { %p3468_p13 = pneg %p3467_p9 }
0x1844   : > { %p3473_p8 = pnand %p3472_p12, %p3468_p13 }
0x1846   : > { %3476 = shalt.err (!%p3473_p8)
}
0x1847   : > { %3093 = dma.vmem_to_hbm [thread:$0]  (%p3745_p4), %s2483_s18, 128, %s2480_s20, %s4253_s3  }
0x1848   : > { %s630_s27 = scalar_lea.vmem [#allocation17], %s4235_s25  ;;  %s4273_s16 = scalar_lea.hbm %s4359_s14, %s4247_s22 }
0x1849   : > { %s2496_s24 = sshll.u32 %s630_s27, 4  ;;  %s3625_s20 = smov [#allocation17]   ;;  %s2497_s24 = int_to_ptr.vmem [resolvable:$true] %s2496_s24 }
0x184a   : > { %s3477_s17 = scalar_lea.vmem %s2497_s24, 128  ;;  %s3481_s18 = sshll.u32 %s3625_s20, 4  ;;  %s3482_s18 = int_to_ptr.vmem [resolvable:$false] %s3481_s18 }
0x184b   : > { %p3478_p11 = scmp.ne.s32.totalorder %s2497_s24, %s3477_s17  ;;  %s3483_s29 = scalar_lea.vmem %s3482_s18, 256 }
0x184c   : > { %p3484_p3 = scmp.lt.s32.totalorder %s2497_s24, %s3482_s18  ;;  %p3485_p0 = scmp.lt.s32.totalorder %s3483_s29, %s3477_s17 }
0x184d   : > { %p3479_p5 = pnand %p3478_p11, %p3745_p4 }
0x184e   : > { %p3486_p6 = por %p3485_p0, %p3484_p3 }
0x184f   : > { %p3480_p2 = pneg %p3479_p5 }
0x1851   : > { %p3487_p7 = pnand %p3486_p6, %p3480_p2 }
0x18b3   : > { %v2427_v56 = vpop.xlane.xlu1 %2426 }
0x18b4   : > { %v2428_v51 = vmul.f32 0.03125, %v2427_v56 }
0x18b6   : > { %v2429_v35 = vadd.f32 1e-05, %v2428_v51 }
0x18b7   : > { %v2242_v20 = vpop.permute.xlu1 %2241 }
0x18b8   : > { %3266 = vrsqrt.f32 %v2429_v35  ;;  %v2246_v6 = vsel %vm1436_vm6, %v2245_v24, %v2242_v20 }
0x18b9   : > { %2247 = vst.msk [vmem:[%s630_s27] sm:$0xff] %vm681_vm1, %v2246_v6 }
0x18ba   : > { %3490 = shalt.err (!%p3487_p7)
}
0x18bb   : > { %s3491_s4 = scalar_lea.hbm %s4273_s16, 128  ;;  %s3495_s27 = scalar_lea.hbm %s4359_s14, 256 }
0x18bc   : > { %p3492_p9 = scmp.ne.s32.totalorder %s4273_s16, %s3491_s4  ;;  %p3496_p1 = scmp.lt.s32.totalorder %s4273_s16, %s4359_s14 }
0x18bd   : > { %p3497_p12 = scmp.lt.s32.totalorder %s3495_s27, %s3491_s4 }
0x18be   : > { %p3493_p13 = pnand %p3492_p9, %p3745_p4 }
0x18bf   : > { %p3498_p8 = por %p3497_p12, %p3496_p1 }
0x18c0   : > { %p3494_p10 = pneg %p3493_p13 }
0x18c2   : > { %p3499_p11 = pnand %p3498_p8, %p3494_p10 }
0x18c4   : > { %3502 = shalt.err (!%p3499_p11)
}
0x18c5   : > { %3094 = dma.vmem_to_hbm [thread:$0]  (%p3745_p4), %s2497_s24, 128, %s4273_s16, %s4253_s3   ;;  %v2435_v49 = vrot.slane %v4044_v55, %v1540_v1  ;;  %v3267_v50 = vpop.eup %3266  ;;  %v2440_v52 = vrot.slane %v4044_v55, %v2229_v40 }
0x18c6   : > { %v2431_v53 = vmul.f32 %v3267_v50, %v4227_v39  ;;  %s616_s17 = scalar_lea.vmem [#allocation14], %s4235_s25  ;;  %s2466_s4 = scalar_lea.hbm %s4357_s12, %s4247_s22 }
0x18c7   : > { %s2468_s20 = sshll.u32 %s616_s17, 4  ;;  %s2444_s3 = scalar_lea.sflag [#allocation4], %s614_s21  ;;  %s2469_s20 = int_to_ptr.vmem [resolvable:$true] %s2468_s20 }
0x18c8   : > { %v2436_v54 = vmul.f32 %v2435_v49, %v2431_v53  ;;  %s3503_s24 = scalar_lea.vmem %s2469_s20, 128  ;;  %s3626_s16 = smov [#allocation14]  }
0x18c9   : > { %p3504_p5 = scmp.ne.s32.totalorder %s2469_s20, %s3503_s24  ;;  %s3507_s15 = sshll.u32 %s3626_s16, 4  ;;  %s3508_s15 = int_to_ptr.vmem [resolvable:$false] %s3507_s15 }
0x18ca   : > { %v2441_v12 = vadd.f32 %v2440_v52, %v2436_v54  ;;  %s3509_s25 = scalar_lea.vmem %s3508_s15, 256  ;;  %p3510_p0 = scmp.lt.s32.totalorder %s2469_s20, %s3508_s15 }
0x18cb   : > { %p3505_p2 = pnand %p3504_p5, %p3745_p4  ;;  %p3511_p6 = scmp.lt.s32.totalorder %s3509_s25, %s3503_s24 }
0x18cc   : > { %2442 = vst.msk [vmem:[%s616_s17] sm:$0xff] %vm681_vm1, %v2441_v12 }
0x18cd   : > { %p3506_p3 = pneg %p3505_p2  ;;  %p3512_p7 = por %p3511_p6, %p3510_p0 }
0x18cf   : > { %p3513_p9 = pnand %p3512_p7, %p3506_p3 }
0x18d1   : > { %3516 = shalt.err (!%p3513_p9)
}
0x18d2   : > { %s3517_s22 = scalar_lea.hbm %s2466_s4, 128  ;;  %s3521_s27 = scalar_lea.hbm %s4357_s12, 256 }
0x18d3   : > { %p3518_p13 = scmp.ne.s32.totalorder %s2466_s4, %s3517_s22  ;;  %p3522_p12 = scmp.lt.s32.totalorder %s2466_s4, %s4357_s12 }
0x18d4   : > { %p3523_p8 = scmp.lt.s32.totalorder %s3521_s27, %s3517_s22 }
0x18d5   : > { %p3519_p10 = pnand %p3518_p13, %p3745_p4 }
0x18d6   : > { %p3524_p11 = por %p3523_p8, %p3522_p12 }
0x18d7   : > { %p3520_p1 = pneg %p3519_p10 }
0x18d9   : > { %p3525_p5 = pnand %p3524_p11, %p3520_p1 }
0x18db   : > { %3528 = shalt.err (!%p3525_p5)
}
0x18dc   : > { %3092 = dma.vmem_to_hbm [thread:$0]  (%p3745_p4), %s2469_s20, 128, %s2466_s4, %s2444_s3  }
0x18dd PF: > { %s4393_s17 = sld [smem:[#allocation27_spill]] }
0x18de   : > { %s4394_s18 = sld [smem:[#allocation24_spill]] }
0x18df   : > { %s4395_s29 = sld [smem:[#allocation29_spill]] }
0x18e3   : > { %p3144_p2 = scmp.ge.s32.totalorder %s4393_s17, 2 }
0x18e4   : > { %s2508_s24 = sand.u32 1, %s4394_s18  }
0x18e5   : > { %p4396_p3 = scmp.ne.s32.totalorder %s4395_s29, 0  ;;  %s2509_s16 = scalar_lea.sflag [#allocation4], %s2508_s24 }
0x18e7   : > { %p3121_p0 = pnand %p3144_p2, %p4396_p3 }
0x18e9   : > { %p3122_p6 = pneg %p3121_p0 }
0x18eb   : > { %3570 = dma.done.wait (%p3122_p6), %s2509_s16, 128  }
0x18ec   : > { %3572 = vsyncadd (%p3122_p6), %s2509_s16, 4294967168  ;;  %s4397_s15 = sadd.s32 4294967294, %s4393_s17  }
0x18ed   : > { %s2517_s25 = sand.u32 1, %s4397_s15  }
0x18ee   : > { %s2518_s22 = scalar_lea.sflag [#allocation16], %s2517_s25 }
0x18ef   : > { %3574 = dma.done.wait (%p3122_p6), %s2518_s22, 256  }
0x18f0   : > { %3576 = vsyncadd (%p3122_p6), %s2518_s22, 4294967040  ;;  %s35_s18 = sadd.s32 1, %s4393_s17   ;;  %s4398_s23 = sld [smem:[#allocation25_spill]] }
0x18f1   : > { %p32_p4 = scmp.ge.s32.totalorder %s35_s18, 4   ;;  %s4399_s15 = sld [smem:[#allocation30_spill]] }
0x18f2   : > { %s4400_s16 = sld [smem:[#allocation26_spill]]  ;;  %s4402_s29 = smov %s3583_s30 }
0x18f3   : > { %s4401_s17 = sld [smem:[#allocation28_spill]]  ;;  %34 = sbr.rel (!%p32_p4) target bundleno = 13 (0xd), region = 170 }
0x18f6   : > { %s4403_s30 = smov %s4398_s23 }
0x18f8   :  { %2532 = vsyncpa [#allocation3], 1 }
0x18f9   :  { %2534 = vsyncpa [#allocation3 + $0x1], 1 }
0x18fa   :  { %2535 = vsyncpa [#allocation6], 1 }
0x18fb   :  { %2536 = vsyncpa [#allocation9], 1 }
0x18fc   :  { %2537 = vsyncpa [#allocation12], 1 }
0x18fd   :  { %2538 = vsyncpa [#allocation4], 1 }
0x18fe   :  { %2540 = vsyncpa [#allocation4 + $0x1], 1 }
0x18ff   :  { %2541 = vsyncpa [#allocation16], 1 }
0x1900   :  { %2543 = vsyncpa [#allocation16 + $0x1], 1 }

</bundles_post_ra>
